<compile_context>
chip_gen: v7x
topology: tpu7x:2x2x1
jax: 0.10.0
libtpu: 0.0.40
codegen_flags: <defaults>
</compile_context>

<pallas_src>
import functools

import jax
import jax.numpy as jnp
from jax.experimental import pallas as pl
from jax.experimental.pallas import tpu as pltpu

LANE = 128
MAX_TK = 256            # contraction tile (multiple of 128 when K is tiled)
FUSE_NORM_MAX_S = 1024  # fuse IN+LReLU into the GEMM epilogue if padded spatial <= this
VMEM_LIMIT = 48 * 1024 * 1024   # explicit; safely below v7x's 64 MiB physical VMEM


def _round_up(x, m):
    return (x + m - 1) // m * m


# ------------------------------ Pallas kernels ------------------------------

def _conv_gemm_kernel(w_ref, x_ref, b_ref, o_ref, acc_ref):
    """acc[Cout, TS] += W[Cout, TK] @ X[TK, TS]; bias added on the last K step."""
    k = pl.program_id(2)

    @pl.when(k == 0)
    def _():
        acc_ref[...] = jnp.zeros_like(acc_ref)

    acc_ref[...] += jnp.dot(w_ref[...], x_ref[...],
                            preferred_element_type=jnp.float32)

    @pl.when(k == pl.num_programs(2) - 1)
    def _():
        o_ref[...] = (acc_ref[...] + b_ref[...]).astype(o_ref.dtype)


def _conv_gemm_instnorm_lrelu_kernel(w_ref, x_ref, b_ref, o_ref, acc_ref, *,
                                     s_valid):
    """Same GEMM, but the epilogue applies InstanceNorm3d (affine=False,
    eps=1e-5, biased variance) + LeakyReLU(0.01). The full per-sample spatial
    extent lives in this single output tile (TS == S_pad); columns >= s_valid
    are zero padding and are masked out of the statistics."""
    k = pl.program_id(2)

    @pl.when(k == 0)
    def _():
        acc_ref[...] = jnp.zeros_like(acc_ref)

    acc_ref[...] += jnp.dot(w_ref[...], x_ref[...],
                            preferred_element_type=jnp.float32)

    @pl.when(k == pl.num_programs(2) - 1)
    def _():
        acc = acc_ref[...] + b_ref[...]                          # (Cout, TS) f32
        col = jax.lax.broadcasted_iota(jnp.int32, acc.shape, 1)
        valid = col < s_valid
        inv_n = 1.0 / float(s_valid)
        mean = jnp.sum(jnp.where(valid, acc, 0.0), axis=-1, keepdims=True) * inv_n
        cent = acc - mean
        var = jnp.sum(jnp.where(valid, cent * cent, 0.0), axis=-1,
                      keepdims=True) * inv_n
        y = cent * jax.lax.rsqrt(var + 1e-5)
        o_ref[...] = jnp.where(y >= 0, y, 0.01 * y).astype(o_ref.dtype)


def _instnorm_lrelu_kernel(x_ref, o_ref):
    # x: (TR, S); rows are (n, c) pairs; statistics in f32 (biased variance).
    x = x_ref[...].astype(jnp.float32)
    mean = jnp.mean(x, axis=-1, keepdims=True)
    cent = x - mean
    var = jnp.mean(cent * cent, axis=-1, keepdims=True)
    y = cent * jax.lax.rsqrt(var + 1e-5)
    o_ref[...] = jnp.where(y >= 0, y, 0.01 * y).astype(o_ref.dtype)


# --------------------------------- wrappers ---------------------------------

def pallas_instnorm_lrelu(x):
    """Standalone row-tiled InstanceNorm3d(affine=False) + LeakyReLU(0.01).

    Used when the spatial extent is too large to fuse into the conv GEMM
    epilogue. Rows (= N*C pairs) are tiled and marked 'parallel' so v7x's two
    TensorCores both get work.
    TODO(synk): for extremely large D*H*W (row block > VMEM) switch to a
    two-pass S-tiled variant (sum/sumsq accumulation over an 'arbitrary' axis).
    """
    N, C, D, H, W = x.shape
    R, S = N * C, D * H * W
    TR = 8
    R_pad = _round_up(R, TR)
    x2 = x.reshape(R, S)
    if R_pad != R:
        x2 = jnp.pad(x2, ((0, R_pad - R), (0, 0)))
    y = pl.pallas_call(
        _instnorm_lrelu_kernel,
        out_shape=jax.ShapeDtypeStruct((R_pad, S), jnp.float32),
        grid_spec=pltpu.PrefetchScalarGridSpec(
            num_scalar_prefetch=0,
            grid=(R_pad // TR,),
            in_specs=[pl.BlockSpec((TR, S), lambda i: (i, 0))],
            out_specs=pl.BlockSpec((TR, S), lambda i: (i, 0)),
        ),
        compiler_params=pltpu.CompilerParams(
            dimension_semantics=("parallel",),
            vmem_limit_bytes=VMEM_LIMIT),
    )(x2)
    return y[:R].reshape(N, C, D, H, W)


def conv3d(inputs, w, bias=None, stride=1, padding=(1, 1, 1),
           instnorm_lrelu=False):
    """Conv3d (PyTorch weight layout (Cout, Cin, kd, kh, kw)) as a Pallas GEMM.

    `inputs` may be a tuple of NCDHW tensors: their channels become
    K-partitions of the contraction, implementing skip-connection concat
    without materializing the concatenated activation.
    If `instnorm_lrelu`, InstanceNorm3d + LeakyReLU(0.01) are applied — fused
    into the GEMM epilogue when the spatial extent fits one output tile,
    otherwise via the standalone row-tiled norm kernel.
    """
    if not isinstance(inputs, (tuple, list)):
        inputs = (inputs,)
    N, _, D, H, W = inputs[0].shape
    Cout, Cin_total, kd, kh, kw = w.shape
    pd, ph, pw = padding
    Do = (D + 2 * pd - kd) // stride + 1
    Ho = (H + 2 * ph - kh) // stride + 1
    Wo = (W + 2 * pw - kw) // stride + 1
    S = Do * Ho * Wo
    taps = kd * kh * kw

    # im2col built directly in transposed (N, K, S) layout, bf16. K ordering is
    # channel-major / tap-minor, matching w.reshape(Cout, Cin*kd*kh*kw).
    parts = []
    for xin in inputs:
        xp = jnp.pad(xin.astype(jnp.bfloat16),
                     ((0, 0), (0, 0), (pd, pd), (ph, ph), (pw, pw)))
        cols = []
        for dz in range(kd):
            for dy in range(kh):
                for dx in range(kw):
                    cols.append(xp[:, :,
                                   dz:dz + stride * Do:stride,
                                   dy:dy + stride * Ho:stride,
                                   dx:dx + stride * Wo:stride])
        p = jnp.stack(cols, axis=2)                 # (N, Cin_i, taps, Do, Ho, Wo)
        parts.append(p.reshape(N, xin.shape[1] * taps, S))
    rhs = parts[0] if len(parts) == 1 else jnp.concatenate(parts, axis=1)
    K = Cin_total * taps
    lhs = w.astype(jnp.bfloat16).reshape(Cout, K)

    # ---- tiling ----
    S_pad = _round_up(S, LANE)
    fuse = instnorm_lrelu and (S_pad <= FUSE_NORM_MAX_S)
    if fuse:
        TS = S_pad                                  # whole sample spatial in one tile
    else:
        TS = next(t for t in (512, 256, 128) if S_pad % t == 0)
    if K <= MAX_TK:
        TK, K_pad = K, K                            # single reduction step
    else:
        TK = MAX_TK
        K_pad = _round_up(K, TK)

    if S_pad != S or K_pad != K:
        rhs = jnp.pad(rhs, ((0, 0), (0, K_pad - K), (0, S_pad - S)))
    if K_pad != K:
        lhs = jnp.pad(lhs, ((0, 0), (0, K_pad - K)))
    b2 = (bias if bias is not None
          else jnp.zeros((Cout,), jnp.float32)).astype(jnp.float32).reshape(Cout, 1)

    kernel = (functools.partial(_conv_gemm_instnorm_lrelu_kernel, s_valid=S)
              if fuse else _conv_gemm_kernel)

    out = pl.pallas_call(
        kernel,
        out_shape=jax.ShapeDtypeStruct((N, Cout, S_pad), jnp.float32),
        grid_spec=pltpu.PrefetchScalarGridSpec(
            num_scalar_prefetch=0,
            grid=(N, S_pad // TS, K_pad // TK),
            in_specs=[
                pl.BlockSpec((Cout, TK), lambda n, m, k: (0, k)),
                pl.BlockSpec((None, TK, TS), lambda n, m, k: (n, k, m)),
                pl.BlockSpec((Cout, 1), lambda n, m, k: (0, 0)),
            ],
            out_specs=pl.BlockSpec((None, Cout, TS), lambda n, m, k: (n, 0, m)),
            scratch_shapes=[pltpu.VMEM((Cout, TS), jnp.float32)],
        ),
        compiler_params=pltpu.CompilerParams(
            dimension_semantics=("parallel", "parallel", "arbitrary"),
            vmem_limit_bytes=VMEM_LIMIT),
    )(lhs, rhs, b2)

    y = out[:, :, :S].reshape(N, Cout, Do, Ho, Wo)
    if instnorm_lrelu and not fuse:
        y = pallas_instnorm_lrelu(y)
    return y


def upsample2x_trilinear(x):
    # nn.Upsample(scale_factor=2, mode='trilinear', align_corners=False)
    # equivalent (half-pixel linear resize). Glue op handled by XLA, not Pallas.
    N, C, D, H, W = x.shape
    return jax.image.resize(x, (N, C, 2 * D, 2 * H, 2 * W), method='trilinear')


# ------------------------------ UNet3D blocks -------------------------------

def conv_norm_lrelu(x, pp):
    x = conv3d(x, pp['w1'], None, 1, (0, 1, 1))                        # (1,3,3)
    x = conv3d(x, pp['w2'], None, 1, (1, 0, 0), instnorm_lrelu=True)   # (3,1,1)+IN+LReLU
    x = conv3d(x, pp['w3'], None, 1, (0, 1, 1))
    x = conv3d(x, pp['w4'], None, 1, (1, 0, 0), instnorm_lrelu=True)
    return x


def conv_norm_lrelu_concat(x_up, x_skip, pp):
    # Skip connection handled as K-partitions of the first GEMM (no concat copy).
    x = conv3d((x_up, x_skip), pp['w1'], None, 1, (0, 1, 1))
    x = conv3d(x, pp['w2'], None, 1, (1, 0, 0), instnorm_lrelu=True)
    x = conv3d(x, pp['w3'], None, 1, (0, 1, 1))
    x = conv3d(x, pp['w4'], None, 1, (1, 0, 0), instnorm_lrelu=True)
    return x


def maxpool_cov_lrelu(x, w):                  # despite its name: a stride-2 conv
    return conv3d(x, w, None, 2, (1, 1, 1), instnorm_lrelu=True)


def upscale_conv_norm_lrelu(x, w):
    return conv3d(upsample2x_trilinear(x), w, None, 1, (1, 1, 1),
                  instnorm_lrelu=True)


def unet3d_forward(params, x):
    x = conv3d(x, params['conv_w'], params['conv_b'], 1, (1, 1, 1),
               instnorm_lrelu=True)
    x_cov1 = conv_norm_lrelu(x, params['conv1'])
    x_cov2 = maxpool_cov_lrelu(x_cov1, params['max_cov2_w'])
    x_cov2 = conv_norm_lrelu(x_cov2, params['cov2'])
    x_cov3 = maxpool_cov_lrelu(x_cov2, params['max_cov3_w'])
    x_cov3 = conv_norm_lrelu(x_cov3, params['cov3'])
    x = upscale_conv_norm_lrelu(x_cov3, params['up_cov2_w'])
    x = conv_norm_lrelu_concat(x, x_cov2, params['de_cov2'])
    x = upscale_conv_norm_lrelu(x, params['up_cov1_w'])
    x = conv_norm_lrelu_concat(x, x_cov1, params['de_cov1'])
    out = conv3d(x, params['pred_w'], params['pred_b'], 1, (1, 1, 1))
    return out


# ------------------------ Deterministic parameter init ----------------------

def init_params(key, in_ch, n_classes, bf):
    keys = iter(jax.random.split(key, 64))

    def conv_w(cout, cin, kd, kh, kw, scale=0.1):
        return scale * jax.random.normal(next(keys), (cout, cin, kd, kh, kw),
                                         jnp.float32)

    def cnl(fi, fo):
        return dict(w1=conv_w(fo, fi, 1, 3, 3),
                    w2=conv_w(fo, fo, 3, 1, 1),
                    w3=conv_w(fo, fo, 1, 3, 3),
                    w4=conv_w(fo, fo, 3, 1, 1))

    p = {}
    p['conv_w'] = conv_w(bf, in_ch, 3, 3, 3)
    p['conv_b'] = 0.01 * jax.random.normal(next(keys), (bf,), jnp.float32)
    p['conv1'] = cnl(bf, bf)
    p['max_cov2_w'] = conv_w(2 * bf, bf, 3, 3, 3)
    p['cov2'] = cnl(2 * bf, 2 * bf)
    p['max_cov3_w'] = conv_w(4 * bf, 2 * bf, 3, 3, 3)
    p['cov3'] = cnl(4 * bf, 4 * bf)
    p['up_cov2_w'] = conv_w(2 * bf, 4 * bf, 3, 3, 3)
    p['de_cov2'] = cnl(4 * bf, 2 * bf)
    p['up_cov1_w'] = conv_w(bf, 2 * bf, 3, 3, 3)
    p['de_cov1'] = cnl(2 * bf, bf)
    p['pred_w'] = conv_w(n_classes, bf, 3, 3, 3)
    p['pred_b'] = 0.01 * jax.random.normal(next(keys), (n_classes,), jnp.float32)
    return p


if __name__ == "__main__":
    key = jax.random.PRNGKey(0)
    kp, kx, kn = jax.random.split(key, 3)

    in_channels, n_classes, base_n_filter = 1, 2, 8
    params = init_params(kp, in_channels, n_classes, base_n_filter)

    # Small input: batch=2, 1 channel, 8x8x8 volume (NCDHW, like PyTorch).
    x = jax.random.normal(kx, (2, in_channels, 8, 8, 8), jnp.float32)

    out = jax.block_until_ready(jax.jit(unet3d_forward)(params, x))
    assert out.shape == (2, n_classes, 8, 8, 8), out.shape
    assert jnp.isfinite(out).all()

    # Also exercise the standalone row-tiled norm kernel (the path used when the
    # spatial extent is too large to fuse into the GEMM epilogue).
    xn = jax.random.normal(kn, (2, 5, 4, 4, 8), jnp.float32)
    yn = jax.block_until_ready(jax.jit(pallas_instnorm_lrelu)(xn))
    assert yn.shape == xn.shape and jnp.isfinite(yn).all()

    print("KERNEL_OK")
</pallas_src>

<mosaic_0001>
module attributes {stable_mosaic.version = 11 : i64} {
  func.func @_conv_gemm_instnorm_lrelu_kernel(%arg0: i32, %arg1: i32, %arg2: i32, %arg3: memref<8x27xbf16, #tpu.memory_space<vmem>>, %arg4: memref<1x27x512xbf16, #tpu.memory_space<vmem>>, %arg5: memref<8x1xf32, #tpu.memory_space<vmem>>, %arg6: memref<1x8x512xf32, #tpu.memory_space<vmem>>, %arg7: memref<8x512xf32, #tpu.memory_space<vmem>>) attributes {dimension_semantics = [#tpu.dimension_semantics<parallel>, #tpu.dimension_semantics<parallel>, #tpu.dimension_semantics<arbitrary>], iteration_bounds = array<i64: 2, 1, 1>, scalar_prefetch = 0 : i64, scratch_operands = 1 : i64, tpu.core_type = #tpu.core_type<tc>, window_params = [{transform_indices = @transform_0, window_bounds = array<i64: 8, 27>}, {transform_indices = @transform_1, window_bounds = array<i64: 1, 27, 512>}, {pipeline_mode = #tpu.pipeline_mode<synchronous>, transform_indices = @transform_2, window_bounds = array<i64: 8, 1>}, {transform_indices = @transform_3, window_bounds = array<i64: 1, 8, 512>}]} {
    %c0_i32 = arith.constant 0 : i32
    %0 = arith.cmpi eq, %arg2, %c0_i32 : i32
    %1 = arith.extui %0 : i1 to i32
    %c0_i32_0 = arith.constant 0 : i32
    %2 = arith.cmpi ne, %1, %c0_i32_0 : i32
    scf.if %2 {
      %cst_11 = arith.constant 0.000000e+00 : f32
      %13 = vector.broadcast %cst_11 : f32 to vector<8x512xf32>
      %c0_12 = arith.constant 0 : index
      %c0_13 = arith.constant 0 : index
      %14 = vector.load %arg7[%c0_12, %c0_13] : memref<8x512xf32, #tpu.memory_space<vmem>>, vector<8x512xf32>
      tpu.vector_store %arg7[%c0_12, %c0_13], %13 {strides = array<i32>} : memref<8x512xf32, #tpu.memory_space<vmem>>, vector<8x512xf32>,
    } else {
    }
    %c0 = arith.constant 0 : index
    %c0_1 = arith.constant 0 : index
    %3 = vector.load %arg7[%c0, %c0_1] : memref<8x512xf32, #tpu.memory_space<vmem>>, vector<8x512xf32>
    %c0_2 = arith.constant 0 : index
    %c0_3 = arith.constant 0 : index
    %4 = vector.load %arg3[%c0_2, %c0_3] : memref<8x27xbf16, #tpu.memory_space<vmem>>, vector<8x27xbf16>
    %c0_4 = arith.constant 0 : index
    %c0_5 = arith.constant 0 : index
    %c0_6 = arith.constant 0 : index
    %5 = vector.load %arg4[%c0_4, %c0_5, %c0_6] : memref<1x27x512xbf16, #tpu.memory_space<vmem>>, vector<1x27x512xbf16>
    %6 = vector.shape_cast %5 : vector<1x27x512xbf16> to vector<27x512xbf16>
    %cst = arith.constant dense<0.000000e+00> : vector<8x512xf32>
    %7 = tpu.matmul %4, %6, %cst {dimension_numbers = #tpu.dot_dimension_numbers<[1], [0], [0], [1], [0, 0, 1, 1], [], []>} : vector<8x27xbf16>, vector<27x512xbf16>, vector<8x512xf32> -> vector<8x512xf32>
    %8 = arith.addf %3, %7 : vector<8x512xf32>
    %c0_7 = arith.constant 0 : index
    %c0_8 = arith.constant 0 : index
    %9 = vector.load %arg7[%c0_7, %c0_8] : memref<8x512xf32, #tpu.memory_space<vmem>>, vector<8x512xf32>
    tpu.vector_store %arg7[%c0_7, %c0_8], %8 {strides = array<i32>} : memref<8x512xf32, #tpu.memory_space<vmem>>, vector<8x512xf32>,
    %c0_i32_9 = arith.constant 0 : i32
    %10 = arith.cmpi eq, %arg2, %c0_i32_9 : i32
    %11 = arith.extui %10 : i1 to i32
    %c0_i32_10 = arith.constant 0 : i32
    %12 = arith.cmpi ne, %11, %c0_i32_10 : i32
    scf.if %12 {
      %c0_11 = arith.constant 0 : index
      %c0_12 = arith.constant 0 : index
      %13 = vector.load %arg7[%c0_11, %c0_12] : memref<8x512xf32, #tpu.memory_space<vmem>>, vector<8x512xf32>
      %c0_13 = arith.constant 0 : index
      %c0_14 = arith.constant 0 : index
      %14 = vector.load %arg5[%c0_13, %c0_14] : memref<8x1xf32, #tpu.memory_space<vmem>>, vector<8x1xf32>
      %15 = vector.broadcast %14 : vector<8x1xf32> to vector<8x512xf32>
      %16 = arith.addf %13, %15 : vector<8x512xf32>
      %17 = tpu.iota {dimensions = array<i32: 1>} : vector<8x512xi32>
      %c512_i32 = arith.constant 512 : i32
      %18 = vector.broadcast %c512_i32 : i32 to vector<8x512xi32>
      %19 = arith.cmpi slt, %17, %18 : vector<8x512xi32>
      %cst_15 = arith.constant 0.000000e+00 : f32
      %20 = vector.broadcast %cst_15 : f32 to vector<8x512xf32>
      %21 = arith.select %19, %16, %20 : vector<8x512xi1>, vector<8x512xf32>
      %cst_16 = arith.constant dense<0.000000e+00> : vector<8xf32>
      %22 = vector.multi_reduction <add>, %21, %cst_16 [1] : vector<8x512xf32> to vector<8xf32>
      %23 = vector.shape_cast %22 : vector<8xf32> to vector<8x1xf32>
      %cst_17 = arith.constant 0.001953125 : f32
      %24 = vector.broadcast %cst_17 : f32 to vector<8x1xf32>
      %25 = arith.mulf %23, %24 : vector<8x1xf32>
      %26 = vector.broadcast %25 : vector<8x1xf32> to vector<8x512xf32>
      %27 = arith.subf %16, %26 : vector<8x512xf32>
      %28 = arith.mulf %27, %27 : vector<8x512xf32>
      %cst_18 = arith.constant 0.000000e+00 : f32
      %29 = vector.broadcast %cst_18 : f32 to vector<8x512xf32>
      %30 = arith.select %19, %28, %29 : vector<8x512xi1>, vector<8x512xf32>
      %cst_19 = arith.constant dense<0.000000e+00> : vector<8xf32>
      %31 = vector.multi_reduction <add>, %30, %cst_19 [1] : vector<8x512xf32> to vector<8xf32>
      %32 = vector.shape_cast %31 : vector<8xf32> to vector<8x1xf32>
      %cst_20 = arith.constant 0.001953125 : f32
      %33 = vector.broadcast %cst_20 : f32 to vector<8x1xf32>
      %34 = arith.mulf %32, %33 : vector<8x1xf32>
      %cst_21 = arith.constant 9.99999974E-6 : f32
      %35 = vector.broadcast %cst_21 : f32 to vector<8x1xf32>
      %36 = arith.addf %34, %35 : vector<8x1xf32>
      %37 = math.rsqrt %36 : vector<8x1xf32>
      %38 = vector.broadcast %37 : vector<8x1xf32> to vector<8x512xf32>
      %39 = arith.mulf %27, %38 : vector<8x512xf32>
      %cst_22 = arith.constant 0.000000e+00 : f32
      %40 = vector.broadcast %cst_22 : f32 to vector<8x512xf32>
      %41 = arith.cmpf oge, %39, %40 : vector<8x512xf32>
      %cst_23 = arith.constant 0.00999999977 : f32
      %42 = vector.broadcast %cst_23 : f32 to vector<8x512xf32>
      %43 = arith.mulf %42, %39 : vector<8x512xf32>
      %44 = arith.select %41, %39, %43 : vector<8x512xi1>, vector<8x512xf32>
      %c0_24 = arith.constant 0 : index
      %c0_25 = arith.constant 0 : index
      %c0_26 = arith.constant 0 : index
      %45 = vector.load %arg6[%c0_24, %c0_25, %c0_26] : memref<1x8x512xf32, #tpu.memory_space<vmem>>, vector<1x8x512xf32>
      %46 = vector.shape_cast %45 : vector<1x8x512xf32> to vector<8x512xf32>
      %47 = vector.shape_cast %44 : vector<8x512xf32> to vector<1x8x512xf32>
      tpu.vector_store %arg6[%c0_24, %c0_25, %c0_26], %47 {strides = array<i32>} : memref<1x8x512xf32, #tpu.memory_space<vmem>>, vector<1x8x512xf32>,
    } else {
    }
    return
  }
  func.func @transform_0(%arg0: i32, %arg1: i32, %arg2: i32) -> (i32, i32) {
    %c0_i32 = arith.constant 0 : i32
    %c0_i32_0 = arith.constant 0 : i32
    return %c0_i32, %arg2 : i32, i32
  }
  func.func @transform_1(%arg0: i32, %arg1: i32, %arg2: i32) -> (i32, i32, i32) {
    %c0_i32 = arith.constant 0 : i32
    return %arg0, %arg2, %arg1 : i32, i32, i32
  }
  func.func @transform_2(%arg0: i32, %arg1: i32, %arg2: i32) -> (i32, i32) {
    %c0_i32 = arith.constant 0 : i32
    %c0_i32_0 = arith.constant 0 : i32
    %c0_i32_1 = arith.constant 0 : i32
    return %c0_i32, %c0_i32_0 : i32, i32
  }
  func.func @transform_3(%arg0: i32, %arg1: i32, %arg2: i32) -> (i32, i32, i32) {
    %c0_i32 = arith.constant 0 : i32
    %c0_i32_0 = arith.constant 0 : i32
    return %arg0, %c0_i32, %arg1 : i32, i32, i32
  }
}

module attributes {stable_mosaic.version = 11 : i64} {
  func.func @_conv_gemm_kernel(%arg0: i32, %arg1: i32, %arg2: i32, %arg3: memref<8x72xbf16, #tpu.memory_space<vmem>>, %arg4: memref<1x72x512xbf16, #tpu.memory_space<vmem>>, %arg5: memref<8x1xf32, #tpu.memory_space<vmem>>, %arg6: memref<1x8x512xf32, #tpu.memory_space<vmem>>, %arg7: memref<8x512xf32, #tpu.memory_space<vmem>>) attributes {dimension_semantics = [#tpu.dimension_semantics<parallel>, #tpu.dimension_semantics<parallel>, #tpu.dimension_semantics<arbitrary>], iteration_bounds = array<i64: 2, 1, 1>, scalar_prefetch = 0 : i64, scratch_operands = 1 : i64, tpu.core_type = #tpu.core_type<tc>, window_params = [{transform_indices = @transform_0, window_bounds = array<i64: 8, 72>}, {transform_indices = @transform_1, window_bounds = array<i64: 1, 72, 512>}, {pipeline_mode = #tpu.pipeline_mode<synchronous>, transform_indices = @transform_2, window_bounds = array<i64: 8, 1>}, {transform_indices = @transform_3, window_bounds = array<i64: 1, 8, 512>}]} {
    %c0_i32 = arith.constant 0 : i32
    %0 = arith.cmpi eq, %arg2, %c0_i32 : i32
    %1 = arith.extui %0 : i1 to i32
    %c0_i32_0 = arith.constant 0 : i32
    %2 = arith.cmpi ne, %1, %c0_i32_0 : i32
    scf.if %2 {
      %cst_11 = arith.constant 0.000000e+00 : f32
      %13 = vector.broadcast %cst_11 : f32 to vector<8x512xf32>
      %c0_12 = arith.constant 0 : index
      %c0_13 = arith.constant 0 : index
      %14 = vector.load %arg7[%c0_12, %c0_13] : memref<8x512xf32, #tpu.memory_space<vmem>>, vector<8x512xf32>
      tpu.vector_store %arg7[%c0_12, %c0_13], %13 {strides = array<i32>} : memref<8x512xf32, #tpu.memory_space<vmem>>, vector<8x512xf32>,
    } else {
    }
    %c0 = arith.constant 0 : index
    %c0_1 = arith.constant 0 : index
    %3 = vector.load %arg7[%c0, %c0_1] : memref<8x512xf32, #tpu.memory_space<vmem>>, vector<8x512xf32>
    %c0_2 = arith.constant 0 : index
    %c0_3 = arith.constant 0 : index
    %4 = vector.load %arg3[%c0_2, %c0_3] : memref<8x72xbf16, #tpu.memory_space<vmem>>, vector<8x72xbf16>
    %c0_4 = arith.constant 0 : index
    %c0_5 = arith.constant 0 : index
    %c0_6 = arith.constant 0 : index
    %5 = vector.load %arg4[%c0_4, %c0_5, %c0_6] : memref<1x72x512xbf16, #tpu.memory_space<vmem>>, vector<1x72x512xbf16>
    %6 = vector.shape_cast %5 : vector<1x72x512xbf16> to vector<72x512xbf16>
    %cst = arith.constant dense<0.000000e+00> : vector<8x512xf32>
    %7 = tpu.matmul %4, %6, %cst {dimension_numbers = #tpu.dot_dimension_numbers<[1], [0], [0], [1], [0, 0, 1, 1], [], []>} : vector<8x72xbf16>, vector<72x512xbf16>, vector<8x512xf32> -> vector<8x512xf32>
    %8 = arith.addf %3, %7 : vector<8x512xf32>
    %c0_7 = arith.constant 0 : index
    %c0_8 = arith.constant 0 : index
    %9 = vector.load %arg7[%c0_7, %c0_8] : memref<8x512xf32, #tpu.memory_space<vmem>>, vector<8x512xf32>
    tpu.vector_store %arg7[%c0_7, %c0_8], %8 {strides = array<i32>} : memref<8x512xf32, #tpu.memory_space<vmem>>, vector<8x512xf32>,
    %c0_i32_9 = arith.constant 0 : i32
    %10 = arith.cmpi eq, %arg2, %c0_i32_9 : i32
    %11 = arith.extui %10 : i1 to i32
    %c0_i32_10 = arith.constant 0 : i32
    %12 = arith.cmpi ne, %11, %c0_i32_10 : i32
    scf.if %12 {
      %c0_11 = arith.constant 0 : index
      %c0_12 = arith.constant 0 : index
      %13 = vector.load %arg7[%c0_11, %c0_12] : memref<8x512xf32, #tpu.memory_space<vmem>>, vector<8x512xf32>
      %c0_13 = arith.constant 0 : index
      %c0_14 = arith.constant 0 : index
      %14 = vector.load %arg5[%c0_13, %c0_14] : memref<8x1xf32, #tpu.memory_space<vmem>>, vector<8x1xf32>
      %15 = vector.broadcast %14 : vector<8x1xf32> to vector<8x512xf32>
      %16 = arith.addf %13, %15 : vector<8x512xf32>
      %c0_15 = arith.constant 0 : index
      %c0_16 = arith.constant 0 : index
      %c0_17 = arith.constant 0 : index
      %17 = vector.load %arg6[%c0_15, %c0_16, %c0_17] : memref<1x8x512xf32, #tpu.memory_space<vmem>>, vector<1x8x512xf32>
      %18 = vector.shape_cast %17 : vector<1x8x512xf32> to vector<8x512xf32>
      %19 = vector.shape_cast %16 : vector<8x512xf32> to vector<1x8x512xf32>
      tpu.vector_store %arg6[%c0_15, %c0_16, %c0_17], %19 {strides = array<i32>} : memref<1x8x512xf32, #tpu.memory_space<vmem>>, vector<1x8x512xf32>,
    } else {
    }
    return
  }
  func.func @transform_0(%arg0: i32, %arg1: i32, %arg2: i32) -> (i32, i32) {
    %c0_i32 = arith.constant 0 : i32
    %c0_i32_0 = arith.constant 0 : i32
    return %c0_i32, %arg2 : i32, i32
  }
  func.func @transform_1(%arg0: i32, %arg1: i32, %arg2: i32) -> (i32, i32, i32) {
    %c0_i32 = arith.constant 0 : i32
    return %arg0, %arg2, %arg1 : i32, i32, i32
  }
  func.func @transform_2(%arg0: i32, %arg1: i32, %arg2: i32) -> (i32, i32) {
    %c0_i32 = arith.constant 0 : i32
    %c0_i32_0 = arith.constant 0 : i32
    %c0_i32_1 = arith.constant 0 : i32
    return %c0_i32, %c0_i32_0 : i32, i32
  }
  func.func @transform_3(%arg0: i32, %arg1: i32, %arg2: i32) -> (i32, i32, i32) {
    %c0_i32 = arith.constant 0 : i32
    %c0_i32_0 = arith.constant 0 : i32
    return %arg0, %c0_i32, %arg1 : i32, i32, i32
  }
}

module attributes {stable_mosaic.version = 11 : i64} {
  func.func @_conv_gemm_instnorm_lrelu_kernel(%arg0: i32, %arg1: i32, %arg2: i32, %arg3: memref<8x24xbf16, #tpu.memory_space<vmem>>, %arg4: memref<1x24x512xbf16, #tpu.memory_space<vmem>>, %arg5: memref<8x1xf32, #tpu.memory_space<vmem>>, %arg6: memref<1x8x512xf32, #tpu.memory_space<vmem>>, %arg7: memref<8x512xf32, #tpu.memory_space<vmem>>) attributes {dimension_semantics = [#tpu.dimension_semantics<parallel>, #tpu.dimension_semantics<parallel>, #tpu.dimension_semantics<arbitrary>], iteration_bounds = array<i64: 2, 1, 1>, scalar_prefetch = 0 : i64, scratch_operands = 1 : i64, tpu.core_type = #tpu.core_type<tc>, window_params = [{transform_indices = @transform_0, window_bounds = array<i64: 8, 24>}, {transform_indices = @transform_1, window_bounds = array<i64: 1, 24, 512>}, {pipeline_mode = #tpu.pipeline_mode<synchronous>, transform_indices = @transform_2, window_bounds = array<i64: 8, 1>}, {transform_indices = @transform_3, window_bounds = array<i64: 1, 8, 512>}]} {
    %c0_i32 = arith.constant 0 : i32
    %0 = arith.cmpi eq, %arg2, %c0_i32 : i32
    %1 = arith.extui %0 : i1 to i32
    %c0_i32_0 = arith.constant 0 : i32
    %2 = arith.cmpi ne, %1, %c0_i32_0 : i32
    scf.if %2 {
      %cst_11 = arith.constant 0.000000e+00 : f32
      %13 = vector.broadcast %cst_11 : f32 to vector<8x512xf32>
      %c0_12 = arith.constant 0 : index
      %c0_13 = arith.constant 0 : index
      %14 = vector.load %arg7[%c0_12, %c0_13] : memref<8x512xf32, #tpu.memory_space<vmem>>, vector<8x512xf32>
      tpu.vector_store %arg7[%c0_12, %c0_13], %13 {strides = array<i32>} : memref<8x512xf32, #tpu.memory_space<vmem>>, vector<8x512xf32>,
    } else {
    }
    %c0 = arith.constant 0 : index
    %c0_1 = arith.constant 0 : index
    %3 = vector.load %arg7[%c0, %c0_1] : memref<8x512xf32, #tpu.memory_space<vmem>>, vector<8x512xf32>
    %c0_2 = arith.constant 0 : index
    %c0_3 = arith.constant 0 : index
    %4 = vector.load %arg3[%c0_2, %c0_3] : memref<8x24xbf16, #tpu.memory_space<vmem>>, vector<8x24xbf16>
    %c0_4 = arith.constant 0 : index
    %c0_5 = arith.constant 0 : index
    %c0_6 = arith.constant 0 : index
    %5 = vector.load %arg4[%c0_4, %c0_5, %c0_6] : memref<1x24x512xbf16, #tpu.memory_space<vmem>>, vector<1x24x512xbf16>
    %6 = vector.shape_cast %5 : vector<1x24x512xbf16> to vector<24x512xbf16>
    %cst = arith.constant dense<0.000000e+00> : vector<8x512xf32>
    %7 = tpu.matmul %4, %6, %cst {dimension_numbers = #tpu.dot_dimension_numbers<[1], [0], [0], [1], [0, 0, 1, 1], [], []>} : vector<8x24xbf16>, vector<24x512xbf16>, vector<8x512xf32> -> vector<8x512xf32>
    %8 = arith.addf %3, %7 : vector<8x512xf32>
    %c0_7 = arith.constant 0 : index
    %c0_8 = arith.constant 0 : index
    %9 = vector.load %arg7[%c0_7, %c0_8] : memref<8x512xf32, #tpu.memory_space<vmem>>, vector<8x512xf32>
    tpu.vector_store %arg7[%c0_7, %c0_8], %8 {strides = array<i32>} : memref<8x512xf32, #tpu.memory_space<vmem>>, vector<8x512xf32>,
    %c0_i32_9 = arith.constant 0 : i32
    %10 = arith.cmpi eq, %arg2, %c0_i32_9 : i32
    %11 = arith.extui %10 : i1 to i32
    %c0_i32_10 = arith.constant 0 : i32
    %12 = arith.cmpi ne, %11, %c0_i32_10 : i32
    scf.if %12 {
      %c0_11 = arith.constant 0 : index
      %c0_12 = arith.constant 0 : index
      %13 = vector.load %arg7[%c0_11, %c0_12] : memref<8x512xf32, #tpu.memory_space<vmem>>, vector<8x512xf32>
      %c0_13 = arith.constant 0 : index
      %c0_14 = arith.constant 0 : index
      %14 = vector.load %arg5[%c0_13, %c0_14] : memref<8x1xf32, #tpu.memory_space<vmem>>, vector<8x1xf32>
      %15 = vector.broadcast %14 : vector<8x1xf32> to vector<8x512xf32>
      %16 = arith.addf %13, %15 : vector<8x512xf32>
      %17 = tpu.iota {dimensions = array<i32: 1>} : vector<8x512xi32>
      %c512_i32 = arith.constant 512 : i32
      %18 = vector.broadcast %c512_i32 : i32 to vector<8x512xi32>
      %19 = arith.cmpi slt, %17, %18 : vector<8x512xi32>
      %cst_15 = arith.constant 0.000000e+00 : f32
      %20 = vector.broadcast %cst_15 : f32 to vector<8x512xf32>
      %21 = arith.select %19, %16, %20 : vector<8x512xi1>, vector<8x512xf32>
      %cst_16 = arith.constant dense<0.000000e+00> : vector<8xf32>
      %22 = vector.multi_reduction <add>, %21, %cst_16 [1] : vector<8x512xf32> to vector<8xf32>
      %23 = vector.shape_cast %22 : vector<8xf32> to vector<8x1xf32>
      %cst_17 = arith.constant 0.001953125 : f32
      %24 = vector.broadcast %cst_17 : f32 to vector<8x1xf32>
      %25 = arith.mulf %23, %24 : vector<8x1xf32>
      %26 = vector.broadcast %25 : vector<8x1xf32> to vector<8x512xf32>
      %27 = arith.subf %16, %26 : vector<8x512xf32>
      %28 = arith.mulf %27, %27 : vector<8x512xf32>
      %cst_18 = arith.constant 0.000000e+00 : f32
      %29 = vector.broadcast %cst_18 : f32 to vector<8x512xf32>
      %30 = arith.select %19, %28, %29 : vector<8x512xi1>, vector<8x512xf32>
      %cst_19 = arith.constant dense<0.000000e+00> : vector<8xf32>
      %31 = vector.multi_reduction <add>, %30, %cst_19 [1] : vector<8x512xf32> to vector<8xf32>
      %32 = vector.shape_cast %31 : vector<8xf32> to vector<8x1xf32>
      %cst_20 = arith.constant 0.001953125 : f32
      %33 = vector.broadcast %cst_20 : f32 to vector<8x1xf32>
      %34 = arith.mulf %32, %33 : vector<8x1xf32>
      %cst_21 = arith.constant 9.99999974E-6 : f32
      %35 = vector.broadcast %cst_21 : f32 to vector<8x1xf32>
      %36 = arith.addf %34, %35 : vector<8x1xf32>
      %37 = math.rsqrt %36 : vector<8x1xf32>
      %38 = vector.broadcast %37 : vector<8x1xf32> to vector<8x512xf32>
      %39 = arith.mulf %27, %38 : vector<8x512xf32>
      %cst_22 = arith.constant 0.000000e+00 : f32
      %40 = vector.broadcast %cst_22 : f32 to vector<8x512xf32>
      %41 = arith.cmpf oge, %39, %40 : vector<8x512xf32>
      %cst_23 = arith.constant 0.00999999977 : f32
      %42 = vector.broadcast %cst_23 : f32 to vector<8x512xf32>
      %43 = arith.mulf %42, %39 : vector<8x512xf32>
      %44 = arith.select %41, %39, %43 : vector<8x512xi1>, vector<8x512xf32>
      %c0_24 = arith.constant 0 : index
      %c0_25 = arith.constant 0 : index
      %c0_26 = arith.constant 0 : index
      %45 = vector.load %arg6[%c0_24, %c0_25, %c0_26] : memref<1x8x512xf32, #tpu.memory_space<vmem>>, vector<1x8x512xf32>
      %46 = vector.shape_cast %45 : vector<1x8x512xf32> to vector<8x512xf32>
      %47 = vector.shape_cast %44 : vector<8x512xf32> to vector<1x8x512xf32>
      tpu.vector_store %arg6[%c0_24, %c0_25, %c0_26], %47 {strides = array<i32>} : memref<1x8x512xf32, #tpu.memory_space<vmem>>, vector<1x8x512xf32>,
    } else {
    }
    return
  }
  func.func @transform_0(%arg0: i32, %arg1: i32, %arg2: i32) -> (i32, i32) {
    %c0_i32 = arith.constant 0 : i32
    %c0_i32_0 = arith.constant 0 : i32
    return %c0_i32, %arg2 : i32, i32
  }
  func.func @transform_1(%arg0: i32, %arg1: i32, %arg2: i32) -> (i32, i32, i32) {
    %c0_i32 = arith.constant 0 : i32
    return %arg0, %arg2, %arg1 : i32, i32, i32
  }
  func.func @transform_2(%arg0: i32, %arg1: i32, %arg2: i32) -> (i32, i32) {
    %c0_i32 = arith.constant 0 : i32
    %c0_i32_0 = arith.constant 0 : i32
    %c0_i32_1 = arith.constant 0 : i32
    return %c0_i32, %c0_i32_0 : i32, i32
  }
  func.func @transform_3(%arg0: i32, %arg1: i32, %arg2: i32) -> (i32, i32, i32) {
    %c0_i32 = arith.constant 0 : i32
    %c0_i32_0 = arith.constant 0 : i32
    return %arg0, %c0_i32, %arg1 : i32, i32, i32
  }
}

module attributes {stable_mosaic.version = 11 : i64} {
  func.func @_conv_gemm_instnorm_lrelu_kernel(%arg0: i32, %arg1: i32, %arg2: i32, %arg3: memref<16x216xbf16, #tpu.memory_space<vmem>>, %arg4: memref<1x216x128xbf16, #tpu.memory_space<vmem>>, %arg5: memref<16x1xf32, #tpu.memory_space<vmem>>, %arg6: memref<1x16x128xf32, #tpu.memory_space<vmem>>, %arg7: memref<16x128xf32, #tpu.memory_space<vmem>>) attributes {dimension_semantics = [#tpu.dimension_semantics<parallel>, #tpu.dimension_semantics<parallel>, #tpu.dimension_semantics<arbitrary>], iteration_bounds = array<i64: 2, 1, 1>, scalar_prefetch = 0 : i64, scratch_operands = 1 : i64, tpu.core_type = #tpu.core_type<tc>, window_params = [{transform_indices = @transform_0, window_bounds = array<i64: 16, 216>}, {transform_indices = @transform_1, window_bounds = array<i64: 1, 216, 128>}, {pipeline_mode = #tpu.pipeline_mode<synchronous>, transform_indices = @transform_2, window_bounds = array<i64: 16, 1>}, {transform_indices = @transform_3, window_bounds = array<i64: 1, 16, 128>}]} {
    %c0_i32 = arith.constant 0 : i32
    %0 = arith.cmpi eq, %arg2, %c0_i32 : i32
    %1 = arith.extui %0 : i1 to i32
    %c0_i32_0 = arith.constant 0 : i32
    %2 = arith.cmpi ne, %1, %c0_i32_0 : i32
    scf.if %2 {
      %cst_11 = arith.constant 0.000000e+00 : f32
      %13 = vector.broadcast %cst_11 : f32 to vector<16x128xf32>
      %c0_12 = arith.constant 0 : index
      %c0_13 = arith.constant 0 : index
      %14 = vector.load %arg7[%c0_12, %c0_13] : memref<16x128xf32, #tpu.memory_space<vmem>>, vector<16x128xf32>
      tpu.vector_store %arg7[%c0_12, %c0_13], %13 {strides = array<i32>} : memref<16x128xf32, #tpu.memory_space<vmem>>, vector<16x128xf32>,
    } else {
    }
    %c0 = arith.constant 0 : index
    %c0_1 = arith.constant 0 : index
    %3 = vector.load %arg7[%c0, %c0_1] : memref<16x128xf32, #tpu.memory_space<vmem>>, vector<16x128xf32>
    %c0_2 = arith.constant 0 : index
    %c0_3 = arith.constant 0 : index
    %4 = vector.load %arg3[%c0_2, %c0_3] : memref<16x216xbf16, #tpu.memory_space<vmem>>, vector<16x216xbf16>
    %c0_4 = arith.constant 0 : index
    %c0_5 = arith.constant 0 : index
    %c0_6 = arith.constant 0 : index
    %5 = vector.load %arg4[%c0_4, %c0_5, %c0_6] : memref<1x216x128xbf16, #tpu.memory_space<vmem>>, vector<1x216x128xbf16>
    %6 = vector.shape_cast %5 : vector<1x216x128xbf16> to vector<216x128xbf16>
    %cst = arith.constant dense<0.000000e+00> : vector<16x128xf32>
    %7 = tpu.matmul %4, %6, %cst {dimension_numbers = #tpu.dot_dimension_numbers<[1], [0], [0], [1], [0, 0, 1, 1], [], []>} : vector<16x216xbf16>, vector<216x128xbf16>, vector<16x128xf32> -> vector<16x128xf32>
    %8 = arith.addf %3, %7 : vector<16x128xf32>
    %c0_7 = arith.constant 0 : index
    %c0_8 = arith.constant 0 : index
    %9 = vector.load %arg7[%c0_7, %c0_8] : memref<16x128xf32, #tpu.memory_space<vmem>>, vector<16x128xf32>
    tpu.vector_store %arg7[%c0_7, %c0_8], %8 {strides = array<i32>} : memref<16x128xf32, #tpu.memory_space<vmem>>, vector<16x128xf32>,
    %c0_i32_9 = arith.constant 0 : i32
    %10 = arith.cmpi eq, %arg2, %c0_i32_9 : i32
    %11 = arith.extui %10 : i1 to i32
    %c0_i32_10 = arith.constant 0 : i32
    %12 = arith.cmpi ne, %11, %c0_i32_10 : i32
    scf.if %12 {
      %c0_11 = arith.constant 0 : index
      %c0_12 = arith.constant 0 : index
      %13 = vector.load %arg7[%c0_11, %c0_12] : memref<16x128xf32, #tpu.memory_space<vmem>>, vector<16x128xf32>
      %c0_13 = arith.constant 0 : index
      %c0_14 = arith.constant 0 : index
      %14 = vector.load %arg5[%c0_13, %c0_14] : memref<16x1xf32, #tpu.memory_space<vmem>>, vector<16x1xf32>
      %15 = vector.broadcast %14 : vector<16x1xf32> to vector<16x128xf32>
      %16 = arith.addf %13, %15 : vector<16x128xf32>
      %17 = tpu.iota {dimensions = array<i32: 1>} : vector<16x128xi32>
      %c64_i32 = arith.constant 64 : i32
      %18 = vector.broadcast %c64_i32 : i32 to vector<16x128xi32>
      %19 = arith.cmpi slt, %17, %18 : vector<16x128xi32>
      %cst_15 = arith.constant 0.000000e+00 : f32
      %20 = vector.broadcast %cst_15 : f32 to vector<16x128xf32>
      %21 = arith.select %19, %16, %20 : vector<16x128xi1>, vector<16x128xf32>
      %cst_16 = arith.constant dense<0.000000e+00> : vector<16xf32>
      %22 = vector.multi_reduction <add>, %21, %cst_16 [1] : vector<16x128xf32> to vector<16xf32>
      %23 = vector.shape_cast %22 : vector<16xf32> to vector<16x1xf32>
      %cst_17 = arith.constant 1.562500e-02 : f32
      %24 = vector.broadcast %cst_17 : f32 to vector<16x1xf32>
      %25 = arith.mulf %23, %24 : vector<16x1xf32>
      %26 = vector.broadcast %25 : vector<16x1xf32> to vector<16x128xf32>
      %27 = arith.subf %16, %26 : vector<16x128xf32>
      %28 = arith.mulf %27, %27 : vector<16x128xf32>
      %cst_18 = arith.constant 0.000000e+00 : f32
      %29 = vector.broadcast %cst_18 : f32 to vector<16x128xf32>
      %30 = arith.select %19, %28, %29 : vector<16x128xi1>, vector<16x128xf32>
      %cst_19 = arith.constant dense<0.000000e+00> : vector<16xf32>
      %31 = vector.multi_reduction <add>, %30, %cst_19 [1] : vector<16x128xf32> to vector<16xf32>
      %32 = vector.shape_cast %31 : vector<16xf32> to vector<16x1xf32>
      %cst_20 = arith.constant 1.562500e-02 : f32
      %33 = vector.broadcast %cst_20 : f32 to vector<16x1xf32>
      %34 = arith.mulf %32, %33 : vector<16x1xf32>
      %cst_21 = arith.constant 9.99999974E-6 : f32
      %35 = vector.broadcast %cst_21 : f32 to vector<16x1xf32>
      %36 = arith.addf %34, %35 : vector<16x1xf32>
      %37 = math.rsqrt %36 : vector<16x1xf32>
      %38 = vector.broadcast %37 : vector<16x1xf32> to vector<16x128xf32>
      %39 = arith.mulf %27, %38 : vector<16x128xf32>
      %cst_22 = arith.constant 0.000000e+00 : f32
      %40 = vector.broadcast %cst_22 : f32 to vector<16x128xf32>
      %41 = arith.cmpf oge, %39, %40 : vector<16x128xf32>
      %cst_23 = arith.constant 0.00999999977 : f32
      %42 = vector.broadcast %cst_23 : f32 to vector<16x128xf32>
      %43 = arith.mulf %42, %39 : vector<16x128xf32>
      %44 = arith.select %41, %39, %43 : vector<16x128xi1>, vector<16x128xf32>
      %c0_24 = arith.constant 0 : index
      %c0_25 = arith.constant 0 : index
      %c0_26 = arith.constant 0 : index
      %45 = vector.load %arg6[%c0_24, %c0_25, %c0_26] : memref<1x16x128xf32, #tpu.memory_space<vmem>>, vector<1x16x128xf32>
      %46 = vector.shape_cast %45 : vector<1x16x128xf32> to vector<16x128xf32>
      %47 = vector.shape_cast %44 : vector<16x128xf32> to vector<1x16x128xf32>
      tpu.vector_store %arg6[%c0_24, %c0_25, %c0_26], %47 {strides = array<i32>} : memref<1x16x128xf32, #tpu.memory_space<vmem>>, vector<1x16x128xf32>,
    } else {
    }
    return
  }
  func.func @transform_0(%arg0: i32, %arg1: i32, %arg2: i32) -> (i32, i32) {
    %c0_i32 = arith.constant 0 : i32
    %c0_i32_0 = arith.constant 0 : i32
    return %c0_i32, %arg2 : i32, i32
  }
  func.func @transform_1(%arg0: i32, %arg1: i32, %arg2: i32) -> (i32, i32, i32) {
    %c0_i32 = arith.constant 0 : i32
    return %arg0, %arg2, %arg1 : i32, i32, i32
  }
  func.func @transform_2(%arg0: i32, %arg1: i32, %arg2: i32) -> (i32, i32) {
    %c0_i32 = arith.constant 0 : i32
    %c0_i32_0 = arith.constant 0 : i32
    %c0_i32_1 = arith.constant 0 : i32
    return %c0_i32, %c0_i32_0 : i32, i32
  }
  func.func @transform_3(%arg0: i32, %arg1: i32, %arg2: i32) -> (i32, i32, i32) {
    %c0_i32 = arith.constant 0 : i32
    %c0_i32_0 = arith.constant 0 : i32
    return %arg0, %c0_i32, %arg1 : i32, i32, i32
  }
}

module attributes {stable_mosaic.version = 11 : i64} {
  func.func @_conv_gemm_kernel(%arg0: i32, %arg1: i32, %arg2: i32, %arg3: memref<16x144xbf16, #tpu.memory_space<vmem>>, %arg4: memref<1x144x128xbf16, #tpu.memory_space<vmem>>, %arg5: memref<16x1xf32, #tpu.memory_space<vmem>>, %arg6: memref<1x16x128xf32, #tpu.memory_space<vmem>>, %arg7: memref<16x128xf32, #tpu.memory_space<vmem>>) attributes {dimension_semantics = [#tpu.dimension_semantics<parallel>, #tpu.dimension_semantics<parallel>, #tpu.dimension_semantics<arbitrary>], iteration_bounds = array<i64: 2, 1, 1>, scalar_prefetch = 0 : i64, scratch_operands = 1 : i64, tpu.core_type = #tpu.core_type<tc>, window_params = [{transform_indices = @transform_0, window_bounds = array<i64: 16, 144>}, {transform_indices = @transform_1, window_bounds = array<i64: 1, 144, 128>}, {pipeline_mode = #tpu.pipeline_mode<synchronous>, transform_indices = @transform_2, window_bounds = array<i64: 16, 1>}, {transform_indices = @transform_3, window_bounds = array<i64: 1, 16, 128>}]} {
    %c0_i32 = arith.constant 0 : i32
    %0 = arith.cmpi eq, %arg2, %c0_i32 : i32
    %1 = arith.extui %0 : i1 to i32
    %c0_i32_0 = arith.constant 0 : i32
    %2 = arith.cmpi ne, %1, %c0_i32_0 : i32
    scf.if %2 {
      %cst_11 = arith.constant 0.000000e+00 : f32
      %13 = vector.broadcast %cst_11 : f32 to vector<16x128xf32>
      %c0_12 = arith.constant 0 : index
      %c0_13 = arith.constant 0 : index
      %14 = vector.load %arg7[%c0_12, %c0_13] : memref<16x128xf32, #tpu.memory_space<vmem>>, vector<16x128xf32>
      tpu.vector_store %arg7[%c0_12, %c0_13], %13 {strides = array<i32>} : memref<16x128xf32, #tpu.memory_space<vmem>>, vector<16x128xf32>,
    } else {
    }
    %c0 = arith.constant 0 : index
    %c0_1 = arith.constant 0 : index
    %3 = vector.load %arg7[%c0, %c0_1] : memref<16x128xf32, #tpu.memory_space<vmem>>, vector<16x128xf32>
    %c0_2 = arith.constant 0 : index
    %c0_3 = arith.constant 0 : index
    %4 = vector.load %arg3[%c0_2, %c0_3] : memref<16x144xbf16, #tpu.memory_space<vmem>>, vector<16x144xbf16>
    %c0_4 = arith.constant 0 : index
    %c0_5 = arith.constant 0 : index
    %c0_6 = arith.constant 0 : index
    %5 = vector.load %arg4[%c0_4, %c0_5, %c0_6] : memref<1x144x128xbf16, #tpu.memory_space<vmem>>, vector<1x144x128xbf16>
    %6 = vector.shape_cast %5 : vector<1x144x128xbf16> to vector<144x128xbf16>
    %cst = arith.constant dense<0.000000e+00> : vector<16x128xf32>
    %7 = tpu.matmul %4, %6, %cst {dimension_numbers = #tpu.dot_dimension_numbers<[1], [0], [0], [1], [0, 0, 1, 1], [], []>} : vector<16x144xbf16>, vector<144x128xbf16>, vector<16x128xf32> -> vector<16x128xf32>
    %8 = arith.addf %3, %7 : vector<16x128xf32>
    %c0_7 = arith.constant 0 : index
    %c0_8 = arith.constant 0 : index
    %9 = vector.load %arg7[%c0_7, %c0_8] : memref<16x128xf32, #tpu.memory_space<vmem>>, vector<16x128xf32>
    tpu.vector_store %arg7[%c0_7, %c0_8], %8 {strides = array<i32>} : memref<16x128xf32, #tpu.memory_space<vmem>>, vector<16x128xf32>,
    %c0_i32_9 = arith.constant 0 : i32
    %10 = arith.cmpi eq, %arg2, %c0_i32_9 : i32
    %11 = arith.extui %10 : i1 to i32
    %c0_i32_10 = arith.constant 0 : i32
    %12 = arith.cmpi ne, %11, %c0_i32_10 : i32
    scf.if %12 {
      %c0_11 = arith.constant 0 : index
      %c0_12 = arith.constant 0 : index
      %13 = vector.load %arg7[%c0_11, %c0_12] : memref<16x128xf32, #tpu.memory_space<vmem>>, vector<16x128xf32>
      %c0_13 = arith.constant 0 : index
      %c0_14 = arith.constant 0 : index
      %14 = vector.load %arg5[%c0_13, %c0_14] : memref<16x1xf32, #tpu.memory_space<vmem>>, vector<16x1xf32>
      %15 = vector.broadcast %14 : vector<16x1xf32> to vector<16x128xf32>
      %16 = arith.addf %13, %15 : vector<16x128xf32>
      %c0_15 = arith.constant 0 : index
      %c0_16 = arith.constant 0 : index
      %c0_17 = arith.constant 0 : index
      %17 = vector.load %arg6[%c0_15, %c0_16, %c0_17] : memref<1x16x128xf32, #tpu.memory_space<vmem>>, vector<1x16x128xf32>
      %18 = vector.shape_cast %17 : vector<1x16x128xf32> to vector<16x128xf32>
      %19 = vector.shape_cast %16 : vector<16x128xf32> to vector<1x16x128xf32>
      tpu.vector_store %arg6[%c0_15, %c0_16, %c0_17], %19 {strides = array<i32>} : memref<1x16x128xf32, #tpu.memory_space<vmem>>, vector<1x16x128xf32>,
    } else {
    }
    return
  }
  func.func @transform_0(%arg0: i32, %arg1: i32, %arg2: i32) -> (i32, i32) {
    %c0_i32 = arith.constant 0 : i32
    %c0_i32_0 = arith.constant 0 : i32
    return %c0_i32, %arg2 : i32, i32
  }
  func.func @transform_1(%arg0: i32, %arg1: i32, %arg2: i32) -> (i32, i32, i32) {
    %c0_i32 = arith.constant 0 : i32
    return %arg0, %arg2, %arg1 : i32, i32, i32
  }
  func.func @transform_2(%arg0: i32, %arg1: i32, %arg2: i32) -> (i32, i32) {
    %c0_i32 = arith.constant 0 : i32
    %c0_i32_0 = arith.constant 0 : i32
    %c0_i32_1 = arith.constant 0 : i32
    return %c0_i32, %c0_i32_0 : i32, i32
  }
  func.func @transform_3(%arg0: i32, %arg1: i32, %arg2: i32) -> (i32, i32, i32) {
    %c0_i32 = arith.constant 0 : i32
    %c0_i32_0 = arith.constant 0 : i32
    return %arg0, %c0_i32, %arg1 : i32, i32, i32
  }
}

module attributes {stable_mosaic.version = 11 : i64} {
  func.func @_conv_gemm_instnorm_lrelu_kernel(%arg0: i32, %arg1: i32, %arg2: i32, %arg3: memref<16x48xbf16, #tpu.memory_space<vmem>>, %arg4: memref<1x48x128xbf16, #tpu.memory_space<vmem>>, %arg5: memref<16x1xf32, #tpu.memory_space<vmem>>, %arg6: memref<1x16x128xf32, #tpu.memory_space<vmem>>, %arg7: memref<16x128xf32, #tpu.memory_space<vmem>>) attributes {dimension_semantics = [#tpu.dimension_semantics<parallel>, #tpu.dimension_semantics<parallel>, #tpu.dimension_semantics<arbitrary>], iteration_bounds = array<i64: 2, 1, 1>, scalar_prefetch = 0 : i64, scratch_operands = 1 : i64, tpu.core_type = #tpu.core_type<tc>, window_params = [{transform_indices = @transform_0, window_bounds = array<i64: 16, 48>}, {transform_indices = @transform_1, window_bounds = array<i64: 1, 48, 128>}, {pipeline_mode = #tpu.pipeline_mode<synchronous>, transform_indices = @transform_2, window_bounds = array<i64: 16, 1>}, {transform_indices = @transform_3, window_bounds = array<i64: 1, 16, 128>}]} {
    %c0_i32 = arith.constant 0 : i32
    %0 = arith.cmpi eq, %arg2, %c0_i32 : i32
    %1 = arith.extui %0 : i1 to i32
    %c0_i32_0 = arith.constant 0 : i32
    %2 = arith.cmpi ne, %1, %c0_i32_0 : i32
    scf.if %2 {
      %cst_11 = arith.constant 0.000000e+00 : f32
      %13 = vector.broadcast %cst_11 : f32 to vector<16x128xf32>
      %c0_12 = arith.constant 0 : index
      %c0_13 = arith.constant 0 : index
      %14 = vector.load %arg7[%c0_12, %c0_13] : memref<16x128xf32, #tpu.memory_space<vmem>>, vector<16x128xf32>
      tpu.vector_store %arg7[%c0_12, %c0_13], %13 {strides = array<i32>} : memref<16x128xf32, #tpu.memory_space<vmem>>, vector<16x128xf32>,
    } else {
    }
    %c0 = arith.constant 0 : index
    %c0_1 = arith.constant 0 : index
    %3 = vector.load %arg7[%c0, %c0_1] : memref<16x128xf32, #tpu.memory_space<vmem>>, vector<16x128xf32>
    %c0_2 = arith.constant 0 : index
    %c0_3 = arith.constant 0 : index
    %4 = vector.load %arg3[%c0_2, %c0_3] : memref<16x48xbf16, #tpu.memory_space<vmem>>, vector<16x48xbf16>
    %c0_4 = arith.constant 0 : index
    %c0_5 = arith.constant 0 : index
    %c0_6 = arith.constant 0 : index
    %5 = vector.load %arg4[%c0_4, %c0_5, %c0_6] : memref<1x48x128xbf16, #tpu.memory_space<vmem>>, vector<1x48x128xbf16>
    %6 = vector.shape_cast %5 : vector<1x48x128xbf16> to vector<48x128xbf16>
    %cst = arith.constant dense<0.000000e+00> : vector<16x128xf32>
    %7 = tpu.matmul %4, %6, %cst {dimension_numbers = #tpu.dot_dimension_numbers<[1], [0], [0], [1], [0, 0, 1, 1], [], []>} : vector<16x48xbf16>, vector<48x128xbf16>, vector<16x128xf32> -> vector<16x128xf32>
    %8 = arith.addf %3, %7 : vector<16x128xf32>
    %c0_7 = arith.constant 0 : index
    %c0_8 = arith.constant 0 : index
    %9 = vector.load %arg7[%c0_7, %c0_8] : memref<16x128xf32, #tpu.memory_space<vmem>>, vector<16x128xf32>
    tpu.vector_store %arg7[%c0_7, %c0_8], %8 {strides = array<i32>} : memref<16x128xf32, #tpu.memory_space<vmem>>, vector<16x128xf32>,
    %c0_i32_9 = arith.constant 0 : i32
    %10 = arith.cmpi eq, %arg2, %c0_i32_9 : i32
    %11 = arith.extui %10 : i1 to i32
    %c0_i32_10 = arith.constant 0 : i32
    %12 = arith.cmpi ne, %11, %c0_i32_10 : i32
    scf.if %12 {
      %c0_11 = arith.constant 0 : index
      %c0_12 = arith.constant 0 : index
      %13 = vector.load %arg7[%c0_11, %c0_12] : memref<16x128xf32, #tpu.memory_space<vmem>>, vector<16x128xf32>
      %c0_13 = arith.constant 0 : index
      %c0_14 = arith.constant 0 : index
      %14 = vector.load %arg5[%c0_13, %c0_14] : memref<16x1xf32, #tpu.memory_space<vmem>>, vector<16x1xf32>
      %15 = vector.broadcast %14 : vector<16x1xf32> to vector<16x128xf32>
      %16 = arith.addf %13, %15 : vector<16x128xf32>
      %17 = tpu.iota {dimensions = array<i32: 1>} : vector<16x128xi32>
      %c64_i32 = arith.constant 64 : i32
      %18 = vector.broadcast %c64_i32 : i32 to vector<16x128xi32>
      %19 = arith.cmpi slt, %17, %18 : vector<16x128xi32>
      %cst_15 = arith.constant 0.000000e+00 : f32
      %20 = vector.broadcast %cst_15 : f32 to vector<16x128xf32>
      %21 = arith.select %19, %16, %20 : vector<16x128xi1>, vector<16x128xf32>
      %cst_16 = arith.constant dense<0.000000e+00> : vector<16xf32>
      %22 = vector.multi_reduction <add>, %21, %cst_16 [1] : vector<16x128xf32> to vector<16xf32>
      %23 = vector.shape_cast %22 : vector<16xf32> to vector<16x1xf32>
      %cst_17 = arith.constant 1.562500e-02 : f32
      %24 = vector.broadcast %cst_17 : f32 to vector<16x1xf32>
      %25 = arith.mulf %23, %24 : vector<16x1xf32>
      %26 = vector.broadcast %25 : vector<16x1xf32> to vector<16x128xf32>
      %27 = arith.subf %16, %26 : vector<16x128xf32>
      %28 = arith.mulf %27, %27 : vector<16x128xf32>
      %cst_18 = arith.constant 0.000000e+00 : f32
      %29 = vector.broadcast %cst_18 : f32 to vector<16x128xf32>
      %30 = arith.select %19, %28, %29 : vector<16x128xi1>, vector<16x128xf32>
      %cst_19 = arith.constant dense<0.000000e+00> : vector<16xf32>
      %31 = vector.multi_reduction <add>, %30, %cst_19 [1] : vector<16x128xf32> to vector<16xf32>
      %32 = vector.shape_cast %31 : vector<16xf32> to vector<16x1xf32>
      %cst_20 = arith.constant 1.562500e-02 : f32
      %33 = vector.broadcast %cst_20 : f32 to vector<16x1xf32>
      %34 = arith.mulf %32, %33 : vector<16x1xf32>
      %cst_21 = arith.constant 9.99999974E-6 : f32
      %35 = vector.broadcast %cst_21 : f32 to vector<16x1xf32>
      %36 = arith.addf %34, %35 : vector<16x1xf32>
      %37 = math.rsqrt %36 : vector<16x1xf32>
      %38 = vector.broadcast %37 : vector<16x1xf32> to vector<16x128xf32>
      %39 = arith.mulf %27, %38 : vector<16x128xf32>
      %cst_22 = arith.constant 0.000000e+00 : f32
      %40 = vector.broadcast %cst_22 : f32 to vector<16x128xf32>
      %41 = arith.cmpf oge, %39, %40 : vector<16x128xf32>
      %cst_23 = arith.constant 0.00999999977 : f32
      %42 = vector.broadcast %cst_23 : f32 to vector<16x128xf32>
      %43 = arith.mulf %42, %39 : vector<16x128xf32>
      %44 = arith.select %41, %39, %43 : vector<16x128xi1>, vector<16x128xf32>
      %c0_24 = arith.constant 0 : index
      %c0_25 = arith.constant 0 : index
      %c0_26 = arith.constant 0 : index
      %45 = vector.load %arg6[%c0_24, %c0_25, %c0_26] : memref<1x16x128xf32, #tpu.memory_space<vmem>>, vector<1x16x128xf32>
      %46 = vector.shape_cast %45 : vector<1x16x128xf32> to vector<16x128xf32>
      %47 = vector.shape_cast %44 : vector<16x128xf32> to vector<1x16x128xf32>
      tpu.vector_store %arg6[%c0_24, %c0_25, %c0_26], %47 {strides = array<i32>} : memref<1x16x128xf32, #tpu.memory_space<vmem>>, vector<1x16x128xf32>,
    } else {
    }
    return
  }
  func.func @transform_0(%arg0: i32, %arg1: i32, %arg2: i32) -> (i32, i32) {
    %c0_i32 = arith.constant 0 : i32
    %c0_i32_0 = arith.constant 0 : i32
    return %c0_i32, %arg2 : i32, i32
  }
  func.func @transform_1(%arg0: i32, %arg1: i32, %arg2: i32) -> (i32, i32, i32) {
    %c0_i32 = arith.constant 0 : i32
    return %arg0, %arg2, %arg1 : i32, i32, i32
  }
  func.func @transform_2(%arg0: i32, %arg1: i32, %arg2: i32) -> (i32, i32) {
    %c0_i32 = arith.constant 0 : i32
    %c0_i32_0 = arith.constant 0 : i32
    %c0_i32_1 = arith.constant 0 : i32
    return %c0_i32, %c0_i32_0 : i32, i32
  }
  func.func @transform_3(%arg0: i32, %arg1: i32, %arg2: i32) -> (i32, i32, i32) {
    %c0_i32 = arith.constant 0 : i32
    %c0_i32_0 = arith.constant 0 : i32
    return %arg0, %c0_i32, %arg1 : i32, i32, i32
  }
}

module attributes {stable_mosaic.version = 11 : i64} {
  func.func @_conv_gemm_instnorm_lrelu_kernel(%arg0: i32, %arg1: i32, %arg2: i32, %arg3: memref<32x256xbf16, #tpu.memory_space<vmem>>, %arg4: memref<1x256x128xbf16, #tpu.memory_space<vmem>>, %arg5: memref<32x1xf32, #tpu.memory_space<vmem>>, %arg6: memref<1x32x128xf32, #tpu.memory_space<vmem>>, %arg7: memref<32x128xf32, #tpu.memory_space<vmem>>) attributes {dimension_semantics = [#tpu.dimension_semantics<parallel>, #tpu.dimension_semantics<parallel>, #tpu.dimension_semantics<arbitrary>], iteration_bounds = array<i64: 2, 1, 2>, scalar_prefetch = 0 : i64, scratch_operands = 1 : i64, tpu.core_type = #tpu.core_type<tc>, window_params = [{transform_indices = @transform_0, window_bounds = array<i64: 32, 256>}, {transform_indices = @transform_1, window_bounds = array<i64: 1, 256, 128>}, {pipeline_mode = #tpu.pipeline_mode<synchronous>, transform_indices = @transform_2, window_bounds = array<i64: 32, 1>}, {transform_indices = @transform_3, window_bounds = array<i64: 1, 32, 128>}]} {
    %c0_i32 = arith.constant 0 : i32
    %0 = arith.cmpi eq, %arg2, %c0_i32 : i32
    %1 = arith.extui %0 : i1 to i32
    %c0_i32_0 = arith.constant 0 : i32
    %2 = arith.cmpi ne, %1, %c0_i32_0 : i32
    scf.if %2 {
      %cst_10 = arith.constant 0.000000e+00 : f32
      %13 = vector.broadcast %cst_10 : f32 to vector<32x128xf32>
      %c0_11 = arith.constant 0 : index
      %c0_12 = arith.constant 0 : index
      %14 = vector.load %arg7[%c0_11, %c0_12] : memref<32x128xf32, #tpu.memory_space<vmem>>, vector<32x128xf32>
      tpu.vector_store %arg7[%c0_11, %c0_12], %13 {strides = array<i32>} : memref<32x128xf32, #tpu.memory_space<vmem>>, vector<32x128xf32>,
    } else {
    }
    %c0 = arith.constant 0 : index
    %c0_1 = arith.constant 0 : index
    %3 = vector.load %arg7[%c0, %c0_1] : memref<32x128xf32, #tpu.memory_space<vmem>>, vector<32x128xf32>
    %c0_2 = arith.constant 0 : index
    %c0_3 = arith.constant 0 : index
    %4 = vector.load %arg3[%c0_2, %c0_3] : memref<32x256xbf16, #tpu.memory_space<vmem>>, vector<32x256xbf16>
    %c0_4 = arith.constant 0 : index
    %c0_5 = arith.constant 0 : index
    %c0_6 = arith.constant 0 : index
    %5 = vector.load %arg4[%c0_4, %c0_5, %c0_6] : memref<1x256x128xbf16, #tpu.memory_space<vmem>>, vector<1x256x128xbf16>
    %6 = vector.shape_cast %5 : vector<1x256x128xbf16> to vector<256x128xbf16>
    %cst = arith.constant dense<0.000000e+00> : vector<32x128xf32>
    %7 = tpu.matmul %4, %6, %cst {dimension_numbers = #tpu.dot_dimension_numbers<[1], [0], [0], [1], [0, 0, 1, 1], [], []>} : vector<32x256xbf16>, vector<256x128xbf16>, vector<32x128xf32> -> vector<32x128xf32>
    %8 = arith.addf %3, %7 : vector<32x128xf32>
    %c0_7 = arith.constant 0 : index
    %c0_8 = arith.constant 0 : index
    %9 = vector.load %arg7[%c0_7, %c0_8] : memref<32x128xf32, #tpu.memory_space<vmem>>, vector<32x128xf32>
    tpu.vector_store %arg7[%c0_7, %c0_8], %8 {strides = array<i32>} : memref<32x128xf32, #tpu.memory_space<vmem>>, vector<32x128xf32>,
    %c1_i32 = arith.constant 1 : i32
    %10 = arith.cmpi eq, %arg2, %c1_i32 : i32
    %11 = arith.extui %10 : i1 to i32
    %c0_i32_9 = arith.constant 0 : i32
    %12 = arith.cmpi ne, %11, %c0_i32_9 : i32
    scf.if %12 {
      %c0_10 = arith.constant 0 : index
      %c0_11 = arith.constant 0 : index
      %13 = vector.load %arg7[%c0_10, %c0_11] : memref<32x128xf32, #tpu.memory_space<vmem>>, vector<32x128xf32>
      %c0_12 = arith.constant 0 : index
      %c0_13 = arith.constant 0 : index
      %14 = vector.load %arg5[%c0_12, %c0_13] : memref<32x1xf32, #tpu.memory_space<vmem>>, vector<32x1xf32>
      %15 = vector.broadcast %14 : vector<32x1xf32> to vector<32x128xf32>
      %16 = arith.addf %13, %15 : vector<32x128xf32>
      %17 = tpu.iota {dimensions = array<i32: 1>} : vector<32x128xi32>
      %c8_i32 = arith.constant 8 : i32
      %18 = vector.broadcast %c8_i32 : i32 to vector<32x128xi32>
      %19 = arith.cmpi slt, %17, %18 : vector<32x128xi32>
      %cst_14 = arith.constant 0.000000e+00 : f32
      %20 = vector.broadcast %cst_14 : f32 to vector<32x128xf32>
      %21 = arith.select %19, %16, %20 : vector<32x128xi1>, vector<32x128xf32>
      %cst_15 = arith.constant dense<0.000000e+00> : vector<32xf32>
      %22 = vector.multi_reduction <add>, %21, %cst_15 [1] : vector<32x128xf32> to vector<32xf32>
      %23 = vector.shape_cast %22 : vector<32xf32> to vector<32x1xf32>
      %cst_16 = arith.constant 1.250000e-01 : f32
      %24 = vector.broadcast %cst_16 : f32 to vector<32x1xf32>
      %25 = arith.mulf %23, %24 : vector<32x1xf32>
      %26 = vector.broadcast %25 : vector<32x1xf32> to vector<32x128xf32>
      %27 = arith.subf %16, %26 : vector<32x128xf32>
      %28 = arith.mulf %27, %27 : vector<32x128xf32>
      %cst_17 = arith.constant 0.000000e+00 : f32
      %29 = vector.broadcast %cst_17 : f32 to vector<32x128xf32>
      %30 = arith.select %19, %28, %29 : vector<32x128xi1>, vector<32x128xf32>
      %cst_18 = arith.constant dense<0.000000e+00> : vector<32xf32>
      %31 = vector.multi_reduction <add>, %30, %cst_18 [1] : vector<32x128xf32> to vector<32xf32>
      %32 = vector.shape_cast %31 : vector<32xf32> to vector<32x1xf32>
      %cst_19 = arith.constant 1.250000e-01 : f32
      %33 = vector.broadcast %cst_19 : f32 to vector<32x1xf32>
      %34 = arith.mulf %32, %33 : vector<32x1xf32>
      %cst_20 = arith.constant 9.99999974E-6 : f32
      %35 = vector.broadcast %cst_20 : f32 to vector<32x1xf32>
      %36 = arith.addf %34, %35 : vector<32x1xf32>
      %37 = math.rsqrt %36 : vector<32x1xf32>
      %38 = vector.broadcast %37 : vector<32x1xf32> to vector<32x128xf32>
      %39 = arith.mulf %27, %38 : vector<32x128xf32>
      %cst_21 = arith.constant 0.000000e+00 : f32
      %40 = vector.broadcast %cst_21 : f32 to vector<32x128xf32>
      %41 = arith.cmpf oge, %39, %40 : vector<32x128xf32>
      %cst_22 = arith.constant 0.00999999977 : f32
      %42 = vector.broadcast %cst_22 : f32 to vector<32x128xf32>
      %43 = arith.mulf %42, %39 : vector<32x128xf32>
      %44 = arith.select %41, %39, %43 : vector<32x128xi1>, vector<32x128xf32>
      %c0_23 = arith.constant 0 : index
      %c0_24 = arith.constant 0 : index
      %c0_25 = arith.constant 0 : index
      %45 = vector.load %arg6[%c0_23, %c0_24, %c0_25] : memref<1x32x128xf32, #tpu.memory_space<vmem>>, vector<1x32x128xf32>
      %46 = vector.shape_cast %45 : vector<1x32x128xf32> to vector<32x128xf32>
      %47 = vector.shape_cast %44 : vector<32x128xf32> to vector<1x32x128xf32>
      tpu.vector_store %arg6[%c0_23, %c0_24, %c0_25], %47 {strides = array<i32>} : memref<1x32x128xf32, #tpu.memory_space<vmem>>, vector<1x32x128xf32>,
    } else {
    }
    return
  }
  func.func @transform_0(%arg0: i32, %arg1: i32, %arg2: i32) -> (i32, i32) {
    %c0_i32 = arith.constant 0 : i32
    %c0_i32_0 = arith.constant 0 : i32
    return %c0_i32, %arg2 : i32, i32
  }
  func.func @transform_1(%arg0: i32, %arg1: i32, %arg2: i32) -> (i32, i32, i32) {
    %c0_i32 = arith.constant 0 : i32
    return %arg0, %arg2, %arg1 : i32, i32, i32
  }
  func.func @transform_2(%arg0: i32, %arg1: i32, %arg2: i32) -> (i32, i32) {
    %c0_i32 = arith.constant 0 : i32
    %c0_i32_0 = arith.constant 0 : i32
    %c0_i32_1 = arith.constant 0 : i32
    return %c0_i32, %c0_i32_0 : i32, i32
  }
  func.func @transform_3(%arg0: i32, %arg1: i32, %arg2: i32) -> (i32, i32, i32) {
    %c0_i32 = arith.constant 0 : i32
    %c0_i32_0 = arith.constant 0 : i32
    return %arg0, %c0_i32, %arg1 : i32, i32, i32
  }
}

module attributes {stable_mosaic.version = 11 : i64} {
  func.func @_conv_gemm_kernel(%arg0: i32, %arg1: i32, %arg2: i32, %arg3: memref<32x256xbf16, #tpu.memory_space<vmem>>, %arg4: memref<1x256x128xbf16, #tpu.memory_space<vmem>>, %arg5: memref<32x1xf32, #tpu.memory_space<vmem>>, %arg6: memref<1x32x128xf32, #tpu.memory_space<vmem>>, %arg7: memref<32x128xf32, #tpu.memory_space<vmem>>) attributes {dimension_semantics = [#tpu.dimension_semantics<parallel>, #tpu.dimension_semantics<parallel>, #tpu.dimension_semantics<arbitrary>], iteration_bounds = array<i64: 2, 1, 2>, scalar_prefetch = 0 : i64, scratch_operands = 1 : i64, tpu.core_type = #tpu.core_type<tc>, window_params = [{transform_indices = @transform_0, window_bounds = array<i64: 32, 256>}, {transform_indices = @transform_1, window_bounds = array<i64: 1, 256, 128>}, {pipeline_mode = #tpu.pipeline_mode<synchronous>, transform_indices = @transform_2, window_bounds = array<i64: 32, 1>}, {transform_indices = @transform_3, window_bounds = array<i64: 1, 32, 128>}]} {
    %c0_i32 = arith.constant 0 : i32
    %0 = arith.cmpi eq, %arg2, %c0_i32 : i32
    %1 = arith.extui %0 : i1 to i32
    %c0_i32_0 = arith.constant 0 : i32
    %2 = arith.cmpi ne, %1, %c0_i32_0 : i32
    scf.if %2 {
      %cst_10 = arith.constant 0.000000e+00 : f32
      %13 = vector.broadcast %cst_10 : f32 to vector<32x128xf32>
      %c0_11 = arith.constant 0 : index
      %c0_12 = arith.constant 0 : index
      %14 = vector.load %arg7[%c0_11, %c0_12] : memref<32x128xf32, #tpu.memory_space<vmem>>, vector<32x128xf32>
      tpu.vector_store %arg7[%c0_11, %c0_12], %13 {strides = array<i32>} : memref<32x128xf32, #tpu.memory_space<vmem>>, vector<32x128xf32>,
    } else {
    }
    %c0 = arith.constant 0 : index
    %c0_1 = arith.constant 0 : index
    %3 = vector.load %arg7[%c0, %c0_1] : memref<32x128xf32, #tpu.memory_space<vmem>>, vector<32x128xf32>
    %c0_2 = arith.constant 0 : index
    %c0_3 = arith.constant 0 : index
    %4 = vector.load %arg3[%c0_2, %c0_3] : memref<32x256xbf16, #tpu.memory_space<vmem>>, vector<32x256xbf16>
    %c0_4 = arith.constant 0 : index
    %c0_5 = arith.constant 0 : index
    %c0_6 = arith.constant 0 : index
    %5 = vector.load %arg4[%c0_4, %c0_5, %c0_6] : memref<1x256x128xbf16, #tpu.memory_space<vmem>>, vector<1x256x128xbf16>
    %6 = vector.shape_cast %5 : vector<1x256x128xbf16> to vector<256x128xbf16>
    %cst = arith.constant dense<0.000000e+00> : vector<32x128xf32>
    %7 = tpu.matmul %4, %6, %cst {dimension_numbers = #tpu.dot_dimension_numbers<[1], [0], [0], [1], [0, 0, 1, 1], [], []>} : vector<32x256xbf16>, vector<256x128xbf16>, vector<32x128xf32> -> vector<32x128xf32>
    %8 = arith.addf %3, %7 : vector<32x128xf32>
    %c0_7 = arith.constant 0 : index
    %c0_8 = arith.constant 0 : index
    %9 = vector.load %arg7[%c0_7, %c0_8] : memref<32x128xf32, #tpu.memory_space<vmem>>, vector<32x128xf32>
    tpu.vector_store %arg7[%c0_7, %c0_8], %8 {strides = array<i32>} : memref<32x128xf32, #tpu.memory_space<vmem>>, vector<32x128xf32>,
    %c1_i32 = arith.constant 1 : i32
    %10 = arith.cmpi eq, %arg2, %c1_i32 : i32
    %11 = arith.extui %10 : i1 to i32
    %c0_i32_9 = arith.constant 0 : i32
    %12 = arith.cmpi ne, %11, %c0_i32_9 : i32
    scf.if %12 {
      %c0_10 = arith.constant 0 : index
      %c0_11 = arith.constant 0 : index
      %13 = vector.load %arg7[%c0_10, %c0_11] : memref<32x128xf32, #tpu.memory_space<vmem>>, vector<32x128xf32>
      %c0_12 = arith.constant 0 : index
      %c0_13 = arith.constant 0 : index
      %14 = vector.load %arg5[%c0_12, %c0_13] : memref<32x1xf32, #tpu.memory_space<vmem>>, vector<32x1xf32>
      %15 = vector.broadcast %14 : vector<32x1xf32> to vector<32x128xf32>
      %16 = arith.addf %13, %15 : vector<32x128xf32>
      %c0_14 = arith.constant 0 : index
      %c0_15 = arith.constant 0 : index
      %c0_16 = arith.constant 0 : index
      %17 = vector.load %arg6[%c0_14, %c0_15, %c0_16] : memref<1x32x128xf32, #tpu.memory_space<vmem>>, vector<1x32x128xf32>
      %18 = vector.shape_cast %17 : vector<1x32x128xf32> to vector<32x128xf32>
      %19 = vector.shape_cast %16 : vector<32x128xf32> to vector<1x32x128xf32>
      tpu.vector_store %arg6[%c0_14, %c0_15, %c0_16], %19 {strides = array<i32>} : memref<1x32x128xf32, #tpu.memory_space<vmem>>, vector<1x32x128xf32>,
    } else {
    }
    return
  }
  func.func @transform_0(%arg0: i32, %arg1: i32, %arg2: i32) -> (i32, i32) {
    %c0_i32 = arith.constant 0 : i32
    %c0_i32_0 = arith.constant 0 : i32
    return %c0_i32, %arg2 : i32, i32
  }
  func.func @transform_1(%arg0: i32, %arg1: i32, %arg2: i32) -> (i32, i32, i32) {
    %c0_i32 = arith.constant 0 : i32
    return %arg0, %arg2, %arg1 : i32, i32, i32
  }
  func.func @transform_2(%arg0: i32, %arg1: i32, %arg2: i32) -> (i32, i32) {
    %c0_i32 = arith.constant 0 : i32
    %c0_i32_0 = arith.constant 0 : i32
    %c0_i32_1 = arith.constant 0 : i32
    return %c0_i32, %c0_i32_0 : i32, i32
  }
  func.func @transform_3(%arg0: i32, %arg1: i32, %arg2: i32) -> (i32, i32, i32) {
    %c0_i32 = arith.constant 0 : i32
    %c0_i32_0 = arith.constant 0 : i32
    return %arg0, %c0_i32, %arg1 : i32, i32, i32
  }
}

module attributes {stable_mosaic.version = 11 : i64} {
  func.func @_conv_gemm_instnorm_lrelu_kernel(%arg0: i32, %arg1: i32, %arg2: i32, %arg3: memref<32x96xbf16, #tpu.memory_space<vmem>>, %arg4: memref<1x96x128xbf16, #tpu.memory_space<vmem>>, %arg5: memref<32x1xf32, #tpu.memory_space<vmem>>, %arg6: memref<1x32x128xf32, #tpu.memory_space<vmem>>, %arg7: memref<32x128xf32, #tpu.memory_space<vmem>>) attributes {dimension_semantics = [#tpu.dimension_semantics<parallel>, #tpu.dimension_semantics<parallel>, #tpu.dimension_semantics<arbitrary>], iteration_bounds = array<i64: 2, 1, 1>, scalar_prefetch = 0 : i64, scratch_operands = 1 : i64, tpu.core_type = #tpu.core_type<tc>, window_params = [{transform_indices = @transform_0, window_bounds = array<i64: 32, 96>}, {transform_indices = @transform_1, window_bounds = array<i64: 1, 96, 128>}, {pipeline_mode = #tpu.pipeline_mode<synchronous>, transform_indices = @transform_2, window_bounds = array<i64: 32, 1>}, {transform_indices = @transform_3, window_bounds = array<i64: 1, 32, 128>}]} {
    %c0_i32 = arith.constant 0 : i32
    %0 = arith.cmpi eq, %arg2, %c0_i32 : i32
    %1 = arith.extui %0 : i1 to i32
    %c0_i32_0 = arith.constant 0 : i32
    %2 = arith.cmpi ne, %1, %c0_i32_0 : i32
    scf.if %2 {
      %cst_11 = arith.constant 0.000000e+00 : f32
      %13 = vector.broadcast %cst_11 : f32 to vector<32x128xf32>
      %c0_12 = arith.constant 0 : index
      %c0_13 = arith.constant 0 : index
      %14 = vector.load %arg7[%c0_12, %c0_13] : memref<32x128xf32, #tpu.memory_space<vmem>>, vector<32x128xf32>
      tpu.vector_store %arg7[%c0_12, %c0_13], %13 {strides = array<i32>} : memref<32x128xf32, #tpu.memory_space<vmem>>, vector<32x128xf32>,
    } else {
    }
    %c0 = arith.constant 0 : index
    %c0_1 = arith.constant 0 : index
    %3 = vector.load %arg7[%c0, %c0_1] : memref<32x128xf32, #tpu.memory_space<vmem>>, vector<32x128xf32>
    %c0_2 = arith.constant 0 : index
    %c0_3 = arith.constant 0 : index
    %4 = vector.load %arg3[%c0_2, %c0_3] : memref<32x96xbf16, #tpu.memory_space<vmem>>, vector<32x96xbf16>
    %c0_4 = arith.constant 0 : index
    %c0_5 = arith.constant 0 : index
    %c0_6 = arith.constant 0 : index
    %5 = vector.load %arg4[%c0_4, %c0_5, %c0_6] : memref<1x96x128xbf16, #tpu.memory_space<vmem>>, vector<1x96x128xbf16>
    %6 = vector.shape_cast %5 : vector<1x96x128xbf16> to vector<96x128xbf16>
    %cst = arith.constant dense<0.000000e+00> : vector<32x128xf32>
    %7 = tpu.matmul %4, %6, %cst {dimension_numbers = #tpu.dot_dimension_numbers<[1], [0], [0], [1], [0, 0, 1, 1], [], []>} : vector<32x96xbf16>, vector<96x128xbf16>, vector<32x128xf32> -> vector<32x128xf32>
    %8 = arith.addf %3, %7 : vector<32x128xf32>
    %c0_7 = arith.constant 0 : index
    %c0_8 = arith.constant 0 : index
    %9 = vector.load %arg7[%c0_7, %c0_8] : memref<32x128xf32, #tpu.memory_space<vmem>>, vector<32x128xf32>
    tpu.vector_store %arg7[%c0_7, %c0_8], %8 {strides = array<i32>} : memref<32x128xf32, #tpu.memory_space<vmem>>, vector<32x128xf32>,
    %c0_i32_9 = arith.constant 0 : i32
    %10 = arith.cmpi eq, %arg2, %c0_i32_9 : i32
    %11 = arith.extui %10 : i1 to i32
    %c0_i32_10 = arith.constant 0 : i32
    %12 = arith.cmpi ne, %11, %c0_i32_10 : i32
    scf.if %12 {
      %c0_11 = arith.constant 0 : index
      %c0_12 = arith.constant 0 : index
      %13 = vector.load %arg7[%c0_11, %c0_12] : memref<32x128xf32, #tpu.memory_space<vmem>>, vector<32x128xf32>
      %c0_13 = arith.constant 0 : index
      %c0_14 = arith.constant 0 : index
      %14 = vector.load %arg5[%c0_13, %c0_14] : memref<32x1xf32, #tpu.memory_space<vmem>>, vector<32x1xf32>
      %15 = vector.broadcast %14 : vector<32x1xf32> to vector<32x128xf32>
      %16 = arith.addf %13, %15 : vector<32x128xf32>
      %17 = tpu.iota {dimensions = array<i32: 1>} : vector<32x128xi32>
      %c8_i32 = arith.constant 8 : i32
      %18 = vector.broadcast %c8_i32 : i32 to vector<32x128xi32>
      %19 = arith.cmpi slt, %17, %18 : vector<32x128xi32>
      %cst_15 = arith.constant 0.000000e+00 : f32
      %20 = vector.broadcast %cst_15 : f32 to vector<32x128xf32>
      %21 = arith.select %19, %16, %20 : vector<32x128xi1>, vector<32x128xf32>
      %cst_16 = arith.constant dense<0.000000e+00> : vector<32xf32>
      %22 = vector.multi_reduction <add>, %21, %cst_16 [1] : vector<32x128xf32> to vector<32xf32>
      %23 = vector.shape_cast %22 : vector<32xf32> to vector<32x1xf32>
      %cst_17 = arith.constant 1.250000e-01 : f32
      %24 = vector.broadcast %cst_17 : f32 to vector<32x1xf32>
      %25 = arith.mulf %23, %24 : vector<32x1xf32>
      %26 = vector.broadcast %25 : vector<32x1xf32> to vector<32x128xf32>
      %27 = arith.subf %16, %26 : vector<32x128xf32>
      %28 = arith.mulf %27, %27 : vector<32x128xf32>
      %cst_18 = arith.constant 0.000000e+00 : f32
      %29 = vector.broadcast %cst_18 : f32 to vector<32x128xf32>
      %30 = arith.select %19, %28, %29 : vector<32x128xi1>, vector<32x128xf32>
      %cst_19 = arith.constant dense<0.000000e+00> : vector<32xf32>
      %31 = vector.multi_reduction <add>, %30, %cst_19 [1] : vector<32x128xf32> to vector<32xf32>
      %32 = vector.shape_cast %31 : vector<32xf32> to vector<32x1xf32>
      %cst_20 = arith.constant 1.250000e-01 : f32
      %33 = vector.broadcast %cst_20 : f32 to vector<32x1xf32>
      %34 = arith.mulf %32, %33 : vector<32x1xf32>
      %cst_21 = arith.constant 9.99999974E-6 : f32
      %35 = vector.broadcast %cst_21 : f32 to vector<32x1xf32>
      %36 = arith.addf %34, %35 : vector<32x1xf32>
      %37 = math.rsqrt %36 : vector<32x1xf32>
      %38 = vector.broadcast %37 : vector<32x1xf32> to vector<32x128xf32>
      %39 = arith.mulf %27, %38 : vector<32x128xf32>
      %cst_22 = arith.constant 0.000000e+00 : f32
      %40 = vector.broadcast %cst_22 : f32 to vector<32x128xf32>
      %41 = arith.cmpf oge, %39, %40 : vector<32x128xf32>
      %cst_23 = arith.constant 0.00999999977 : f32
      %42 = vector.broadcast %cst_23 : f32 to vector<32x128xf32>
      %43 = arith.mulf %42, %39 : vector<32x128xf32>
      %44 = arith.select %41, %39, %43 : vector<32x128xi1>, vector<32x128xf32>
      %c0_24 = arith.constant 0 : index
      %c0_25 = arith.constant 0 : index
      %c0_26 = arith.constant 0 : index
      %45 = vector.load %arg6[%c0_24, %c0_25, %c0_26] : memref<1x32x128xf32, #tpu.memory_space<vmem>>, vector<1x32x128xf32>
      %46 = vector.shape_cast %45 : vector<1x32x128xf32> to vector<32x128xf32>
      %47 = vector.shape_cast %44 : vector<32x128xf32> to vector<1x32x128xf32>
      tpu.vector_store %arg6[%c0_24, %c0_25, %c0_26], %47 {strides = array<i32>} : memref<1x32x128xf32, #tpu.memory_space<vmem>>, vector<1x32x128xf32>,
    } else {
    }
    return
  }
  func.func @transform_0(%arg0: i32, %arg1: i32, %arg2: i32) -> (i32, i32) {
    %c0_i32 = arith.constant 0 : i32
    %c0_i32_0 = arith.constant 0 : i32
    return %c0_i32, %arg2 : i32, i32
  }
  func.func @transform_1(%arg0: i32, %arg1: i32, %arg2: i32) -> (i32, i32, i32) {
    %c0_i32 = arith.constant 0 : i32
    return %arg0, %arg2, %arg1 : i32, i32, i32
  }
  func.func @transform_2(%arg0: i32, %arg1: i32, %arg2: i32) -> (i32, i32) {
    %c0_i32 = arith.constant 0 : i32
    %c0_i32_0 = arith.constant 0 : i32
    %c0_i32_1 = arith.constant 0 : i32
    return %c0_i32, %c0_i32_0 : i32, i32
  }
  func.func @transform_3(%arg0: i32, %arg1: i32, %arg2: i32) -> (i32, i32, i32) {
    %c0_i32 = arith.constant 0 : i32
    %c0_i32_0 = arith.constant 0 : i32
    return %arg0, %c0_i32, %arg1 : i32, i32, i32
  }
}

module attributes {stable_mosaic.version = 11 : i64} {
  func.func @_conv_gemm_instnorm_lrelu_kernel(%arg0: i32, %arg1: i32, %arg2: i32, %arg3: memref<16x256xbf16, #tpu.memory_space<vmem>>, %arg4: memref<1x256x128xbf16, #tpu.memory_space<vmem>>, %arg5: memref<16x1xf32, #tpu.memory_space<vmem>>, %arg6: memref<1x16x128xf32, #tpu.memory_space<vmem>>, %arg7: memref<16x128xf32, #tpu.memory_space<vmem>>) attributes {dimension_semantics = [#tpu.dimension_semantics<parallel>, #tpu.dimension_semantics<parallel>, #tpu.dimension_semantics<arbitrary>], iteration_bounds = array<i64: 2, 1, 4>, scalar_prefetch = 0 : i64, scratch_operands = 1 : i64, tpu.core_type = #tpu.core_type<tc>, window_params = [{transform_indices = @transform_0, window_bounds = array<i64: 16, 256>}, {transform_indices = @transform_1, window_bounds = array<i64: 1, 256, 128>}, {pipeline_mode = #tpu.pipeline_mode<synchronous>, transform_indices = @transform_2, window_bounds = array<i64: 16, 1>}, {transform_indices = @transform_3, window_bounds = array<i64: 1, 16, 128>}]} {
    %c0_i32 = arith.constant 0 : i32
    %0 = arith.cmpi eq, %arg2, %c0_i32 : i32
    %1 = arith.extui %0 : i1 to i32
    %c0_i32_0 = arith.constant 0 : i32
    %2 = arith.cmpi ne, %1, %c0_i32_0 : i32
    scf.if %2 {
      %cst_10 = arith.constant 0.000000e+00 : f32
      %13 = vector.broadcast %cst_10 : f32 to vector<16x128xf32>
      %c0_11 = arith.constant 0 : index
      %c0_12 = arith.constant 0 : index
      %14 = vector.load %arg7[%c0_11, %c0_12] : memref<16x128xf32, #tpu.memory_space<vmem>>, vector<16x128xf32>
      tpu.vector_store %arg7[%c0_11, %c0_12], %13 {strides = array<i32>} : memref<16x128xf32, #tpu.memory_space<vmem>>, vector<16x128xf32>,
    } else {
    }
    %c0 = arith.constant 0 : index
    %c0_1 = arith.constant 0 : index
    %3 = vector.load %arg7[%c0, %c0_1] : memref<16x128xf32, #tpu.memory_space<vmem>>, vector<16x128xf32>
    %c0_2 = arith.constant 0 : index
    %c0_3 = arith.constant 0 : index
    %4 = vector.load %arg3[%c0_2, %c0_3] : memref<16x256xbf16, #tpu.memory_space<vmem>>, vector<16x256xbf16>
    %c0_4 = arith.constant 0 : index
    %c0_5 = arith.constant 0 : index
    %c0_6 = arith.constant 0 : index
    %5 = vector.load %arg4[%c0_4, %c0_5, %c0_6] : memref<1x256x128xbf16, #tpu.memory_space<vmem>>, vector<1x256x128xbf16>
    %6 = vector.shape_cast %5 : vector<1x256x128xbf16> to vector<256x128xbf16>
    %cst = arith.constant dense<0.000000e+00> : vector<16x128xf32>
    %7 = tpu.matmul %4, %6, %cst {dimension_numbers = #tpu.dot_dimension_numbers<[1], [0], [0], [1], [0, 0, 1, 1], [], []>} : vector<16x256xbf16>, vector<256x128xbf16>, vector<16x128xf32> -> vector<16x128xf32>
    %8 = arith.addf %3, %7 : vector<16x128xf32>
    %c0_7 = arith.constant 0 : index
    %c0_8 = arith.constant 0 : index
    %9 = vector.load %arg7[%c0_7, %c0_8] : memref<16x128xf32, #tpu.memory_space<vmem>>, vector<16x128xf32>
    tpu.vector_store %arg7[%c0_7, %c0_8], %8 {strides = array<i32>} : memref<16x128xf32, #tpu.memory_space<vmem>>, vector<16x128xf32>,
    %c3_i32 = arith.constant 3 : i32
    %10 = arith.cmpi eq, %arg2, %c3_i32 : i32
    %11 = arith.extui %10 : i1 to i32
    %c0_i32_9 = arith.constant 0 : i32
    %12 = arith.cmpi ne, %11, %c0_i32_9 : i32
    scf.if %12 {
      %c0_10 = arith.constant 0 : index
      %c0_11 = arith.constant 0 : index
      %13 = vector.load %arg7[%c0_10, %c0_11] : memref<16x128xf32, #tpu.memory_space<vmem>>, vector<16x128xf32>
      %c0_12 = arith.constant 0 : index
      %c0_13 = arith.constant 0 : index
      %14 = vector.load %arg5[%c0_12, %c0_13] : memref<16x1xf32, #tpu.memory_space<vmem>>, vector<16x1xf32>
      %15 = vector.broadcast %14 : vector<16x1xf32> to vector<16x128xf32>
      %16 = arith.addf %13, %15 : vector<16x128xf32>
      %17 = tpu.iota {dimensions = array<i32: 1>} : vector<16x128xi32>
      %c64_i32 = arith.constant 64 : i32
      %18 = vector.broadcast %c64_i32 : i32 to vector<16x128xi32>
      %19 = arith.cmpi slt, %17, %18 : vector<16x128xi32>
      %cst_14 = arith.constant 0.000000e+00 : f32
      %20 = vector.broadcast %cst_14 : f32 to vector<16x128xf32>
      %21 = arith.select %19, %16, %20 : vector<16x128xi1>, vector<16x128xf32>
      %cst_15 = arith.constant dense<0.000000e+00> : vector<16xf32>
      %22 = vector.multi_reduction <add>, %21, %cst_15 [1] : vector<16x128xf32> to vector<16xf32>
      %23 = vector.shape_cast %22 : vector<16xf32> to vector<16x1xf32>
      %cst_16 = arith.constant 1.562500e-02 : f32
      %24 = vector.broadcast %cst_16 : f32 to vector<16x1xf32>
      %25 = arith.mulf %23, %24 : vector<16x1xf32>
      %26 = vector.broadcast %25 : vector<16x1xf32> to vector<16x128xf32>
      %27 = arith.subf %16, %26 : vector<16x128xf32>
      %28 = arith.mulf %27, %27 : vector<16x128xf32>
      %cst_17 = arith.constant 0.000000e+00 : f32
      %29 = vector.broadcast %cst_17 : f32 to vector<16x128xf32>
      %30 = arith.select %19, %28, %29 : vector<16x128xi1>, vector<16x128xf32>
      %cst_18 = arith.constant dense<0.000000e+00> : vector<16xf32>
      %31 = vector.multi_reduction <add>, %30, %cst_18 [1] : vector<16x128xf32> to vector<16xf32>
      %32 = vector.shape_cast %31 : vector<16xf32> to vector<16x1xf32>
      %cst_19 = arith.constant 1.562500e-02 : f32
      %33 = vector.broadcast %cst_19 : f32 to vector<16x1xf32>
      %34 = arith.mulf %32, %33 : vector<16x1xf32>
      %cst_20 = arith.constant 9.99999974E-6 : f32
      %35 = vector.broadcast %cst_20 : f32 to vector<16x1xf32>
      %36 = arith.addf %34, %35 : vector<16x1xf32>
      %37 = math.rsqrt %36 : vector<16x1xf32>
      %38 = vector.broadcast %37 : vector<16x1xf32> to vector<16x128xf32>
      %39 = arith.mulf %27, %38 : vector<16x128xf32>
      %cst_21 = arith.constant 0.000000e+00 : f32
      %40 = vector.broadcast %cst_21 : f32 to vector<16x128xf32>
      %41 = arith.cmpf oge, %39, %40 : vector<16x128xf32>
      %cst_22 = arith.constant 0.00999999977 : f32
      %42 = vector.broadcast %cst_22 : f32 to vector<16x128xf32>
      %43 = arith.mulf %42, %39 : vector<16x128xf32>
      %44 = arith.select %41, %39, %43 : vector<16x128xi1>, vector<16x128xf32>
      %c0_23 = arith.constant 0 : index
      %c0_24 = arith.constant 0 : index
      %c0_25 = arith.constant 0 : index
      %45 = vector.load %arg6[%c0_23, %c0_24, %c0_25] : memref<1x16x128xf32, #tpu.memory_space<vmem>>, vector<1x16x128xf32>
      %46 = vector.shape_cast %45 : vector<1x16x128xf32> to vector<16x128xf32>
      %47 = vector.shape_cast %44 : vector<16x128xf32> to vector<1x16x128xf32>
      tpu.vector_store %arg6[%c0_23, %c0_24, %c0_25], %47 {strides = array<i32>} : memref<1x16x128xf32, #tpu.memory_space<vmem>>, vector<1x16x128xf32>,
    } else {
    }
    return
  }
  func.func @transform_0(%arg0: i32, %arg1: i32, %arg2: i32) -> (i32, i32) {
    %c0_i32 = arith.constant 0 : i32
    %c0_i32_0 = arith.constant 0 : i32
    return %c0_i32, %arg2 : i32, i32
  }
  func.func @transform_1(%arg0: i32, %arg1: i32, %arg2: i32) -> (i32, i32, i32) {
    %c0_i32 = arith.constant 0 : i32
    return %arg0, %arg2, %arg1 : i32, i32, i32
  }
  func.func @transform_2(%arg0: i32, %arg1: i32, %arg2: i32) -> (i32, i32) {
    %c0_i32 = arith.constant 0 : i32
    %c0_i32_0 = arith.constant 0 : i32
    %c0_i32_1 = arith.constant 0 : i32
    return %c0_i32, %c0_i32_0 : i32, i32
  }
  func.func @transform_3(%arg0: i32, %arg1: i32, %arg2: i32) -> (i32, i32, i32) {
    %c0_i32 = arith.constant 0 : i32
    %c0_i32_0 = arith.constant 0 : i32
    return %arg0, %c0_i32, %arg1 : i32, i32, i32
  }
}

module attributes {stable_mosaic.version = 11 : i64} {
  func.func @_conv_gemm_kernel(%arg0: i32, %arg1: i32, %arg2: i32, %arg3: memref<16x256xbf16, #tpu.memory_space<vmem>>, %arg4: memref<1x256x128xbf16, #tpu.memory_space<vmem>>, %arg5: memref<16x1xf32, #tpu.memory_space<vmem>>, %arg6: memref<1x16x128xf32, #tpu.memory_space<vmem>>, %arg7: memref<16x128xf32, #tpu.memory_space<vmem>>) attributes {dimension_semantics = [#tpu.dimension_semantics<parallel>, #tpu.dimension_semantics<parallel>, #tpu.dimension_semantics<arbitrary>], iteration_bounds = array<i64: 2, 1, 2>, scalar_prefetch = 0 : i64, scratch_operands = 1 : i64, tpu.core_type = #tpu.core_type<tc>, window_params = [{transform_indices = @transform_0, window_bounds = array<i64: 16, 256>}, {transform_indices = @transform_1, window_bounds = array<i64: 1, 256, 128>}, {pipeline_mode = #tpu.pipeline_mode<synchronous>, transform_indices = @transform_2, window_bounds = array<i64: 16, 1>}, {transform_indices = @transform_3, window_bounds = array<i64: 1, 16, 128>}]} {
    %c0_i32 = arith.constant 0 : i32
    %0 = arith.cmpi eq, %arg2, %c0_i32 : i32
    %1 = arith.extui %0 : i1 to i32
    %c0_i32_0 = arith.constant 0 : i32
    %2 = arith.cmpi ne, %1, %c0_i32_0 : i32
    scf.if %2 {
      %cst_10 = arith.constant 0.000000e+00 : f32
      %13 = vector.broadcast %cst_10 : f32 to vector<16x128xf32>
      %c0_11 = arith.constant 0 : index
      %c0_12 = arith.constant 0 : index
      %14 = vector.load %arg7[%c0_11, %c0_12] : memref<16x128xf32, #tpu.memory_space<vmem>>, vector<16x128xf32>
      tpu.vector_store %arg7[%c0_11, %c0_12], %13 {strides = array<i32>} : memref<16x128xf32, #tpu.memory_space<vmem>>, vector<16x128xf32>,
    } else {
    }
    %c0 = arith.constant 0 : index
    %c0_1 = arith.constant 0 : index
    %3 = vector.load %arg7[%c0, %c0_1] : memref<16x128xf32, #tpu.memory_space<vmem>>, vector<16x128xf32>
    %c0_2 = arith.constant 0 : index
    %c0_3 = arith.constant 0 : index
    %4 = vector.load %arg3[%c0_2, %c0_3] : memref<16x256xbf16, #tpu.memory_space<vmem>>, vector<16x256xbf16>
    %c0_4 = arith.constant 0 : index
    %c0_5 = arith.constant 0 : index
    %c0_6 = arith.constant 0 : index
    %5 = vector.load %arg4[%c0_4, %c0_5, %c0_6] : memref<1x256x128xbf16, #tpu.memory_space<vmem>>, vector<1x256x128xbf16>
    %6 = vector.shape_cast %5 : vector<1x256x128xbf16> to vector<256x128xbf16>
    %cst = arith.constant dense<0.000000e+00> : vector<16x128xf32>
    %7 = tpu.matmul %4, %6, %cst {dimension_numbers = #tpu.dot_dimension_numbers<[1], [0], [0], [1], [0, 0, 1, 1], [], []>} : vector<16x256xbf16>, vector<256x128xbf16>, vector<16x128xf32> -> vector<16x128xf32>
    %8 = arith.addf %3, %7 : vector<16x128xf32>
    %c0_7 = arith.constant 0 : index
    %c0_8 = arith.constant 0 : index
    %9 = vector.load %arg7[%c0_7, %c0_8] : memref<16x128xf32, #tpu.memory_space<vmem>>, vector<16x128xf32>
    tpu.vector_store %arg7[%c0_7, %c0_8], %8 {strides = array<i32>} : memref<16x128xf32, #tpu.memory_space<vmem>>, vector<16x128xf32>,
    %c1_i32 = arith.constant 1 : i32
    %10 = arith.cmpi eq, %arg2, %c1_i32 : i32
    %11 = arith.extui %10 : i1 to i32
    %c0_i32_9 = arith.constant 0 : i32
    %12 = arith.cmpi ne, %11, %c0_i32_9 : i32
    scf.if %12 {
      %c0_10 = arith.constant 0 : index
      %c0_11 = arith.constant 0 : index
      %13 = vector.load %arg7[%c0_10, %c0_11] : memref<16x128xf32, #tpu.memory_space<vmem>>, vector<16x128xf32>
      %c0_12 = arith.constant 0 : index
      %c0_13 = arith.constant 0 : index
      %14 = vector.load %arg5[%c0_12, %c0_13] : memref<16x1xf32, #tpu.memory_space<vmem>>, vector<16x1xf32>
      %15 = vector.broadcast %14 : vector<16x1xf32> to vector<16x128xf32>
      %16 = arith.addf %13, %15 : vector<16x128xf32>
      %c0_14 = arith.constant 0 : index
      %c0_15 = arith.constant 0 : index
      %c0_16 = arith.constant 0 : index
      %17 = vector.load %arg6[%c0_14, %c0_15, %c0_16] : memref<1x16x128xf32, #tpu.memory_space<vmem>>, vector<1x16x128xf32>
      %18 = vector.shape_cast %17 : vector<1x16x128xf32> to vector<16x128xf32>
      %19 = vector.shape_cast %16 : vector<16x128xf32> to vector<1x16x128xf32>
      tpu.vector_store %arg6[%c0_14, %c0_15, %c0_16], %19 {strides = array<i32>} : memref<1x16x128xf32, #tpu.memory_space<vmem>>, vector<1x16x128xf32>,
    } else {
    }
    return
  }
  func.func @transform_0(%arg0: i32, %arg1: i32, %arg2: i32) -> (i32, i32) {
    %c0_i32 = arith.constant 0 : i32
    %c0_i32_0 = arith.constant 0 : i32
    return %c0_i32, %arg2 : i32, i32
  }
  func.func @transform_1(%arg0: i32, %arg1: i32, %arg2: i32) -> (i32, i32, i32) {
    %c0_i32 = arith.constant 0 : i32
    return %arg0, %arg2, %arg1 : i32, i32, i32
  }
  func.func @transform_2(%arg0: i32, %arg1: i32, %arg2: i32) -> (i32, i32) {
    %c0_i32 = arith.constant 0 : i32
    %c0_i32_0 = arith.constant 0 : i32
    %c0_i32_1 = arith.constant 0 : i32
    return %c0_i32, %c0_i32_0 : i32, i32
  }
  func.func @transform_3(%arg0: i32, %arg1: i32, %arg2: i32) -> (i32, i32, i32) {
    %c0_i32 = arith.constant 0 : i32
    %c0_i32_0 = arith.constant 0 : i32
    return %arg0, %c0_i32, %arg1 : i32, i32, i32
  }
}

module attributes {stable_mosaic.version = 11 : i64} {
  func.func @_conv_gemm_instnorm_lrelu_kernel(%arg0: i32, %arg1: i32, %arg2: i32, %arg3: memref<8x256xbf16, #tpu.memory_space<vmem>>, %arg4: memref<1x256x512xbf16, #tpu.memory_space<vmem>>, %arg5: memref<8x1xf32, #tpu.memory_space<vmem>>, %arg6: memref<1x8x512xf32, #tpu.memory_space<vmem>>, %arg7: memref<8x512xf32, #tpu.memory_space<vmem>>) attributes {dimension_semantics = [#tpu.dimension_semantics<parallel>, #tpu.dimension_semantics<parallel>, #tpu.dimension_semantics<arbitrary>], iteration_bounds = array<i64: 2, 1, 2>, scalar_prefetch = 0 : i64, scratch_operands = 1 : i64, tpu.core_type = #tpu.core_type<tc>, window_params = [{transform_indices = @transform_0, window_bounds = array<i64: 8, 256>}, {transform_indices = @transform_1, window_bounds = array<i64: 1, 256, 512>}, {pipeline_mode = #tpu.pipeline_mode<synchronous>, transform_indices = @transform_2, window_bounds = array<i64: 8, 1>}, {transform_indices = @transform_3, window_bounds = array<i64: 1, 8, 512>}]} {
    %c0_i32 = arith.constant 0 : i32
    %0 = arith.cmpi eq, %arg2, %c0_i32 : i32
    %1 = arith.extui %0 : i1 to i32
    %c0_i32_0 = arith.constant 0 : i32
    %2 = arith.cmpi ne, %1, %c0_i32_0 : i32
    scf.if %2 {
      %cst_10 = arith.constant 0.000000e+00 : f32
      %13 = vector.broadcast %cst_10 : f32 to vector<8x512xf32>
      %c0_11 = arith.constant 0 : index
      %c0_12 = arith.constant 0 : index
      %14 = vector.load %arg7[%c0_11, %c0_12] : memref<8x512xf32, #tpu.memory_space<vmem>>, vector<8x512xf32>
      tpu.vector_store %arg7[%c0_11, %c0_12], %13 {strides = array<i32>} : memref<8x512xf32, #tpu.memory_space<vmem>>, vector<8x512xf32>,
    } else {
    }
    %c0 = arith.constant 0 : index
    %c0_1 = arith.constant 0 : index
    %3 = vector.load %arg7[%c0, %c0_1] : memref<8x512xf32, #tpu.memory_space<vmem>>, vector<8x512xf32>
    %c0_2 = arith.constant 0 : index
    %c0_3 = arith.constant 0 : index
    %4 = vector.load %arg3[%c0_2, %c0_3] : memref<8x256xbf16, #tpu.memory_space<vmem>>, vector<8x256xbf16>
    %c0_4 = arith.constant 0 : index
    %c0_5 = arith.constant 0 : index
    %c0_6 = arith.constant 0 : index
    %5 = vector.load %arg4[%c0_4, %c0_5, %c0_6] : memref<1x256x512xbf16, #tpu.memory_space<vmem>>, vector<1x256x512xbf16>
    %6 = vector.shape_cast %5 : vector<1x256x512xbf16> to vector<256x512xbf16>
    %cst = arith.constant dense<0.000000e+00> : vector<8x512xf32>
    %7 = tpu.matmul %4, %6, %cst {dimension_numbers = #tpu.dot_dimension_numbers<[1], [0], [0], [1], [0, 0, 1, 1], [], []>} : vector<8x256xbf16>, vector<256x512xbf16>, vector<8x512xf32> -> vector<8x512xf32>
    %8 = arith.addf %3, %7 : vector<8x512xf32>
    %c0_7 = arith.constant 0 : index
    %c0_8 = arith.constant 0 : index
    %9 = vector.load %arg7[%c0_7, %c0_8] : memref<8x512xf32, #tpu.memory_space<vmem>>, vector<8x512xf32>
    tpu.vector_store %arg7[%c0_7, %c0_8], %8 {strides = array<i32>} : memref<8x512xf32, #tpu.memory_space<vmem>>, vector<8x512xf32>,
    %c1_i32 = arith.constant 1 : i32
    %10 = arith.cmpi eq, %arg2, %c1_i32 : i32
    %11 = arith.extui %10 : i1 to i32
    %c0_i32_9 = arith.constant 0 : i32
    %12 = arith.cmpi ne, %11, %c0_i32_9 : i32
    scf.if %12 {
      %c0_10 = arith.constant 0 : index
      %c0_11 = arith.constant 0 : index
      %13 = vector.load %arg7[%c0_10, %c0_11] : memref<8x512xf32, #tpu.memory_space<vmem>>, vector<8x512xf32>
      %c0_12 = arith.constant 0 : index
      %c0_13 = arith.constant 0 : index
      %14 = vector.load %arg5[%c0_12, %c0_13] : memref<8x1xf32, #tpu.memory_space<vmem>>, vector<8x1xf32>
      %15 = vector.broadcast %14 : vector<8x1xf32> to vector<8x512xf32>
      %16 = arith.addf %13, %15 : vector<8x512xf32>
      %17 = tpu.iota {dimensions = array<i32: 1>} : vector<8x512xi32>
      %c512_i32 = arith.constant 512 : i32
      %18 = vector.broadcast %c512_i32 : i32 to vector<8x512xi32>
      %19 = arith.cmpi slt, %17, %18 : vector<8x512xi32>
      %cst_14 = arith.constant 0.000000e+00 : f32
      %20 = vector.broadcast %cst_14 : f32 to vector<8x512xf32>
      %21 = arith.select %19, %16, %20 : vector<8x512xi1>, vector<8x512xf32>
      %cst_15 = arith.constant dense<0.000000e+00> : vector<8xf32>
      %22 = vector.multi_reduction <add>, %21, %cst_15 [1] : vector<8x512xf32> to vector<8xf32>
      %23 = vector.shape_cast %22 : vector<8xf32> to vector<8x1xf32>
      %cst_16 = arith.constant 0.001953125 : f32
      %24 = vector.broadcast %cst_16 : f32 to vector<8x1xf32>
      %25 = arith.mulf %23, %24 : vector<8x1xf32>
      %26 = vector.broadcast %25 : vector<8x1xf32> to vector<8x512xf32>
      %27 = arith.subf %16, %26 : vector<8x512xf32>
      %28 = arith.mulf %27, %27 : vector<8x512xf32>
      %cst_17 = arith.constant 0.000000e+00 : f32
      %29 = vector.broadcast %cst_17 : f32 to vector<8x512xf32>
      %30 = arith.select %19, %28, %29 : vector<8x512xi1>, vector<8x512xf32>
      %cst_18 = arith.constant dense<0.000000e+00> : vector<8xf32>
      %31 = vector.multi_reduction <add>, %30, %cst_18 [1] : vector<8x512xf32> to vector<8xf32>
      %32 = vector.shape_cast %31 : vector<8xf32> to vector<8x1xf32>
      %cst_19 = arith.constant 0.001953125 : f32
      %33 = vector.broadcast %cst_19 : f32 to vector<8x1xf32>
      %34 = arith.mulf %32, %33 : vector<8x1xf32>
      %cst_20 = arith.constant 9.99999974E-6 : f32
      %35 = vector.broadcast %cst_20 : f32 to vector<8x1xf32>
      %36 = arith.addf %34, %35 : vector<8x1xf32>
      %37 = math.rsqrt %36 : vector<8x1xf32>
      %38 = vector.broadcast %37 : vector<8x1xf32> to vector<8x512xf32>
      %39 = arith.mulf %27, %38 : vector<8x512xf32>
      %cst_21 = arith.constant 0.000000e+00 : f32
      %40 = vector.broadcast %cst_21 : f32 to vector<8x512xf32>
      %41 = arith.cmpf oge, %39, %40 : vector<8x512xf32>
      %cst_22 = arith.constant 0.00999999977 : f32
      %42 = vector.broadcast %cst_22 : f32 to vector<8x512xf32>
      %43 = arith.mulf %42, %39 : vector<8x512xf32>
      %44 = arith.select %41, %39, %43 : vector<8x512xi1>, vector<8x512xf32>
      %c0_23 = arith.constant 0 : index
      %c0_24 = arith.constant 0 : index
      %c0_25 = arith.constant 0 : index
      %45 = vector.load %arg6[%c0_23, %c0_24, %c0_25] : memref<1x8x512xf32, #tpu.memory_space<vmem>>, vector<1x8x512xf32>
      %46 = vector.shape_cast %45 : vector<1x8x512xf32> to vector<8x512xf32>
      %47 = vector.shape_cast %44 : vector<8x512xf32> to vector<1x8x512xf32>
      tpu.vector_store %arg6[%c0_23, %c0_24, %c0_25], %47 {strides = array<i32>} : memref<1x8x512xf32, #tpu.memory_space<vmem>>, vector<1x8x512xf32>,
    } else {
    }
    return
  }
  func.func @transform_0(%arg0: i32, %arg1: i32, %arg2: i32) -> (i32, i32) {
    %c0_i32 = arith.constant 0 : i32
    %c0_i32_0 = arith.constant 0 : i32
    return %c0_i32, %arg2 : i32, i32
  }
  func.func @transform_1(%arg0: i32, %arg1: i32, %arg2: i32) -> (i32, i32, i32) {
    %c0_i32 = arith.constant 0 : i32
    return %arg0, %arg2, %arg1 : i32, i32, i32
  }
  func.func @transform_2(%arg0: i32, %arg1: i32, %arg2: i32) -> (i32, i32) {
    %c0_i32 = arith.constant 0 : i32
    %c0_i32_0 = arith.constant 0 : i32
    %c0_i32_1 = arith.constant 0 : i32
    return %c0_i32, %c0_i32_0 : i32, i32
  }
  func.func @transform_3(%arg0: i32, %arg1: i32, %arg2: i32) -> (i32, i32, i32) {
    %c0_i32 = arith.constant 0 : i32
    %c0_i32_0 = arith.constant 0 : i32
    return %arg0, %c0_i32, %arg1 : i32, i32, i32
  }
}

module attributes {stable_mosaic.version = 11 : i64} {
  func.func @_conv_gemm_kernel(%arg0: i32, %arg1: i32, %arg2: i32, %arg3: memref<8x144xbf16, #tpu.memory_space<vmem>>, %arg4: memref<1x144x512xbf16, #tpu.memory_space<vmem>>, %arg5: memref<8x1xf32, #tpu.memory_space<vmem>>, %arg6: memref<1x8x512xf32, #tpu.memory_space<vmem>>, %arg7: memref<8x512xf32, #tpu.memory_space<vmem>>) attributes {dimension_semantics = [#tpu.dimension_semantics<parallel>, #tpu.dimension_semantics<parallel>, #tpu.dimension_semantics<arbitrary>], iteration_bounds = array<i64: 2, 1, 1>, scalar_prefetch = 0 : i64, scratch_operands = 1 : i64, tpu.core_type = #tpu.core_type<tc>, window_params = [{transform_indices = @transform_0, window_bounds = array<i64: 8, 144>}, {transform_indices = @transform_1, window_bounds = array<i64: 1, 144, 512>}, {pipeline_mode = #tpu.pipeline_mode<synchronous>, transform_indices = @transform_2, window_bounds = array<i64: 8, 1>}, {transform_indices = @transform_3, window_bounds = array<i64: 1, 8, 512>}]} {
    %c0_i32 = arith.constant 0 : i32
    %0 = arith.cmpi eq, %arg2, %c0_i32 : i32
    %1 = arith.extui %0 : i1 to i32
    %c0_i32_0 = arith.constant 0 : i32
    %2 = arith.cmpi ne, %1, %c0_i32_0 : i32
    scf.if %2 {
      %cst_11 = arith.constant 0.000000e+00 : f32
      %13 = vector.broadcast %cst_11 : f32 to vector<8x512xf32>
      %c0_12 = arith.constant 0 : index
      %c0_13 = arith.constant 0 : index
      %14 = vector.load %arg7[%c0_12, %c0_13] : memref<8x512xf32, #tpu.memory_space<vmem>>, vector<8x512xf32>
      tpu.vector_store %arg7[%c0_12, %c0_13], %13 {strides = array<i32>} : memref<8x512xf32, #tpu.memory_space<vmem>>, vector<8x512xf32>,
    } else {
    }
    %c0 = arith.constant 0 : index
    %c0_1 = arith.constant 0 : index
    %3 = vector.load %arg7[%c0, %c0_1] : memref<8x512xf32, #tpu.memory_space<vmem>>, vector<8x512xf32>
    %c0_2 = arith.constant 0 : index
    %c0_3 = arith.constant 0 : index
    %4 = vector.load %arg3[%c0_2, %c0_3] : memref<8x144xbf16, #tpu.memory_space<vmem>>, vector<8x144xbf16>
    %c0_4 = arith.constant 0 : index
    %c0_5 = arith.constant 0 : index
    %c0_6 = arith.constant 0 : index
    %5 = vector.load %arg4[%c0_4, %c0_5, %c0_6] : memref<1x144x512xbf16, #tpu.memory_space<vmem>>, vector<1x144x512xbf16>
    %6 = vector.shape_cast %5 : vector<1x144x512xbf16> to vector<144x512xbf16>
    %cst = arith.constant dense<0.000000e+00> : vector<8x512xf32>
    %7 = tpu.matmul %4, %6, %cst {dimension_numbers = #tpu.dot_dimension_numbers<[1], [0], [0], [1], [0, 0, 1, 1], [], []>} : vector<8x144xbf16>, vector<144x512xbf16>, vector<8x512xf32> -> vector<8x512xf32>
    %8 = arith.addf %3, %7 : vector<8x512xf32>
    %c0_7 = arith.constant 0 : index
    %c0_8 = arith.constant 0 : index
    %9 = vector.load %arg7[%c0_7, %c0_8] : memref<8x512xf32, #tpu.memory_space<vmem>>, vector<8x512xf32>
    tpu.vector_store %arg7[%c0_7, %c0_8], %8 {strides = array<i32>} : memref<8x512xf32, #tpu.memory_space<vmem>>, vector<8x512xf32>,
    %c0_i32_9 = arith.constant 0 : i32
    %10 = arith.cmpi eq, %arg2, %c0_i32_9 : i32
    %11 = arith.extui %10 : i1 to i32
    %c0_i32_10 = arith.constant 0 : i32
    %12 = arith.cmpi ne, %11, %c0_i32_10 : i32
    scf.if %12 {
      %c0_11 = arith.constant 0 : index
      %c0_12 = arith.constant 0 : index
      %13 = vector.load %arg7[%c0_11, %c0_12] : memref<8x512xf32, #tpu.memory_space<vmem>>, vector<8x512xf32>
      %c0_13 = arith.constant 0 : index
      %c0_14 = arith.constant 0 : index
      %14 = vector.load %arg5[%c0_13, %c0_14] : memref<8x1xf32, #tpu.memory_space<vmem>>, vector<8x1xf32>
      %15 = vector.broadcast %14 : vector<8x1xf32> to vector<8x512xf32>
      %16 = arith.addf %13, %15 : vector<8x512xf32>
      %c0_15 = arith.constant 0 : index
      %c0_16 = arith.constant 0 : index
      %c0_17 = arith.constant 0 : index
      %17 = vector.load %arg6[%c0_15, %c0_16, %c0_17] : memref<1x8x512xf32, #tpu.memory_space<vmem>>, vector<1x8x512xf32>
      %18 = vector.shape_cast %17 : vector<1x8x512xf32> to vector<8x512xf32>
      %19 = vector.shape_cast %16 : vector<8x512xf32> to vector<1x8x512xf32>
      tpu.vector_store %arg6[%c0_15, %c0_16, %c0_17], %19 {strides = array<i32>} : memref<1x8x512xf32, #tpu.memory_space<vmem>>, vector<1x8x512xf32>,
    } else {
    }
    return
  }
  func.func @transform_0(%arg0: i32, %arg1: i32, %arg2: i32) -> (i32, i32) {
    %c0_i32 = arith.constant 0 : i32
    %c0_i32_0 = arith.constant 0 : i32
    return %c0_i32, %arg2 : i32, i32
  }
  func.func @transform_1(%arg0: i32, %arg1: i32, %arg2: i32) -> (i32, i32, i32) {
    %c0_i32 = arith.constant 0 : i32
    return %arg0, %arg2, %arg1 : i32, i32, i32
  }
  func.func @transform_2(%arg0: i32, %arg1: i32, %arg2: i32) -> (i32, i32) {
    %c0_i32 = arith.constant 0 : i32
    %c0_i32_0 = arith.constant 0 : i32
    %c0_i32_1 = arith.constant 0 : i32
    return %c0_i32, %c0_i32_0 : i32, i32
  }
  func.func @transform_3(%arg0: i32, %arg1: i32, %arg2: i32) -> (i32, i32, i32) {
    %c0_i32 = arith.constant 0 : i32
    %c0_i32_0 = arith.constant 0 : i32
    return %arg0, %c0_i32, %arg1 : i32, i32, i32
  }
}

module attributes {stable_mosaic.version = 11 : i64} {
  func.func @_conv_gemm_kernel(%arg0: i32, %arg1: i32, %arg2: i32, %arg3: memref<2x216xbf16, #tpu.memory_space<vmem>>, %arg4: memref<1x216x512xbf16, #tpu.memory_space<vmem>>, %arg5: memref<2x1xf32, #tpu.memory_space<vmem>>, %arg6: memref<1x2x512xf32, #tpu.memory_space<vmem>>, %arg7: memref<2x512xf32, #tpu.memory_space<vmem>>) attributes {dimension_semantics = [#tpu.dimension_semantics<parallel>, #tpu.dimension_semantics<parallel>, #tpu.dimension_semantics<arbitrary>], iteration_bounds = array<i64: 2, 1, 1>, scalar_prefetch = 0 : i64, scratch_operands = 1 : i64, tpu.core_type = #tpu.core_type<tc>, window_params = [{transform_indices = @transform_0, window_bounds = array<i64: 2, 216>}, {transform_indices = @transform_1, window_bounds = array<i64: 1, 216, 512>}, {pipeline_mode = #tpu.pipeline_mode<synchronous>, transform_indices = @transform_2, window_bounds = array<i64: 2, 1>}, {transform_indices = @transform_3, window_bounds = array<i64: 1, 2, 512>}]} {
    %c0_i32 = arith.constant 0 : i32
    %0 = arith.cmpi eq, %arg2, %c0_i32 : i32
    %1 = arith.extui %0 : i1 to i32
    %c0_i32_0 = arith.constant 0 : i32
    %2 = arith.cmpi ne, %1, %c0_i32_0 : i32
    scf.if %2 {
      %cst_11 = arith.constant 0.000000e+00 : f32
      %13 = vector.broadcast %cst_11 : f32 to vector<2x512xf32>
      %c0_12 = arith.constant 0 : index
      %c0_13 = arith.constant 0 : index
      %14 = vector.load %arg7[%c0_12, %c0_13] : memref<2x512xf32, #tpu.memory_space<vmem>>, vector<2x512xf32>
      tpu.vector_store %arg7[%c0_12, %c0_13], %13 {strides = array<i32>} : memref<2x512xf32, #tpu.memory_space<vmem>>, vector<2x512xf32>,
    } else {
    }
    %c0 = arith.constant 0 : index
    %c0_1 = arith.constant 0 : index
    %3 = vector.load %arg7[%c0, %c0_1] : memref<2x512xf32, #tpu.memory_space<vmem>>, vector<2x512xf32>
    %c0_2 = arith.constant 0 : index
    %c0_3 = arith.constant 0 : index
    %4 = vector.load %arg3[%c0_2, %c0_3] : memref<2x216xbf16, #tpu.memory_space<vmem>>, vector<2x216xbf16>
    %c0_4 = arith.constant 0 : index
    %c0_5 = arith.constant 0 : index
    %c0_6 = arith.constant 0 : index
    %5 = vector.load %arg4[%c0_4, %c0_5, %c0_6] : memref<1x216x512xbf16, #tpu.memory_space<vmem>>, vector<1x216x512xbf16>
    %6 = vector.shape_cast %5 : vector<1x216x512xbf16> to vector<216x512xbf16>
    %cst = arith.constant dense<0.000000e+00> : vector<2x512xf32>
    %7 = tpu.matmul %4, %6, %cst {dimension_numbers = #tpu.dot_dimension_numbers<[1], [0], [0], [1], [0, 0, 1, 1], [], []>} : vector<2x216xbf16>, vector<216x512xbf16>, vector<2x512xf32> -> vector<2x512xf32>
    %8 = arith.addf %3, %7 : vector<2x512xf32>
    %c0_7 = arith.constant 0 : index
    %c0_8 = arith.constant 0 : index
    %9 = vector.load %arg7[%c0_7, %c0_8] : memref<2x512xf32, #tpu.memory_space<vmem>>, vector<2x512xf32>
    tpu.vector_store %arg7[%c0_7, %c0_8], %8 {strides = array<i32>} : memref<2x512xf32, #tpu.memory_space<vmem>>, vector<2x512xf32>,
    %c0_i32_9 = arith.constant 0 : i32
    %10 = arith.cmpi eq, %arg2, %c0_i32_9 : i32
    %11 = arith.extui %10 : i1 to i32
    %c0_i32_10 = arith.constant 0 : i32
    %12 = arith.cmpi ne, %11, %c0_i32_10 : i32
    scf.if %12 {
      %c0_11 = arith.constant 0 : index
      %c0_12 = arith.constant 0 : index
      %13 = vector.load %arg7[%c0_11, %c0_12] : memref<2x512xf32, #tpu.memory_space<vmem>>, vector<2x512xf32>
      %c0_13 = arith.constant 0 : index
      %c0_14 = arith.constant 0 : index
      %14 = vector.load %arg5[%c0_13, %c0_14] : memref<2x1xf32, #tpu.memory_space<vmem>>, vector<2x1xf32>
      %15 = vector.broadcast %14 : vector<2x1xf32> to vector<2x512xf32>
      %16 = arith.addf %13, %15 : vector<2x512xf32>
      %c0_15 = arith.constant 0 : index
      %c0_16 = arith.constant 0 : index
      %c0_17 = arith.constant 0 : index
      %17 = vector.load %arg6[%c0_15, %c0_16, %c0_17] : memref<1x2x512xf32, #tpu.memory_space<vmem>>, vector<1x2x512xf32>
      %18 = vector.shape_cast %17 : vector<1x2x512xf32> to vector<2x512xf32>
      %19 = vector.shape_cast %16 : vector<2x512xf32> to vector<1x2x512xf32>
      tpu.vector_store %arg6[%c0_15, %c0_16, %c0_17], %19 {strides = array<i32>} : memref<1x2x512xf32, #tpu.memory_space<vmem>>, vector<1x2x512xf32>,
    } else {
    }
    return
  }
  func.func @transform_0(%arg0: i32, %arg1: i32, %arg2: i32) -> (i32, i32) {
    %c0_i32 = arith.constant 0 : i32
    %c0_i32_0 = arith.constant 0 : i32
    return %c0_i32, %arg2 : i32, i32
  }
  func.func @transform_1(%arg0: i32, %arg1: i32, %arg2: i32) -> (i32, i32, i32) {
    %c0_i32 = arith.constant 0 : i32
    return %arg0, %arg2, %arg1 : i32, i32, i32
  }
  func.func @transform_2(%arg0: i32, %arg1: i32, %arg2: i32) -> (i32, i32) {
    %c0_i32 = arith.constant 0 : i32
    %c0_i32_0 = arith.constant 0 : i32
    %c0_i32_1 = arith.constant 0 : i32
    return %c0_i32, %c0_i32_0 : i32, i32
  }
  func.func @transform_3(%arg0: i32, %arg1: i32, %arg2: i32) -> (i32, i32, i32) {
    %c0_i32 = arith.constant 0 : i32
    %c0_i32_0 = arith.constant 0 : i32
    return %arg0, %c0_i32, %arg1 : i32, i32, i32
  }
}

</mosaic_0001>

<bundles_post_ra>
// kernel: unet3d_forward.26
= control target key start
LH: loop header
LB: loop body
LE: loop exit
PB: predicated region body
PF: predicated region fallthrough
CT: control target
= control target key end

     0   :  { %s719_s12 = smov 0   ;;  %s721_s13 = smov 0   ;;  %s762_s0 = inlined_call_operand.vmem [shape: bf16[8,27], index: 0, kind: input, shape index: {}]   ;;  %s763_s1 = inlined_call_operand.vmem [shape: bf16[2,27,512], index: 1, kind: input, shape index: {}]   ;;  %s764_s2 = inlined_call_operand.vmem [shape: f32[8,1], index: 2, kind: input, shape index: {}]   ;;  %s765_s3 = inlined_call_operand.vmem [shape: f32[2,8,512], index: 3, kind: output, shape index: {}]  }
   0x1   :  { %s723_s14 = smov 0  }
   0x2 LB: > { %s32_s15 = sadd.s32 1, %s691_s13  ;;  %p613_p0 = scmp.ge.s32.totalorder %s695_s14, 1  ;;  %s695_s14 = sphi %s723_s14, %s13_s14   ;;  %s691_s13 = sphi %s721_s13, %s767_s13   ;;  %s687_s12 = sphi %s719_s12, %s766_s12  }
   0x3   : > { %p34_p1 = scmp.ge.s32.totalorder %s32_s15, 2  ;;  %p182_p2 = scmp.lt.s32.totalorder %s695_s14, 3 }
   0x5   : > { %s769_s15 = smov (%p34_p1, %s32_s15), 0  ;;  %p183_p3 = pnand %p613_p0, %p182_p2 }
   0x6   : > { %p229_p4 = scmp.lt.s32.totalorder (!%p183_p3), %s687_s12, 1  ;;  %v428_v0 = vld [vmem:[%s764_s2] sm:$0xff] (!%p183_p3)  ;;  %v697_v1 = vmov (!%p183_p3), 0   ;;  %vm315_vm0 = vcmask (!%p183_p3), 1044480   ;;  %vm316_vm1 = vcmask (!%p183_p3), 1045504   ;;  %v698_v2 = vmov (!%p183_p3), 65535  }
   0x7   : > { %186 = sbr.rel (%p183_p3) target bundleno = 566 (0x236), region = 32  ;;  %363 = vmatprep.mubr.bf16.mxu0 (!%p183_p3), %v697_v1  ;;  %404 = vmatprep.mubr.bf16.mxu1 (!%p183_p3), %v697_v1  ;;  %v317_v3 = vsel (!%p183_p3), %vm315_vm0, 4294967295, %v698_v2  ;;  %v266_v17 = vld [vmem:[%s762_s0] sm:$0xf] (!%p183_p3)  ;;  %vm311_vm2 = vcmask (!%p183_p3), 220160  }
   0x8   : > { %658 = vset.pattern.permute.xlu0 (!%p183_p3), %v697_v1  ;;  %v318_v8 = vsel (!%p183_p3), %vm316_vm1, %v317_v3, 0 }
   0x9   : > { %431 = vperm.xlu0 (!%p183_p3), %658, %v428_v0  }
   0xe   : > { %s771_s12 = smov (!%p229_p4, %s687_s12), 1 }
   0xf   : > { %s630_s18 = sshll.u32 %s771_s12, 6  ;;  %s631_s24 = sshll.u32 %s771_s12, 5 }
  0x10   : > { %s240_s21 = scalar_lea.vmem %s763_s1, %s630_s18  ;;  %s251_s27 = scalar_lea.vmem %s765_s3, %s631_s24 }
  0x11   : > { %v659_v4 = vld [vmem:[%s240_s21 + $0x4] ss:$16 sps:$4 sm:$0xff]   ;;  %v661_v5 = vld [vmem:[%s240_s21 + $0xc] ss:$16 sps:$4 sm:$0xff]   ;;  %v663_v6 = vld [vmem:[%s240_s21] ss:$16 sps:$4 sm:$0xff]  }
  0x12   : > { %331 = vmatprep.subr.bf16.mxu0 %v659_v4  ;;  %v664_v7 = vld [vmem:[%s240_s21 + $0x8] ss:$16 sps:$4 sm:$0xff]   ;;  %372 = vmatprep.subr.bf16.mxu1 %v661_v5  ;;  %v665_v9 = vld [vmem:[%s240_s21 + $0x24] ss:$16 sps:$4 sm:$0x3f]  }
  0x13   : > { %332 = vmatpush1.bf16.msra.mxu0 %v663_v6  ;;  %373 = vmatpush1.bf16.msra.mxu1 %v664_v7  ;;  %v667_v10 = vld [vmem:[%s240_s21 + $0x2c] ss:$16 sps:$4 sm:$0x3f]   ;;  %v323_v11 = vand.u32 %v665_v9, %v318_v8  ;;  %v669_v12 = vld [vmem:[%s240_s21 + $0x20] ss:$16 sps:$4 sm:$0x3f]  }
  0x14   : > { %v670_v13 = vld [vmem:[%s240_s21 + $0x28] ss:$16 sps:$4 sm:$0x3f]   ;;  %v329_v14 = vand.u32 %v667_v10, %v318_v8  ;;  %v320_v15 = vand.u32 %v669_v12, %v318_v8 }
  0x15   : > { %333 = vmatprep.subr.bf16.mxu0 %v323_v11  ;;  %v326_v16 = vand.u32 %v670_v13, %v318_v8 }
  0x16   : > { %374 = vmatprep.subr.bf16.mxu1 %v329_v14 }
  0x17   : > { %334 = vmatpush1.bf16.msra.mxu0 %v320_v15  ;;  %375 = vmatpush1.bf16.msra.mxu1 %v326_v16 }
  0x1a   : > { %626 = vmatmul.mubr.msk.bf16.vlgmr.msra.gmra.mrb[0].mxu0 %vm311_vm2, %v266_v17  ;;  %627 = vmatmul.mubr.msk.bf16.vlgmr.msra.gmra.mrb[0].mxu1 %vm311_vm2, %v266_v17 }
  0x88   : > { %v432_v18 = vpop.permute.xlu0 %431 }
  0xed   : > { %v365_v19 = vpop.f32.mrb[0].mxu0  ;;  %v406_v20 = vpop.f32.mrb[0].mxu1 }
  0xee   : > { %v434_v21 = vadd.f32 %v432_v18, %v365_v19  ;;  %v367_v22 = vpop.f32.mrb[1].mxu0  ;;  %v408_v23 = vpop.f32.mrb[1].mxu1  ;;  %v436_v29 = vadd.f32 %v432_v18, %v406_v20 }
  0xef   : > { %v435_v24 = vadd.f32 %v432_v18, %v367_v22  ;;  %v369_v25 = vpop.f32.mrb[2].mxu0  ;;  %v410_v26 = vpop.f32.mrb[2].mxu1  ;;  %v437_v31 = vadd.f32 %v432_v18, %v408_v23 }
  0xf0   : > { %v370_v27 = vpop.f32.mrb[3].mxu0  ;;  %v411_v28 = vpop.f32.mrb[3].mxu1 }
  0xf1   : > { %v451_v30 = vadd.f32 %v435_v24, %v434_v21 }
  0xf3   : > { %v452_v32 = vadd.f32 %v451_v30, %v436_v29 }
  0xf5   : > { %v453_v33 = vadd.f32 %v452_v32, %v437_v31 }
  0xf7   : > { %454 = vadd.xlane.f32.xlu0 %v453_v33 }
 0x184   : > { %v455_v34 = vpop.xlane.xlu0 %454 }
 0x185   : > { %v456_v35 = vmul.f32 0.001953125, %v455_v34 }
 0x187   : > { %v457_v36 = vsub.f32 %v434_v21, %v456_v35  ;;  %v458_v37 = vsub.f32 %v435_v24, %v456_v35  ;;  %v459_v38 = vsub.f32 %v436_v29, %v456_v35  ;;  %v460_v39 = vsub.f32 %v437_v31, %v456_v35 }
 0x189   : > { %v461_v40 = vmul.f32 %v457_v36, %v457_v36  ;;  %v462_v41 = vmul.f32 %v458_v37, %v458_v37  ;;  %v463_v42 = vmul.f32 %v459_v38, %v459_v38  ;;  %v464_v44 = vmul.f32 %v460_v39, %v460_v39 }
 0x18b   : > { %v469_v43 = vadd.f32 %v462_v41, %v461_v40 }
 0x18d   : > { %v470_v45 = vadd.f32 %v469_v43, %v463_v42 }
 0x18f   : > { %v471_v46 = vadd.f32 %v470_v45, %v464_v44 }
 0x191   : > { %472 = vadd.xlane.f32.xlu1 %v471_v46 }
 0x21e   : > { %v473_v47 = vpop.xlane.xlu1 %472 }
 0x21f   : > { %v474_v48 = vmul.f32 0.001953125, %v473_v47 }
 0x221   : > { %v475_v49 = vadd.f32 1e-05, %v474_v48 }
 0x223   : > { %671 = vrsqrt.f32 %v475_v49 }
 0x22d   : > { %v672_v50 = vpop.eup %671 }
 0x22e   : > { %v477_v51 = vmul.f32 %v672_v50, %v457_v36  ;;  %v478_v52 = vmul.f32 %v672_v50, %v458_v37  ;;  %v479_v53 = vmul.f32 %v672_v50, %v459_v38  ;;  %v480_v54 = vmul.f32 %v672_v50, %v460_v39 }
 0x230   : > { %vm481_vm3 = vcmp.ge.f32.partialorder %v477_v51, 0.0  ;;  %vm482_vm4 = vcmp.ge.f32.partialorder %v478_v52, 0.0  ;;  %vm483_vm5 = vcmp.ge.f32.partialorder %v479_v53, 0.0  ;;  %vm484_vm6 = vcmp.ge.f32.partialorder %v480_v54, 0.0 }
 0x231   : > { %v485_v55 = vmul.f32 0.01, %v477_v51  ;;  %v486_v56 = vmul.f32 0.01, %v478_v52  ;;  %v487_v57 = vmul.f32 0.01, %v479_v53 }
 0x232   : > { %v488_v58 = vmul.f32 0.01, %v480_v54 }
 0x233   : > { %v489_v59 = vsel %vm481_vm3, %v477_v51, %v485_v55  ;;  %v490_v60 = vsel %vm482_vm4, %v478_v52, %v486_v56  ;;  %v491_v61 = vsel %vm483_vm5, %v479_v53, %v487_v57 }
 0x234   : > { %v492_v62 = vsel %vm484_vm6, %v480_v54, %v488_v58  ;;  %493 = vst [vmem:[%s251_s27] sm:$0xff] %v489_v59  ;;  %494 = vst [vmem:[%s251_s27 + $0x8] sm:$0xff] %v490_v60 }
 0x235   : > { %495 = vst [vmem:[%s251_s27 + $0x10] sm:$0xff] %v491_v61  ;;  %496 = vst [vmem:[%s251_s27 + $0x18] sm:$0xff] %v492_v62 }
 0x236 PF: > { %s13_s14 = sadd.s32 1, %s695_s14   ;;  %s766_s12 = smov %s691_s13 }
 0x237   : > { %p10_p5 = scmp.ge.s32.totalorder %s13_s14, 4   ;;  %s767_s13 = smov %s769_s15 }
 0x239   :  { %12 = sbr.rel (!%p10_p5) target bundleno = 2 (0x2), region = 73 }

// kernel: unet3d_forward.27
= control target key start
LH: loop header
LB: loop body
LE: loop exit
PB: predicated region body
PF: predicated region fallthrough
CT: control target
= control target key end

     0   :  { %s750_s12 = smov 0   ;;  %s752_s13 = smov 0   ;;  %s793_s0 = inlined_call_operand.vmem [shape: bf16[8,72], index: 0, kind: input, shape index: {}]   ;;  %s794_s1 = inlined_call_operand.vmem [shape: bf16[2,72,512], index: 1, kind: input, shape index: {}]   ;;  %s795_s2 = inlined_call_operand.vmem [shape: f32[8,1], index: 2, kind: input, shape index: {}]   ;;  %s796_s3 = inlined_call_operand.vmem [shape: f32[2,8,512], index: 3, kind: output, shape index: {}]  }
   0x1   :  { %s754_s14 = smov 0  }
   0x2 LB: > { %s32_s15 = sadd.s32 1, %s723_s13  ;;  %p619_p0 = scmp.ge.s32.totalorder %s727_s14, 1  ;;  %s727_s14 = sphi %s754_s14, %s13_s14   ;;  %s723_s13 = sphi %s752_s13, %s798_s13   ;;  %s719_s12 = sphi %s750_s12, %s797_s12  }
   0x3   : > { %p34_p1 = scmp.ge.s32.totalorder %s32_s15, 2  ;;  %p182_p2 = scmp.lt.s32.totalorder %s727_s14, 3 }
   0x5   : > { %s800_s15 = smov (%p34_p1, %s32_s15), 0  ;;  %p183_p3 = pnand %p619_p0, %p182_p2 }
   0x6   : > { %p229_p4 = scmp.lt.s32.totalorder (!%p183_p3), %s719_s12, 1  ;;  %v729_v0 = vmov (!%p183_p3), 0   ;;  %v489_v1 = vld [vmem:[%s795_s2] sm:$0xff] (!%p183_p3)  ;;  %vm379_vm0 = vcmask (!%p183_p3), 1043456   ;;  %vm375_vm1 = vcmask (!%p183_p3), 588800  }
   0x7   : > { %186 = sbr.rel (%p183_p3) target bundleno = 255 (0xff), region = 32  ;;  %424 = vmatprep.mubr.bf16.mxu0 (!%p183_p3), %v729_v0  ;;  %465 = vmatprep.mubr.bf16.mxu1 (!%p183_p3), %v729_v0  ;;  %v266_v26 = vld [vmem:[%s793_s0] sm:$0xf] (!%p183_p3) }
   0x8   : > { %676 = vset.pattern.permute.xlu0 (!%p183_p3), %v729_v0 }
   0x9   : > { %492 = vperm.xlu0 (!%p183_p3), %676, %v489_v1  }
   0xe   : > { %s802_s12 = smov (!%p229_p4, %s719_s12), 1 }
   0xf   : > { %s650_s18 = smul.u32 144, %s802_s12  ;;  %s649_s24 = sshll.u32 %s802_s12, 5 }
  0x10   : > { %s251_s27 = scalar_lea.vmem %s796_s3, %s649_s24 }
  0x11   : > { %s240_s21 = scalar_lea.vmem %s794_s1, %s650_s18 }
  0x12   : > { %v677_v2 = vld [vmem:[%s240_s21 + $0x4] ss:$16 sps:$4 sm:$0xff]   ;;  %v679_v3 = vld [vmem:[%s240_s21 + $0xc] ss:$16 sps:$4 sm:$0xff]   ;;  %v681_v4 = vld [vmem:[%s240_s21] ss:$16 sps:$4 sm:$0xff]  }
  0x13   : > { %392 = vmatprep.subr.bf16.mxu0 %v677_v2  ;;  %v682_v5 = vld [vmem:[%s240_s21 + $0x8] ss:$16 sps:$4 sm:$0xff]   ;;  %433 = vmatprep.subr.bf16.mxu1 %v679_v3  ;;  %v683_v6 = vld [vmem:[%s240_s21 + $0x24] ss:$16 sps:$4 sm:$0xff]   ;;  %v685_v7 = vld [vmem:[%s240_s21 + $0x2c] ss:$16 sps:$4 sm:$0xff]  }
  0x14   : > { %393 = vmatpush1.bf16.msra.mxu0 %v681_v4  ;;  %434 = vmatpush1.bf16.msra.mxu1 %v682_v5  ;;  %v687_v8 = vld [vmem:[%s240_s21 + $0x20] ss:$16 sps:$4 sm:$0xff]   ;;  %v688_v9 = vld [vmem:[%s240_s21 + $0x28] ss:$16 sps:$4 sm:$0xff]   ;;  %v689_v10 = vld [vmem:[%s240_s21 + $0x44] ss:$16 sps:$4 sm:$0xff]  }
  0x15   : > { %394 = vmatprep.subr.bf16.mxu0 %v683_v6  ;;  %435 = vmatprep.subr.bf16.mxu1 %v685_v7  ;;  %v691_v11 = vld [vmem:[%s240_s21 + $0x4c] ss:$16 sps:$4 sm:$0xff]   ;;  %v693_v12 = vld [vmem:[%s240_s21 + $0x40] ss:$16 sps:$4 sm:$0xff]   ;;  %v694_v13 = vld [vmem:[%s240_s21 + $0x48] ss:$16 sps:$4 sm:$0xff]  }
  0x16   : > { %v695_v14 = vld [vmem:[%s240_s21 + $0x64] ss:$16 sps:$4 sm:$0xff]   ;;  %v697_v15 = vld [vmem:[%s240_s21 + $0x6c] ss:$16 sps:$4 sm:$0xff]   ;;  %v699_v18 = vld [vmem:[%s240_s21 + $0x60] ss:$16 sps:$4 sm:$0xff]  }
  0x17   : > { %v283_v16 = vld [vmem:[%s240_s21 + $0x80] sm:$0xff]  ;;  %v284_v17 = vld [vmem:[%s240_s21 + $0x88] sm:$0xff] }
  0x18   : > { %395 = vmatpush1.bf16.msra.mxu0 %v687_v8  ;;  %436 = vmatpush1.bf16.msra.mxu1 %v688_v9  ;;  %v700_v19 = vld [vmem:[%s240_s21 + $0x68] ss:$16 sps:$4 sm:$0xff]   ;;  %v640_v20 = vcombine.high %v283_v16, %v283_v16  ;;  %v642_v21 = vcombine.high %v284_v17, %v284_v17  ;;  %v639_v22 = vcombine.low %v283_v16, %v283_v16 }
  0x19   : > { %396 = vmatprep.subr.bf16.mxu0 %v689_v10  ;;  %437 = vmatprep.subr.bf16.mxu1 %v691_v11  ;;  %v641_v23 = vcombine.low %v284_v17, %v284_v17 }
  0x1a   : > { %v381_v24 = vsel %vm379_vm0, %v639_v22, 0 }
  0x1b   : > { %v387_v25 = vsel %vm379_vm0, %v641_v23, 0 }
  0x1c   : > { %397 = vmatpush1.bf16.msra.mxu0 %v693_v12  ;;  %438 = vmatpush1.bf16.msra.mxu1 %v694_v13 }
  0x1d   : > { %398 = vmatprep.subr.bf16.mxu0 %v695_v14  ;;  %439 = vmatprep.subr.bf16.mxu1 %v697_v15 }
  0x20   : > { %399 = vmatpush1.bf16.msra.mxu0 %v699_v18  ;;  %440 = vmatpush1.bf16.msra.mxu1 %v700_v19 }
  0x21   : > { %643 = vmatprep.subr.msk.bf16.mxu0 %vm379_vm0, %v640_v20  ;;  %645 = vmatprep.subr.msk.bf16.mxu1 %vm379_vm0, %v642_v21 }
  0x24   : > { %401 = vmatpush1.bf16.msra.mxu0 %v381_v24  ;;  %442 = vmatpush1.bf16.msra.mxu1 %v387_v25 }
  0x27   : > { %644 = vmatmul.mubr.msk.bf16.vlgmr.msra.gmra.mrb[0].mxu0 %vm375_vm1, %v266_v26  ;;  %646 = vmatmul.mubr.msk.bf16.vlgmr.msra.gmra.mrb[0].mxu1 %vm375_vm1, %v266_v26 }
  0x88   : > { %v493_v27 = vpop.permute.xlu0 %492 }
  0xfa   : > { %v426_v28 = vpop.f32.mrb[0].mxu0  ;;  %v467_v29 = vpop.f32.mrb[0].mxu1 }
  0xfb   : > { %v495_v30 = vadd.f32 %v493_v27, %v426_v28  ;;  %v497_v31 = vadd.f32 %v493_v27, %v467_v29  ;;  %v428_v32 = vpop.f32.mrb[1].mxu0  ;;  %v469_v33 = vpop.f32.mrb[1].mxu1 }
  0xfc   : > { %v496_v34 = vadd.f32 %v493_v27, %v428_v32  ;;  %v498_v35 = vadd.f32 %v493_v27, %v469_v33  ;;  %v430_v36 = vpop.f32.mrb[2].mxu0  ;;  %v471_v37 = vpop.f32.mrb[2].mxu1 }
  0xfd   : > { %499 = vst [vmem:[%s251_s27] sm:$0xff] %v495_v30  ;;  %501 = vst [vmem:[%s251_s27 + $0x10] sm:$0xff] %v497_v31  ;;  %v431_v38 = vpop.f32.mrb[3].mxu0  ;;  %v472_v39 = vpop.f32.mrb[3].mxu1 }
  0xfe   : > { %500 = vst [vmem:[%s251_s27 + $0x8] sm:$0xff] %v496_v34  ;;  %502 = vst [vmem:[%s251_s27 + $0x18] sm:$0xff] %v498_v35 }
  0xff PF: > { %s13_s14 = sadd.s32 1, %s727_s14   ;;  %s797_s12 = smov %s723_s13 }
 0x100   : > { %p10_p5 = scmp.ge.s32.totalorder %s13_s14, 4   ;;  %s798_s13 = smov %s800_s15 }
 0x102   :  { %12 = sbr.rel (!%p10_p5) target bundleno = 2 (0x2), region = 73 }

// kernel: unet3d_forward.28
= control target key start
LH: loop header
LB: loop body
LE: loop exit
PB: predicated region body
PF: predicated region fallthrough
CT: control target
= control target key end

     0   :  { %s705_s12 = smov 0   ;;  %s707_s13 = smov 0   ;;  %s748_s0 = inlined_call_operand.vmem [shape: bf16[8,24], index: 0, kind: input, shape index: {}]   ;;  %s749_s1 = inlined_call_operand.vmem [shape: bf16[2,24,512], index: 1, kind: input, shape index: {}]   ;;  %s750_s2 = inlined_call_operand.vmem [shape: f32[8,1], index: 2, kind: input, shape index: {}]   ;;  %s751_s3 = inlined_call_operand.vmem [shape: f32[2,8,512], index: 3, kind: output, shape index: {}]  }
   0x1   :  { %s709_s14 = smov 0  }
   0x2 LB: > { %s32_s15 = sadd.s32 1, %s678_s13  ;;  %p602_p0 = scmp.ge.s32.totalorder %s682_s14, 1  ;;  %s682_s14 = sphi %s709_s14, %s13_s14   ;;  %s678_s13 = sphi %s707_s13, %s753_s13   ;;  %s674_s12 = sphi %s705_s12, %s752_s12  }
   0x3   : > { %p34_p1 = scmp.ge.s32.totalorder %s32_s15, 2  ;;  %p182_p2 = scmp.lt.s32.totalorder %s682_s14, 3 }
   0x5   : > { %s755_s15 = smov (%p34_p1, %s32_s15), 0  ;;  %p183_p3 = pnand %p602_p0, %p182_p2 }
   0x6   : > { %p229_p4 = scmp.lt.s32.totalorder (!%p183_p3), %s674_s12, 1  ;;  %v684_v0 = vmov (!%p183_p3), 0   ;;  %v417_v1 = vld [vmem:[%s750_s2] sm:$0xff] (!%p183_p3)  ;;  %vm307_vm0 = vcmask (!%p183_p3), 1043456   ;;  %vm303_vm1 = vcmask (!%p183_p3), 195584  }
   0x7   : > { %186 = sbr.rel (%p183_p3) target bundleno = 567 (0x237), region = 32  ;;  %352 = vmatprep.mubr.bf16.mxu0 (!%p183_p3), %v684_v0  ;;  %393 = vmatprep.mubr.bf16.mxu1 (!%p183_p3), %v684_v0  ;;  %v266_v14 = vld [vmem:[%s748_s0] sm:$0xf] (!%p183_p3) }
   0x8   : > { %647 = vset.pattern.permute.xlu0 (!%p183_p3), %v684_v0 }
   0x9   : > { %420 = vperm.xlu0 (!%p183_p3), %647, %v417_v1  }
   0xe   : > { %s757_s12 = smov (!%p229_p4, %s674_s12), 1 }
   0xf   : > { %s621_s18 = smul.u32 48, %s757_s12  ;;  %s620_s24 = sshll.u32 %s757_s12, 5 }
  0x10   : > { %s251_s27 = scalar_lea.vmem %s751_s3, %s620_s24 }
  0x11   : > { %s240_s21 = scalar_lea.vmem %s749_s1, %s621_s18 }
  0x12   : > { %v648_v2 = vld [vmem:[%s240_s21 + $0x4] ss:$16 sps:$4 sm:$0xff]   ;;  %v650_v3 = vld [vmem:[%s240_s21 + $0xc] ss:$16 sps:$4 sm:$0xff]   ;;  %v652_v4 = vld [vmem:[%s240_s21] ss:$16 sps:$4 sm:$0xff]  }
  0x13   : > { %320 = vmatprep.subr.bf16.mxu0 %v648_v2  ;;  %v653_v5 = vld [vmem:[%s240_s21 + $0x8] ss:$16 sps:$4 sm:$0xff]   ;;  %v271_v6 = vld [vmem:[%s240_s21 + $0x20] sm:$0xff]  ;;  %361 = vmatprep.subr.bf16.mxu1 %v650_v3 }
  0x14   : > { %v611_v7 = vcombine.high %v271_v6, %v271_v6  ;;  %v272_v8 = vld [vmem:[%s240_s21 + $0x28] sm:$0xff]  ;;  %v610_v9 = vcombine.low %v271_v6, %v271_v6  ;;  %321 = vmatpush1.bf16.msra.mxu0 %v652_v4  ;;  %362 = vmatpush1.bf16.msra.mxu1 %v653_v5 }
  0x15   : > { %v613_v10 = vcombine.high %v272_v8, %v272_v8  ;;  %v612_v11 = vcombine.low %v272_v8, %v272_v8 }
  0x16   : > { %614 = vmatprep.subr.msk.bf16.mxu0 %vm307_vm0, %v611_v7  ;;  %v309_v12 = vsel %vm307_vm0, %v610_v9, 0 }
  0x17   : > { %616 = vmatprep.subr.msk.bf16.mxu1 %vm307_vm0, %v613_v10  ;;  %v315_v13 = vsel %vm307_vm0, %v612_v11, 0 }
  0x18   : > { %323 = vmatpush1.bf16.msra.mxu0 %v309_v12  ;;  %364 = vmatpush1.bf16.msra.mxu1 %v315_v13 }
  0x1b   : > { %615 = vmatmul.mubr.msk.bf16.vlgmr.msra.gmra.mrb[0].mxu0 %vm303_vm1, %v266_v14  ;;  %617 = vmatmul.mubr.msk.bf16.vlgmr.msra.gmra.mrb[0].mxu1 %vm303_vm1, %v266_v14 }
  0x88   : > { %v421_v15 = vpop.permute.xlu0 %420 }
  0xee   : > { %v354_v16 = vpop.f32.mrb[0].mxu0  ;;  %v395_v17 = vpop.f32.mrb[0].mxu1 }
  0xef   : > { %v423_v18 = vadd.f32 %v421_v15, %v354_v16  ;;  %v356_v19 = vpop.f32.mrb[1].mxu0  ;;  %v397_v20 = vpop.f32.mrb[1].mxu1  ;;  %v425_v26 = vadd.f32 %v421_v15, %v395_v17 }
  0xf0   : > { %v424_v21 = vadd.f32 %v421_v15, %v356_v19  ;;  %v358_v22 = vpop.f32.mrb[2].mxu0  ;;  %v399_v23 = vpop.f32.mrb[2].mxu1  ;;  %v426_v28 = vadd.f32 %v421_v15, %v397_v20 }
  0xf1   : > { %v359_v24 = vpop.f32.mrb[3].mxu0  ;;  %v400_v25 = vpop.f32.mrb[3].mxu1 }
  0xf2   : > { %v440_v27 = vadd.f32 %v424_v21, %v423_v18 }
  0xf4   : > { %v441_v29 = vadd.f32 %v440_v27, %v425_v26 }
  0xf6   : > { %v442_v30 = vadd.f32 %v441_v29, %v426_v28 }
  0xf8   : > { %443 = vadd.xlane.f32.xlu0 %v442_v30 }
 0x185   : > { %v444_v31 = vpop.xlane.xlu0 %443 }
 0x186   : > { %v445_v32 = vmul.f32 0.001953125, %v444_v31 }
 0x188   : > { %v446_v33 = vsub.f32 %v423_v18, %v445_v32  ;;  %v447_v34 = vsub.f32 %v424_v21, %v445_v32  ;;  %v448_v35 = vsub.f32 %v425_v26, %v445_v32  ;;  %v449_v36 = vsub.f32 %v426_v28, %v445_v32 }
 0x18a   : > { %v450_v37 = vmul.f32 %v446_v33, %v446_v33  ;;  %v451_v38 = vmul.f32 %v447_v34, %v447_v34  ;;  %v452_v39 = vmul.f32 %v448_v35, %v448_v35  ;;  %v453_v41 = vmul.f32 %v449_v36, %v449_v36 }
 0x18c   : > { %v458_v40 = vadd.f32 %v451_v38, %v450_v37 }
 0x18e   : > { %v459_v42 = vadd.f32 %v458_v40, %v452_v39 }
 0x190   : > { %v460_v43 = vadd.f32 %v459_v42, %v453_v41 }
 0x192   : > { %461 = vadd.xlane.f32.xlu1 %v460_v43 }
 0x21f   : > { %v462_v44 = vpop.xlane.xlu1 %461 }
 0x220   : > { %v463_v45 = vmul.f32 0.001953125, %v462_v44 }
 0x222   : > { %v464_v46 = vadd.f32 1e-05, %v463_v45 }
 0x224   : > { %658 = vrsqrt.f32 %v464_v46 }
 0x22e   : > { %v659_v47 = vpop.eup %658 }
 0x22f   : > { %v466_v48 = vmul.f32 %v659_v47, %v446_v33  ;;  %v467_v49 = vmul.f32 %v659_v47, %v447_v34  ;;  %v468_v50 = vmul.f32 %v659_v47, %v448_v35  ;;  %v469_v51 = vmul.f32 %v659_v47, %v449_v36 }
 0x231   : > { %vm470_vm2 = vcmp.ge.f32.partialorder %v466_v48, 0.0  ;;  %vm471_vm3 = vcmp.ge.f32.partialorder %v467_v49, 0.0  ;;  %vm472_vm4 = vcmp.ge.f32.partialorder %v468_v50, 0.0  ;;  %vm473_vm5 = vcmp.ge.f32.partialorder %v469_v51, 0.0 }
 0x232   : > { %v474_v52 = vmul.f32 0.01, %v466_v48  ;;  %v475_v53 = vmul.f32 0.01, %v467_v49  ;;  %v476_v54 = vmul.f32 0.01, %v468_v50 }
 0x233   : > { %v477_v55 = vmul.f32 0.01, %v469_v51 }
 0x234   : > { %v478_v56 = vsel %vm470_vm2, %v466_v48, %v474_v52  ;;  %v479_v57 = vsel %vm471_vm3, %v467_v49, %v475_v53  ;;  %v480_v58 = vsel %vm472_vm4, %v468_v50, %v476_v54 }
 0x235   : > { %v481_v59 = vsel %vm473_vm5, %v469_v51, %v477_v55  ;;  %482 = vst [vmem:[%s251_s27] sm:$0xff] %v478_v56  ;;  %483 = vst [vmem:[%s251_s27 + $0x8] sm:$0xff] %v479_v57 }
 0x236   : > { %484 = vst [vmem:[%s251_s27 + $0x10] sm:$0xff] %v480_v58  ;;  %485 = vst [vmem:[%s251_s27 + $0x18] sm:$0xff] %v481_v59 }
 0x237 PF: > { %s13_s14 = sadd.s32 1, %s682_s14   ;;  %s752_s12 = smov %s678_s13 }
 0x238   : > { %p10_p5 = scmp.ge.s32.totalorder %s13_s14, 4   ;;  %s753_s13 = smov %s755_s15 }
 0x23a   :  { %12 = sbr.rel (!%p10_p5) target bundleno = 2 (0x2), region = 73 }

// kernel: unet3d_forward.31
= control target key start
LH: loop header
LB: loop body
LE: loop exit
PB: predicated region body
PF: predicated region fallthrough
CT: control target
= control target key end

     0   :  { %s711_s12 = smov 0   ;;  %s713_s13 = smov 0   ;;  %s780_s0 = inlined_call_operand.vmem [shape: bf16[16,216], index: 0, kind: input, shape index: {}]   ;;  %s781_s1 = inlined_call_operand.vmem [shape: bf16[2,216,128], index: 1, kind: input, shape index: {}]   ;;  %s782_s2 = inlined_call_operand.vmem [shape: f32[16,1], index: 2, kind: input, shape index: {}]   ;;  %s783_s3 = inlined_call_operand.vmem [shape: f32[2,16,128], index: 3, kind: output, shape index: {}]  }
   0x1   :  { %s715_s14 = smov 0  }
   0x2 LB: > { %s32_s15 = sadd.s32 1, %s684_s13  ;;  %p594_p0 = scmp.ge.s32.totalorder %s688_s14, 1  ;;  %s688_s14 = sphi %s715_s14, %s13_s14   ;;  %s684_s13 = sphi %s713_s13, %s785_s13   ;;  %s680_s12 = sphi %s711_s12, %s784_s12  }
   0x3   : > { %p34_p1 = scmp.ge.s32.totalorder %s32_s15, 2  ;;  %p181_p2 = scmp.lt.s32.totalorder %s688_s14, 3 }
   0x5   : > { %s787_s15 = smov (%p34_p1, %s32_s15), 0  ;;  %p182_p3 = pnand %p594_p0, %p181_p2 }
   0x6   : > { %p227_p4 = scmp.lt.s32.totalorder (!%p182_p3), %s680_s12, 1  ;;  %vm375_vm0 = vcmask (!%p182_p3), 719872   ;;  %v690_v0 = vmov (!%p182_p3), 0   ;;  %v661_v1 = vld [vmem:[%s780_s0 + $0x4] ss:$8 sps:$4 sm:$0xff] (!%p182_p3)   ;;  %vm379_vm1 = vcmask (!%p182_p3), 1043456   ;;  %v447_v20 = vlaneseq (!%p182_p3) }
   0x7   : > { %185 = sbr.rel (%p182_p3) target bundleno = 605 (0x25d), region = 32  ;;  %383 = vmatprep.subr.bf16.mxu0 (!%p182_p3), %v690_v0  ;;  %644 = vset.pattern.permute.xlu0 (!%p182_p3), %v690_v0  ;;  %v433_v2 = vld [vmem:[%s782_s2] sm:$0xff] (!%p182_p3)  ;;  %v434_v3 = vld [vmem:[%s782_s2 + $0x8] sm:$0xff] (!%p182_p3) }
   0x8   : > { %437 = vperm.xlu0 (!%p182_p3), %644, %v433_v2   ;;  %614 = vmatprep.mubr.msk.bf16.mxu0 (!%p182_p3), %vm375_vm0, %v661_v1  ;;  %v659_v19 = vld [vmem:[%s780_s0] ss:$8 sps:$4 sm:$0xff] (!%p182_p3)   ;;  %v448_v22 = vand.u32 (!%p182_p3), 127, %v447_v20 }
   0xa   : > { %vm449_vm2 = vcmp.lt.s32.totalorder (!%p182_p3), %v448_v22, 64 }
   0xc   : > { %442 = vperm.xlu0 (!%p182_p3), %644, %v434_v3  }
   0xe   : > { %s789_s12 = smov (!%p227_p4, %s680_s12), 1 }
   0xf   : > { %s618_s22 = smul.u32 108, %s789_s12  ;;  %s617_s28 = sshll.u32 %s789_s12, 4 }
  0x10   : > { %s246_s4 = scalar_lea.vmem %s783_s3, %s617_s28 }
  0x11   : > { %s744_s25 = scalar_lea.vmem %s781_s1, %s618_s22 }
  0x12   : > { %v645_v4 = vld [vmem:[%s744_s25] sm:$0xff]   ;;  %v646_v5 = vld [vmem:[%s744_s25 + $0x8] sm:$0xff]   ;;  %v647_v6 = vld [vmem:[%s744_s25 + $0x10] sm:$0xff]  }
  0x13   : > { %384 = vmatpush1.bf16.msra.mxu0 %v645_v4  ;;  %v648_v7 = vld [vmem:[%s744_s25 + $0x18] sm:$0xff]   ;;  %v649_v8 = vld [vmem:[%s744_s25 + $0x20] sm:$0xff]   ;;  %v650_v9 = vld [vmem:[%s744_s25 + $0x28] sm:$0xff]  }
  0x14   : > { %385 = vmatprep.subr.bf16.mxu0 %v690_v0  ;;  %v651_v10 = vld [vmem:[%s744_s25 + $0x30] sm:$0xff]   ;;  %v652_v11 = vld [vmem:[%s744_s25 + $0x38] sm:$0xff]   ;;  %v653_v12 = vld [vmem:[%s744_s25 + $0x40] sm:$0xff]  }
  0x15   : > { %v654_v13 = vld [vmem:[%s744_s25 + $0x48] sm:$0xff]   ;;  %v655_v14 = vld [vmem:[%s744_s25 + $0x50] sm:$0xff]   ;;  %v656_v15 = vld [vmem:[%s744_s25 + $0x58] sm:$0xff]  }
  0x16   : > { %v657_v16 = vld [vmem:[%s744_s25 + $0x60] sm:$0xff]   ;;  %v658_v17 = vld [vmem:[%s744_s25 + $0x68] ss:$0 sps:$4 sm:$0xff]  }
  0x17   : > { %386 = vmatpush1.bf16.msra.mxu0 %v646_v5  ;;  %v381_v18 = vsel %vm379_vm1, %v658_v17, 0 }
  0x18   : > { %387 = vmatprep.subr.bf16.mxu0 %v690_v0 }
  0x1b   : > { %388 = vmatpush1.bf16.msra.mxu0 %v647_v6 }
  0x1c   : > { %389 = vmatprep.subr.bf16.mxu0 %v690_v0 }
  0x1f   : > { %390 = vmatpush1.bf16.msra.mxu0 %v648_v7 }
  0x20   : > { %391 = vmatprep.subr.bf16.mxu0 %v690_v0 }
  0x23   : > { %392 = vmatpush1.bf16.msra.mxu0 %v649_v8 }
  0x24   : > { %393 = vmatprep.subr.bf16.mxu0 %v690_v0 }
  0x27   : > { %394 = vmatpush1.bf16.msra.mxu0 %v650_v9 }
  0x28   : > { %395 = vmatprep.subr.bf16.mxu0 %v690_v0 }
  0x2b   : > { %396 = vmatpush1.bf16.msra.mxu0 %v651_v10 }
  0x2c   : > { %397 = vmatprep.subr.bf16.mxu0 %v690_v0 }
  0x2f   : > { %398 = vmatpush1.bf16.msra.mxu0 %v652_v11 }
  0x30   : > { %399 = vmatprep.subr.bf16.mxu0 %v690_v0 }
  0x33   : > { %400 = vmatpush1.bf16.msra.mxu0 %v653_v12 }
  0x34   : > { %401 = vmatprep.subr.bf16.mxu0 %v690_v0 }
  0x37   : > { %402 = vmatpush1.bf16.msra.mxu0 %v654_v13 }
  0x38   : > { %403 = vmatprep.subr.bf16.mxu0 %v690_v0 }
  0x3b   : > { %404 = vmatpush1.bf16.msra.mxu0 %v655_v14 }
  0x3c   : > { %405 = vmatprep.subr.bf16.mxu0 %v690_v0 }
  0x3f   : > { %406 = vmatpush1.bf16.msra.mxu0 %v656_v15 }
  0x40   : > { %407 = vmatprep.subr.bf16.mxu0 %v690_v0 }
  0x43   : > { %408 = vmatpush1.bf16.msra.mxu0 %v657_v16 }
  0x44   : > { %409 = vmatprep.subr.bf16.mxu0 %v690_v0 }
  0x47   : > { %410 = vmatpush1.bf16.msra.mxu0 %v381_v18 }
  0x4a   : > { %416 = vmatmul.mubr.bf16.vlgmr.msra.gmra.mrb[0].mxu0 %v659_v19 }
  0x87   : > { %v438_v21 = vpop.permute.xlu0 %437 }
  0x8b   : > { %v443_v26 = vpop.permute.xlu0 %442 }
 0x11d   : > { %v417_v23 = vpop.f32.mrb[0].mxu0 }
 0x11e   : > { %v445_v24 = vadd.f32 %v438_v21, %v417_v23  ;;  %v419_v25 = vpop.f32.mrb[1].mxu0 }
 0x11f   : > { %v420_v27 = vpop.f32.mrb[2].mxu0 }
 0x120   : > { %v446_v28 = vadd.f32 %v443_v26, %v420_v27  ;;  %v422_v29 = vpop.f32.mrb[3].mxu0  ;;  %v450_v30 = vsel %vm449_vm2, %v445_v24, 0.0 }
 0x121   : > { %452 = vadd.xlane.f32.xlu1 %v450_v30 }
 0x122   : > { %v451_v31 = vsel %vm449_vm2, %v446_v28, 0.0 }
 0x125   : > { %454 = vadd.xlane.f32.xlu1 %v451_v31 }
 0x1ae   : > { %v453_v32 = vpop.xlane.xlu1 %452 }
 0x1af   : > { %v456_v33 = vmul.f32 0.015625, %v453_v32 }
 0x1b1   : > { %v458_v34 = vsub.f32 %v445_v24, %v456_v33 }
 0x1b2   : > { %v455_v35 = vpop.xlane.xlu1 %454 }
 0x1b3   : > { %v457_v36 = vmul.f32 0.015625, %v455_v35  ;;  %v460_v37 = vmul.f32 %v458_v34, %v458_v34 }
 0x1b5   : > { %v459_v38 = vsub.f32 %v446_v28, %v457_v36  ;;  %v462_v39 = vsel %vm449_vm2, %v460_v37, 0.0 }
 0x1b6   : > { %464 = vadd.xlane.f32.xlu0 %v462_v39 }
 0x1b7   : > { %v461_v40 = vmul.f32 %v459_v38, %v459_v38 }
 0x1b9   : > { %v463_v41 = vsel %vm449_vm2, %v461_v40, 0.0 }
 0x1ba   : > { %466 = vadd.xlane.f32.xlu1 %v463_v41 }
 0x243   : > { %v465_v42 = vpop.xlane.xlu0 %464 }
 0x244   : > { %v468_v43 = vmul.f32 0.015625, %v465_v42 }
 0x246   : > { %v470_v44 = vadd.f32 1e-05, %v468_v43 }
 0x247   : > { %v467_v45 = vpop.xlane.xlu1 %466 }
 0x248   : > { %662 = vrsqrt.f32 %v470_v44  ;;  %v469_v46 = vmul.f32 0.015625, %v467_v45 }
 0x24a   : > { %v471_v47 = vadd.f32 1e-05, %v469_v46 }
 0x24c   : > { %664 = vrsqrt.f32 %v471_v47 }
 0x252   : > { %v663_v48 = vpop.eup %662 }
 0x253   : > { %v474_v49 = vmul.f32 %v663_v48, %v458_v34 }
 0x255   : > { %vm476_vm3 = vcmp.ge.f32.partialorder %v474_v49, 0.0  ;;  %v478_v50 = vmul.f32 0.01, %v474_v49 }
 0x256   : > { %v665_v51 = vpop.eup %664 }
 0x257   : > { %v480_v52 = vsel %vm476_vm3, %v474_v49, %v478_v50  ;;  %v475_v53 = vmul.f32 %v665_v51, %v459_v38 }
 0x258   : > { %482 = vst [vmem:[%s246_s4] sm:$0xff] %v480_v52 }
 0x259   : > { %vm477_vm4 = vcmp.ge.f32.partialorder %v475_v53, 0.0  ;;  %v479_v54 = vmul.f32 0.01, %v475_v53 }
 0x25b   : > { %v481_v55 = vsel %vm477_vm4, %v475_v53, %v479_v54 }
 0x25c   : > { %483 = vst [vmem:[%s246_s4 + $0x8] sm:$0xff] %v481_v55 }
 0x25d PF: > { %s13_s14 = sadd.s32 1, %s688_s14   ;;  %s784_s12 = smov %s684_s13 }
 0x25e   : > { %p10_p5 = scmp.ge.s32.totalorder %s13_s14, 4   ;;  %s785_s13 = smov %s787_s15 }
 0x260   :  { %12 = sbr.rel (!%p10_p5) target bundleno = 2 (0x2), region = 73 }

// kernel: unet3d_forward.32
= control target key start
LH: loop header
LB: loop body
LE: loop exit
PB: predicated region body
PF: predicated region fallthrough
CT: control target
= control target key end

     0   :  { %s622_s12 = smov 0   ;;  %s624_s13 = smov 0   ;;  %s671_s0 = inlined_call_operand.vmem [shape: bf16[16,144], index: 0, kind: input, shape index: {}]   ;;  %s672_s1 = inlined_call_operand.vmem [shape: bf16[2,144,128], index: 1, kind: input, shape index: {}]   ;;  %s673_s2 = inlined_call_operand.vmem [shape: f32[16,1], index: 2, kind: input, shape index: {}]   ;;  %s674_s3 = inlined_call_operand.vmem [shape: f32[2,16,128], index: 3, kind: output, shape index: {}]  }
   0x1   :  { %s626_s14 = smov 0  }
   0x2 LB: > { %s32_s15 = sadd.s32 1, %s595_s13  ;;  %p519_p0 = scmp.ge.s32.totalorder %s599_s14, 1  ;;  %s599_s14 = sphi %s626_s14, %s13_s14   ;;  %s595_s13 = sphi %s624_s13, %s676_s13   ;;  %s591_s12 = sphi %s622_s12, %s675_s12  }
   0x3   : > { %p34_p1 = scmp.ge.s32.totalorder %s32_s15, 2  ;;  %p181_p2 = scmp.lt.s32.totalorder %s599_s14, 3 }
   0x5   : > { %s678_s15 = smov (%p34_p1, %s32_s15), 0  ;;  %p182_p3 = pnand %p519_p0, %p181_p2 }
   0x6   : > { %p227_p4 = scmp.lt.s32.totalorder (!%p182_p3), %s591_s12, 1  ;;  %v601_v0 = vmov (!%p182_p3), 0   ;;  %v576_v1 = vld [vmem:[%s671_s0 + $0x4] ss:$8 sps:$4 sm:$0xff] (!%p182_p3)   ;;  %vm339_vm0 = vcmask (!%p182_p3), 130048  }
   0x7   : > { %185 = sbr.rel (%p182_p3) target bundleno = 271 (0x10f), region = 32  ;;  %343 = vmatprep.subr.bf16.mxu0 (!%p182_p3), %v601_v0  ;;  %564 = vset.pattern.permute.xlu0 (!%p182_p3), %v601_v0  ;;  %v393_v2 = vld [vmem:[%s673_s2] sm:$0xff] (!%p182_p3)  ;;  %v394_v3 = vld [vmem:[%s673_s2 + $0x8] sm:$0xff] (!%p182_p3) }
   0x8   : > { %397 = vperm.xlu0 (!%p182_p3), %564, %v393_v2   ;;  %534 = vmatprep.mubr.msk.bf16.mxu0 (!%p182_p3), %vm339_vm0, %v576_v1  ;;  %v574_v13 = vld [vmem:[%s671_s0] ss:$8 sps:$4 sm:$0xff] (!%p182_p3)  }
   0xc   : > { %402 = vperm.xlu0 (!%p182_p3), %564, %v394_v3  }
   0xe   : > { %s680_s12 = smov (!%p227_p4, %s591_s12), 1 }
   0xf   : > { %s538_s22 = smul.u32 72, %s680_s12  ;;  %s537_s28 = sshll.u32 %s680_s12, 4 }
  0x10   : > { %s246_s4 = scalar_lea.vmem %s674_s3, %s537_s28 }
  0x11   : > { %s237_s25 = scalar_lea.vmem %s672_s1, %s538_s22 }
  0x12   : > { %v565_v4 = vld [vmem:[%s237_s25] sm:$0xff]   ;;  %v566_v5 = vld [vmem:[%s237_s25 + $0x8] sm:$0xff]   ;;  %v567_v6 = vld [vmem:[%s237_s25 + $0x10] sm:$0xff]  }
  0x13   : > { %344 = vmatpush1.bf16.msra.mxu0 %v565_v4  ;;  %v568_v7 = vld [vmem:[%s237_s25 + $0x18] sm:$0xff]   ;;  %v569_v8 = vld [vmem:[%s237_s25 + $0x20] sm:$0xff]   ;;  %v570_v9 = vld [vmem:[%s237_s25 + $0x28] sm:$0xff]  }
  0x14   : > { %345 = vmatprep.subr.bf16.mxu0 %v601_v0  ;;  %v571_v10 = vld [vmem:[%s237_s25 + $0x30] sm:$0xff]   ;;  %v572_v11 = vld [vmem:[%s237_s25 + $0x38] sm:$0xff]   ;;  %v573_v12 = vld [vmem:[%s237_s25 + $0x40] sm:$0xff]  }
  0x17   : > { %346 = vmatpush1.bf16.msra.mxu0 %v566_v5 }
  0x18   : > { %347 = vmatprep.subr.bf16.mxu0 %v601_v0 }
  0x1b   : > { %348 = vmatpush1.bf16.msra.mxu0 %v567_v6 }
  0x1c   : > { %349 = vmatprep.subr.bf16.mxu0 %v601_v0 }
  0x1f   : > { %350 = vmatpush1.bf16.msra.mxu0 %v568_v7 }
  0x20   : > { %351 = vmatprep.subr.bf16.mxu0 %v601_v0 }
  0x23   : > { %352 = vmatpush1.bf16.msra.mxu0 %v569_v8 }
  0x24   : > { %353 = vmatprep.subr.bf16.mxu0 %v601_v0 }
  0x27   : > { %354 = vmatpush1.bf16.msra.mxu0 %v570_v9 }
  0x28   : > { %355 = vmatprep.subr.bf16.mxu0 %v601_v0 }
  0x2b   : > { %356 = vmatpush1.bf16.msra.mxu0 %v571_v10 }
  0x2c   : > { %357 = vmatprep.subr.bf16.mxu0 %v601_v0 }
  0x2f   : > { %358 = vmatpush1.bf16.msra.mxu0 %v572_v11 }
  0x30   : > { %359 = vmatprep.subr.bf16.mxu0 %v601_v0 }
  0x33   : > { %360 = vmatpush1.bf16.msra.mxu0 %v573_v12 }
  0x36   : > { %376 = vmatmul.mubr.bf16.vlgmr.msra.gmra.mrb[0].mxu0 %v574_v13 }
  0x87   : > { %v398_v14 = vpop.permute.xlu0 %397 }
  0x8b   : > { %v403_v18 = vpop.permute.xlu0 %402 }
 0x109   : > { %v377_v15 = vpop.f32.mrb[0].mxu0 }
 0x10a   : > { %v405_v16 = vadd.f32 %v398_v14, %v377_v15  ;;  %v379_v17 = vpop.f32.mrb[1].mxu0 }
 0x10b   : > { %v380_v19 = vpop.f32.mrb[2].mxu0 }
 0x10c   : > { %407 = vst [vmem:[%s246_s4] sm:$0xff] %v405_v16  ;;  %v406_v20 = vadd.f32 %v403_v18, %v380_v19  ;;  %v382_v21 = vpop.f32.mrb[3].mxu0 }
 0x10e   : > { %408 = vst [vmem:[%s246_s4 + $0x8] sm:$0xff] %v406_v20 }
 0x10f PF: > { %s13_s14 = sadd.s32 1, %s599_s14   ;;  %s675_s12 = smov %s595_s13 }
 0x110   : > { %p10_p5 = scmp.ge.s32.totalorder %s13_s14, 4   ;;  %s676_s13 = smov %s678_s15 }
 0x112   :  { %12 = sbr.rel (!%p10_p5) target bundleno = 2 (0x2), region = 73 }

// kernel: unet3d_forward.33
= control target key start
LH: loop header
LB: loop body
LE: loop exit
PB: predicated region body
PF: predicated region fallthrough
CT: control target
= control target key end

     0   :  { %s607_s12 = smov 0   ;;  %s609_s13 = smov 0   ;;  %s657_s0 = inlined_call_operand.vmem [shape: bf16[16,48], index: 0, kind: input, shape index: {}]   ;;  %s658_s1 = inlined_call_operand.vmem [shape: bf16[2,48,128], index: 1, kind: input, shape index: {}]   ;;  %s659_s2 = inlined_call_operand.vmem [shape: f32[16,1], index: 2, kind: input, shape index: {}]   ;;  %s660_s3 = inlined_call_operand.vmem [shape: f32[2,16,128], index: 3, kind: output, shape index: {}]  }
   0x1   :  { %s611_s14 = smov 0  }
   0x2 LB: > { %s32_s15 = sadd.s32 1, %s578_s13  ;;  %p497_p0 = scmp.ge.s32.totalorder %s582_s14, 1  ;;  %s582_s14 = sphi %s611_s14, %s13_s14   ;;  %s578_s13 = sphi %s609_s13, %s662_s13   ;;  %s574_s12 = sphi %s607_s12, %s661_s12  }
   0x3   : > { %p34_p1 = scmp.ge.s32.totalorder %s32_s15, 2  ;;  %p179_p2 = scmp.lt.s32.totalorder %s582_s14, 3 }
   0x5   : > { %s664_s15 = smov (%p34_p1, %s32_s15), 0  ;;  %p180_p3 = pnand %p497_p0, %p179_p2 }
   0x6   : > { %p222_p4 = scmp.lt.s32.totalorder (!%p180_p3), %s574_s12, 1  ;;  %v584_v0 = vmov (!%p180_p3), 0.0   ;;  %vm585_vm0 = vmmov (!%p180_p3), 0   ;;  %v336_v1 = vld [vmem:[%s659_s2] sm:$0xff] (!%p180_p3)  ;;  %v586_v2 = vmov (!%p180_p3), 0   ;;  %v337_v3 = vld [vmem:[%s659_s2 + $0x8] sm:$0xff] (!%p180_p3)  ;;  %v350_v8 = vlaneseq (!%p180_p3) }
   0x7   : > { %183 = sbr.rel (%p180_p3) target bundleno = 561 (0x231), region = 32  ;;  %513 = vmatprep.subr.bf16.mxu0 (!%p180_p3), %v584_v0  ;;  %519 = vmatprep.mubr.msk.bf16.mxu0 (!%p180_p3), %vm585_vm0, %v584_v0  ;;  %v555_v7 = vld [vmem:[%s657_s0] sm:$0xff] (!%p180_p3)   ;;  %vm282_vm1 = vcmask (!%p180_p3), 392192  }
   0x8   : > { %551 = vset.pattern.permute.xlu0 (!%p180_p3), %v586_v2  ;;  %v351_v10 = vand.u32 (!%p180_p3), 127, %v350_v8 }
   0x9   : > { %340 = vperm.xlu0 (!%p180_p3), %551, %v336_v1  }
   0xa   : > { %vm352_vm2 = vcmp.lt.s32.totalorder (!%p180_p3), %v351_v10, 64 }
   0xd   : > { %345 = vperm.xlu0 (!%p180_p3), %551, %v337_v3  }
   0xe   : > { %s666_s12 = smov (!%p222_p4, %s574_s12), 1 }
   0xf   : > { %s523_s18 = smul.u32 24, %s666_s12  ;;  %s508_s26 = sshll.u32 %s666_s12, 4 }
  0x10   : > { %s241_s29 = scalar_lea.vmem %s660_s3, %s508_s26 }
  0x11   : > { %s232_s23 = scalar_lea.vmem %s658_s1, %s523_s18 }
  0x12   : > { %v552_v4 = vld [vmem:[%s232_s23] sm:$0xff]   ;;  %v553_v5 = vld [vmem:[%s232_s23 + $0x8] sm:$0xff]   ;;  %v554_v6 = vld [vmem:[%s232_s23 + $0x10] sm:$0xff]  }
  0x13   : > { %514 = vmatpush3.bf16.msra.mxu0 %v552_v4 }
  0x14   : > { %515 = vmatprep.subr.bf16.mxu0 %v584_v0 }
  0x17   : > { %516 = vmatpush3.bf16.msra.mxu0 %v553_v5 }
  0x18   : > { %517 = vmatprep.subr.bf16.mxu0 %v584_v0 }
  0x1b   : > { %518 = vmatpush3.bf16.msra.mxu0 %v554_v6 }
  0x1e   : > { %520 = vmatmul.mubr.msk.bf16.vlgmr.msra.gmra.mrb[0].mxu0 %vm282_vm1, %v555_v7 }
  0x88   : > { %v341_v9 = vpop.permute.xlu0 %340 }
  0x8c   : > { %v346_v14 = vpop.permute.xlu0 %345 }
  0xf1   : > { %v320_v11 = vpop.f32.mrb[0].mxu0 }
  0xf2   : > { %v348_v12 = vadd.f32 %v341_v9, %v320_v11  ;;  %v521_v13 = vpop.f32.mrb[1].mxu0 }
  0xf3   : > { %v323_v15 = vpop.f32.mrb[2].mxu0 }
  0xf4   : > { %v349_v16 = vadd.f32 %v346_v14, %v323_v15  ;;  %v522_v17 = vpop.f32.mrb[3].mxu0  ;;  %v353_v18 = vsel %vm352_vm2, %v348_v12, 0.0 }
  0xf5   : > { %355 = vadd.xlane.f32.xlu1 %v353_v18 }
  0xf6   : > { %v354_v19 = vsel %vm352_vm2, %v349_v16, 0.0 }
  0xf9   : > { %357 = vadd.xlane.f32.xlu1 %v354_v19 }
 0x182   : > { %v356_v20 = vpop.xlane.xlu1 %355 }
 0x183   : > { %v359_v21 = vmul.f32 0.015625, %v356_v20 }
 0x185   : > { %v361_v22 = vsub.f32 %v348_v12, %v359_v21 }
 0x186   : > { %v358_v23 = vpop.xlane.xlu1 %357 }
 0x187   : > { %v360_v24 = vmul.f32 0.015625, %v358_v23  ;;  %v363_v25 = vmul.f32 %v361_v22, %v361_v22 }
 0x189   : > { %v362_v26 = vsub.f32 %v349_v16, %v360_v24  ;;  %v365_v27 = vsel %vm352_vm2, %v363_v25, 0.0 }
 0x18a   : > { %367 = vadd.xlane.f32.xlu0 %v365_v27 }
 0x18b   : > { %v364_v28 = vmul.f32 %v362_v26, %v362_v26 }
 0x18d   : > { %v366_v29 = vsel %vm352_vm2, %v364_v28, 0.0 }
 0x18e   : > { %369 = vadd.xlane.f32.xlu1 %v366_v29 }
 0x217   : > { %v368_v30 = vpop.xlane.xlu0 %367 }
 0x218   : > { %v371_v31 = vmul.f32 0.015625, %v368_v30 }
 0x21a   : > { %v373_v32 = vadd.f32 1e-05, %v371_v31 }
 0x21b   : > { %v370_v33 = vpop.xlane.xlu1 %369 }
 0x21c   : > { %556 = vrsqrt.f32 %v373_v32  ;;  %v372_v34 = vmul.f32 0.015625, %v370_v33 }
 0x21e   : > { %v374_v35 = vadd.f32 1e-05, %v372_v34 }
 0x220   : > { %558 = vrsqrt.f32 %v374_v35 }
 0x226   : > { %v557_v36 = vpop.eup %556 }
 0x227   : > { %v377_v37 = vmul.f32 %v557_v36, %v361_v22 }
 0x229   : > { %vm379_vm3 = vcmp.ge.f32.partialorder %v377_v37, 0.0  ;;  %v381_v38 = vmul.f32 0.01, %v377_v37 }
 0x22a   : > { %v559_v39 = vpop.eup %558 }
 0x22b   : > { %v383_v40 = vsel %vm379_vm3, %v377_v37, %v381_v38  ;;  %v378_v41 = vmul.f32 %v559_v39, %v362_v26 }
 0x22c   : > { %385 = vst [vmem:[%s241_s29] sm:$0xff] %v383_v40 }
 0x22d   : > { %vm380_vm4 = vcmp.ge.f32.partialorder %v378_v41, 0.0  ;;  %v382_v42 = vmul.f32 0.01, %v378_v41 }
 0x22f   : > { %v384_v43 = vsel %vm380_vm4, %v378_v41, %v382_v42 }
 0x230   : > { %386 = vst [vmem:[%s241_s29 + $0x8] sm:$0xff] %v384_v43 }
 0x231 PF: > { %s13_s14 = sadd.s32 1, %s582_s14   ;;  %s661_s12 = smov %s578_s13 }
 0x232   : > { %p10_p5 = scmp.ge.s32.totalorder %s13_s14, 4   ;;  %s662_s13 = smov %s664_s15 }
 0x234   :  { %12 = sbr.rel (!%p10_p5) target bundleno = 2 (0x2), region = 73 }

// kernel: unet3d_forward.36
= control target key start
LH: loop header
LB: loop body
LE: loop exit
PB: predicated region body
PF: predicated region fallthrough
CT: control target
= control target key end

     0   :  { %s984_s12 = smov 0   ;;  %s986_s13 = smov 0   ;;  %s1126_s0 = inlined_call_operand.vmem [shape: bf16[32,512], index: 0, kind: input, shape index: {}]   ;;  %s1127_s1 = inlined_call_operand.vmem [shape: bf16[2,512,128], index: 1, kind: input, shape index: {}]   ;;  %s1128_s2 = inlined_call_operand.vmem [shape: f32[32,1], index: 2, kind: input, shape index: {}]   ;;  %s1129_s3 = inlined_call_operand.vmem [shape: f32[2,32,128], index: 3, kind: output, shape index: {}]  }
   0x1   :  { %s988_s14 = smov 0   ;;  %s990_s15 = smov 0  }
   0x2   :  { %s992_s16 = smov 0   ;;  %s994_s17 = smov 0  }
   0x3   :  { %s996_s18 = smov 0  }
   0x4 LB: > { %s25_s19 = sadd.s32 1, %s952_s16  ;;  %s32_s20 = sadd.s32 1, %s956_s17  ;;  %s960_s18 = sphi %s996_s18, %s13_s18   ;;  %s956_s17 = sphi %s994_s17, %s1135_s17   ;;  %s952_s16 = sphi %s992_s16, %s1134_s16   ;;  %s948_s15 = sphi %s990_s15, %s1133_s15   ;;  %s944_s14 = sphi %s988_s14, %s1132_s14   ;;  %s940_s13 = sphi %s986_s13, %s1131_s13   ;;  %s936_s12 = sphi %s984_s12, %s1130_s12  }
   0x5   : > { %p26_p0 = scmp.ge.s32.totalorder %s25_s19, 2  ;;  %s39_s21 = sadd.s32 1, %s940_s13 }
   0x6   : > { %p46_p1 = scmp.ne.s32.totalorder %s940_s13, %s936_s12  ;;  %p47_p2 = scmp.eq.s32.totalorder %s960_s18, 0 }
   0x7   : > { %s1137_s19 = smov (%p26_p0, %s25_s19), 0  ;;  %s1139_s20 = smov (!%p26_p0, %s32_s20), %s956_s17 }
   0x8   : > { %s36_s22 = ssub.s32 %s952_s16, %s1137_s19  ;;  %p48_p3 = por %p47_p2, %p46_p1 }
   0x9   : > { %p34_p4 = scmp.ge.s32.totalorder %s1139_s20, 2  ;;  %p37_p5 = scmp.eq.s32.totalorder %s36_s22, 0 }
   0xa   : > { %p735_p6 = scmp.ge.s32.totalorder %s960_s18, 4 }
   0xb   : > { %s1141_s20 = smov (%p34_p4, %s1139_s20), 0 }
   0xc   : > { %s1033_s23 = scalar_select %p37_p5, %s940_s13, %s39_s21  }
   0xd   : > { %154 = sbr.rel (%p735_p6) target bundleno = 27 (0x1b), region = 20 }
  0x14   : > { %157 = sbr.rel (!%p48_p3) target bundleno = 27 (0x1b), region = 24  ;;  %s159_s24 = sand.u32 (%p48_p3), 1, %s940_s13  }
  0x15   : > { %s770_s25 = sshll.u32 (%p48_p3), %s952_s16, 3  ;;  %s736_s26 = sshll.u32 (%p48_p3), %s159_s24, 5 }
  0x16   : > { %s164_s29 = scalar_lea.vmem (%p48_p3), %s1126_s0, %s770_s25  ;;  %s161_s30 = scalar_lea.vmem (%p48_p3), [#allocation3], %s736_s26 }
  0x17   : > { %v198_v0 = vld [vmem:[%s164_s29] sm:$0xff] (%p48_p3)  ;;  %v200_v1 = vld [vmem:[%s164_s29 + $0x10] sm:$0xff] (%p48_p3) }
  0x18   : > { %v202_v2 = vld [vmem:[%s164_s29 + $0x20] sm:$0xff] (%p48_p3)  ;;  %199 = vst [vmem:[%s161_s30] sm:$0xff] (%p48_p3), %v198_v0  ;;  %201 = vst [vmem:[%s161_s30 + $0x8] sm:$0xff] (%p48_p3), %v200_v1  ;;  %v204_v3 = vld [vmem:[%s164_s29 + $0x30] sm:$0xff] (%p48_p3) }
  0x19   : > { %203 = vst [vmem:[%s161_s30 + $0x10] sm:$0xff] (%p48_p3), %v202_v2  ;;  %205 = vst [vmem:[%s161_s30 + $0x18] sm:$0xff] (%p48_p3), %v204_v3 }
  0x1b PF: > { %p739_p7 = scmp.ge.s32.totalorder %s960_s18, 1  ;;  %p226_p8 = scmp.lt.s32.totalorder %s960_s18, 5 }
  0x1d   : > { %p227_p9 = pnand %p739_p7, %p226_p8 }
  0x1e   : > { %s233_s4 = sand.u32 (!%p227_p9), 1, %s936_s12   ;;  %s741_s5 = sshll.u32 (!%p227_p9), %s944_s14, 5 }
  0x1f   : > { %230 = sbr.rel (%p227_p9) target bundleno = 629 (0x275), region = 66  ;;  %s740_s6 = sshll.u32 (!%p227_p9), %s233_s4, 5 }
  0x20   : > { %p273_p10 = scmp.lt.s32.totalorder (!%p227_p9), %s948_s15, 1  ;;  %p275_p11 = scmp.lt.s32.totalorder (!%p227_p9), %s741_s5, 63 }
  0x21   : > { %s1057_s12 = scalar_lea.vmem (!%p227_p9), [#allocation3], %s740_s6  ;;  %p746_p12 = scmp.ne.s32.totalorder (!%p227_p9), %s944_s14, 0 }
  0x26   : > { %s1143_s15 = smov (!%p273_p10, %s948_s15), 1  ;;  %s1145_s5 = smov (!%p275_p11, %s741_s5), 63 }
  0x27   : > { %s742_s7 = sshll.u32 %s1143_s15, 6  ;;  %s771_s8 = sshll.u32 %s1143_s15, 5  ;;  %v962_v4 = vmov (!%p746_p12), 0.0  }
  0x28   : > { %s281_s9 = sadd.s32 %s742_s7, %s1145_s5  ;;  %s1050_s21 = scalar_lea.vmem %s1129_s3, %s771_s8  ;;  %298 = vst [vmem:[#allocation2] sm:$0xff] (!%p746_p12), %v962_v4  ;;  %299 = vst [vmem:[#allocation2 + $0x8] sm:$0xff] (!%p746_p12), %v962_v4 }
  0x29   : > { %s743_s22 = sshll.u32 %s281_s9, 2  ;;  %297 = sbr.rel (%p746_p12) target bundleno = 48 (0x30), region = 74  ;;  %300 = vst [vmem:[#allocation2 + $0x10] sm:$0xff] (!%p746_p12), %v962_v4  ;;  %301 = vst [vmem:[#allocation2 + $0x18] sm:$0xff] (!%p746_p12), %v962_v4 }
  0x2a   : > { %s1055_s26 = scalar_lea.vmem %s1127_s1, %s743_s22 }
  0x30 PF: > { %v874_v5 = vld [vmem:[%s1055_s26 + $0x40] sm:$0xff]   ;;  %v876_v7 = vld [vmem:[%s1055_s26 + $0x48] sm:$0xff]   ;;  %v878_v9 = vld [vmem:[%s1055_s26 + $0x50] sm:$0xff]   ;;  %p767_p13 = scmp.ne.s32.totalorder %s944_s14, 1 }
  0x31   : > { %v875_v6 = vld [vmem:[%s1055_s26] sm:$0xff]   ;;  %772 = vmatprep.subr.bf16.mxu0 %v874_v5  ;;  %800 = vmatprep.subr.bf16.mxu1 %v874_v5  ;;  %v877_v8 = vld [vmem:[%s1055_s26 + $0x8] sm:$0xff]   ;;  %v879_v10 = vld [vmem:[%s1055_s26 + $0x10] sm:$0xff]   ;;  %v963_v47 = vmov (!%p767_p13), 0   ;;  %v551_v50 = vlaneseq (!%p767_p13) }
  0x32   : > { %773 = vmatpush3.bf16.msra.mxu0 %v875_v6  ;;  %808 = vmatpush3.bf16.msra.mxu1 %v875_v6  ;;  %v880_v11 = vld [vmem:[%s1055_s26 + $0x58] sm:$0xff]   ;;  %v882_v13 = vld [vmem:[%s1055_s26 + $0x60] sm:$0xff]   ;;  %v884_v15 = vld [vmem:[%s1055_s26 + $0x68] sm:$0xff]  }
  0x33   : > { %774 = vmatprep.subr.bf16.mxu0 %v876_v7  ;;  %801 = vmatprep.subr.bf16.mxu1 %v876_v7  ;;  %v881_v12 = vld [vmem:[%s1055_s26 + $0x18] sm:$0xff]   ;;  %v883_v14 = vld [vmem:[%s1055_s26 + $0x20] sm:$0xff]   ;;  %v885_v18 = vld [vmem:[%s1055_s26 + $0x28] sm:$0xff]   ;;  %v552_v51 = vand.u32 (!%p767_p13), 127, %v551_v50 }
  0x34   : > { %v892_v16 = vld [vmem:[%s1057_s12 + $0x4] ss:$8 sps:$4 sm:$0xff]   ;;  %v895_v17 = vld [vmem:[%s1057_s12 + $0x14] ss:$8 sps:$4 sm:$0xff]   ;;  %v890_v23 = vld [vmem:[%s1057_s12] ss:$8 sps:$4 sm:$0xff]   ;;  %897 = vset.pattern.permute.xlu1 (!%p767_p13), %v963_v47  ;;  %896 = vset.pattern.permute.xlu0 (!%p767_p13), %v963_v47 }
  0x35   : > { %v886_v19 = vld [vmem:[%s1055_s26 + $0x70] sm:$0xff]   ;;  %490 = vmatprep.mubr.bf16.mxu0 %v892_v16  ;;  %498 = vmatprep.mubr.bf16.mxu1 %v895_v17  ;;  %v888_v21 = vld [vmem:[%s1055_s26 + $0x78] sm:$0xff]   ;;  %v302_v27 = vld [vmem:[#allocation2] sm:$0xff]  ;;  %vm553_vm0 = vcmp.lt.s32.totalorder (!%p767_p13), %v552_v51, 8 }
  0x36   : > { %775 = vmatpush3.bf16.msra.mxu0 %v877_v8  ;;  %809 = vmatpush3.bf16.msra.mxu1 %v877_v8  ;;  %v887_v20 = vld [vmem:[%s1055_s26 + $0x30] sm:$0xff]   ;;  %v889_v22 = vld [vmem:[%s1055_s26 + $0x38] sm:$0xff]   ;;  %v303_v35 = vld [vmem:[#allocation2 + $0x8] sm:$0xff] }
  0x37   : > { %776 = vmatprep.subr.bf16.mxu0 %v878_v9  ;;  %802 = vmatprep.subr.bf16.mxu1 %v878_v9  ;;  %v893_v24 = vld [vmem:[%s1057_s12 + $0x10] ss:$8 sps:$4 sm:$0xff]   ;;  %v523_v46 = vld [vmem:[%s1128_s2] sm:$0xff] (!%p767_p13)  ;;  %v524_v49 = vld [vmem:[%s1128_s2 + $0x8] sm:$0xff] (!%p767_p13) }
  0x38   : > { %v304_v29 = vld [vmem:[#allocation2 + $0x10] sm:$0xff]  ;;  %v305_v37 = vld [vmem:[#allocation2 + $0x18] sm:$0xff]  ;;  %529 = vperm.xlu0 (!%p767_p13), %896, %v523_v46  }
  0x39   : > { %v525_v45 = vld [vmem:[%s1128_s2 + $0x10] sm:$0xff] (!%p767_p13)  ;;  %v526_v48 = vld [vmem:[%s1128_s2 + $0x18] sm:$0xff] (!%p767_p13) }
  0x3a   : > { %777 = vmatpush3.bf16.msra.mxu0 %v879_v10  ;;  %810 = vmatpush3.bf16.msra.mxu1 %v879_v10 }
  0x3b   : > { %778 = vmatprep.subr.bf16.mxu0 %v880_v11  ;;  %803 = vmatprep.subr.bf16.mxu1 %v880_v11 }
  0x3c   : > { %539 = vperm.xlu1 (!%p767_p13), %897, %v525_v45   ;;  %534 = vperm.xlu0 (!%p767_p13), %896, %v524_v49  }
  0x3e   : > { %779 = vmatpush3.bf16.msra.mxu0 %v881_v12  ;;  %811 = vmatpush3.bf16.msra.mxu1 %v881_v12 }
  0x3f   : > { %780 = vmatprep.subr.bf16.mxu0 %v882_v13  ;;  %804 = vmatprep.subr.bf16.mxu1 %v882_v13 }
  0x40   : > { %544 = vperm.xlu1 (!%p767_p13), %897, %v526_v48  }
  0x42   : > { %781 = vmatpush3.bf16.msra.mxu0 %v883_v14  ;;  %812 = vmatpush3.bf16.msra.mxu1 %v883_v14 }
  0x43   : > { %782 = vmatprep.subr.bf16.mxu0 %v884_v15  ;;  %805 = vmatprep.subr.bf16.mxu1 %v884_v15 }
  0x46   : > { %783 = vmatpush3.bf16.msra.mxu0 %v885_v18  ;;  %813 = vmatpush3.bf16.msra.mxu1 %v885_v18 }
  0x47   : > { %784 = vmatprep.subr.bf16.mxu0 %v886_v19  ;;  %806 = vmatprep.subr.bf16.mxu1 %v886_v19 }
  0x4a   : > { %785 = vmatpush3.bf16.msra.mxu0 %v887_v20  ;;  %814 = vmatpush3.bf16.msra.mxu1 %v887_v20 }
  0x4b   : > { %786 = vmatprep.subr.bf16.mxu0 %v888_v21  ;;  %807 = vmatprep.subr.bf16.mxu1 %v888_v21 }
  0x4e   : > { %787 = vmatpush3.bf16.msra.mxu0 %v889_v22  ;;  %815 = vmatpush3.bf16.msra.mxu1 %v889_v22 }
  0x51   : > { %491 = vmatmul.mubr.bf16.vlgmr.msra.gmra.mrb[0].mxu0 %v890_v23  ;;  %499 = vmatmul.mubr.bf16.vlgmr.msra.gmra.mrb[0].mxu1 %v893_v24 }
  0xb7   : > { %v530_v55 = vpop.permute.xlu0 (!%p767_p13), %529 }
  0xbb   : > { %v540_v54 = vpop.permute.xlu1 (!%p767_p13), %539  ;;  %v535_v62 = vpop.permute.xlu0 (!%p767_p13), %534 }
  0xbf   : > { %v545_v60 = vpop.permute.xlu1 (!%p767_p13), %544 }
 0x124   : > { %v788_v25 = vpop.f32.mrb[0].mxu0  ;;  %v794_v26 = vpop.f32.mrb[0].mxu1 }
 0x125   : > { %v789_v28 = vpop.f32.mrb[1].mxu0  ;;  %v795_v30 = vpop.f32.mrb[1].mxu1 }
 0x126   : > { %v790_v31 = vadd.f32 %v789_v28, %v788_v25  ;;  %v796_v32 = vadd.f32 %v795_v30, %v794_v26  ;;  %v791_v33 = vpop.f32.mrb[2].mxu0  ;;  %v797_v34 = vpop.f32.mrb[2].mxu1  ;;  %518 = sbr.rel (%p767_p13) target bundleno = 629 (0x275), region = 78 }
 0x127   : > { %v792_v36 = vpop.f32.mrb[3].mxu0  ;;  %v798_v38 = vpop.f32.mrb[3].mxu1 }
 0x128   : > { %v507_v39 = vadd.f32 %v790_v31, %v302_v27  ;;  %v509_v40 = vadd.f32 %v796_v32, %v304_v29  ;;  %v793_v41 = vadd.f32 %v792_v36, %v791_v33  ;;  %v799_v42 = vadd.f32 %v798_v38, %v797_v34 }
 0x12a   : > { %511 = vst [vmem:[#allocation2] sm:$0xff] %v507_v39  ;;  %513 = vst [vmem:[#allocation2 + $0x10] sm:$0xff] %v509_v40  ;;  %v508_v43 = vadd.f32 %v793_v41, %v303_v35  ;;  %v510_v44 = vadd.f32 %v799_v42, %v305_v37 }
 0x12c   : > { %512 = vst [vmem:[#allocation2 + $0x8] sm:$0xff] %v508_v43  ;;  %514 = vst [vmem:[#allocation2 + $0x18] sm:$0xff] %v510_v44 }
 0x131   : > { %v521_v52 = vld [vmem:[#allocation2 + $0x10] sm:$0xff]  ;;  %v519_v53 = vld [vmem:[#allocation2] sm:$0xff] }
 0x132   : > { %v549_v56 = vadd.f32 %v540_v54, %v521_v52  ;;  %v547_v57 = vadd.f32 %v530_v55, %v519_v53 }
 0x133   : > { %v520_v58 = vld [vmem:[#allocation2 + $0x8] sm:$0xff]  ;;  %v522_v61 = vld [vmem:[#allocation2 + $0x18] sm:$0xff] }
 0x134   : > { %v554_v59 = vsel %vm553_vm0, %v547_v57, 0.0  ;;  %v548_v63 = vadd.f32 %v535_v62, %v520_v58  ;;  %v556_v0 = vsel %vm553_vm0, %v549_v56, 0.0  ;;  %v550_v1 = vadd.f32 %v545_v60, %v522_v61 }
 0x135   : > { %558 = vadd.xlane.f32.xlu0 %v554_v59 }
 0x136   : > { %v555_v2 = vsel %vm553_vm0, %v548_v63, 0.0  ;;  %v557_v3 = vsel %vm553_vm0, %v550_v1, 0.0 }
 0x137   : > { %560 = vadd.xlane.f32.xlu1 %v555_v2 }
 0x139   : > { %562 = vadd.xlane.f32.xlu0 %v556_v0 }
 0x13d   : > { %564 = vadd.xlane.f32.xlu0 %v557_v3 }
 0x1c2   : > { %v559_v4 = vpop.xlane.xlu0 %558 }
 0x1c3   : > { %v566_v5 = vmul.f32 0.125, %v559_v4 }
 0x1c4   : > { %v561_v7 = vpop.xlane.xlu1 %560 }
 0x1c5   : > { %v570_v6 = vsub.f32 %v547_v57, %v566_v5  ;;  %v567_v9 = vmul.f32 0.125, %v561_v7 }
 0x1c6   : > { %v563_v8 = vpop.xlane.xlu0 %562 }
 0x1c7   : > { %v568_v10 = vmul.f32 0.125, %v563_v8  ;;  %v574_v11 = vmul.f32 %v570_v6, %v570_v6  ;;  %v571_v12 = vsub.f32 %v548_v63, %v567_v9 }
 0x1c9   : > { %v572_v13 = vsub.f32 %v549_v56, %v568_v10  ;;  %v578_v14 = vsel %vm553_vm0, %v574_v11, 0.0  ;;  %v575_v17 = vmul.f32 %v571_v12, %v571_v12 }
 0x1ca   : > { %582 = vadd.xlane.f32.xlu1 %v578_v14  ;;  %v565_v15 = vpop.xlane.xlu0 %564 }
 0x1cb   : > { %v569_v16 = vmul.f32 0.125, %v565_v15  ;;  %v576_v18 = vmul.f32 %v572_v13, %v572_v13  ;;  %v579_v20 = vsel %vm553_vm0, %v575_v17, 0.0 }
 0x1cc   : > { %584 = vadd.xlane.f32.xlu0 %v579_v20 }
 0x1cd   : > { %v573_v19 = vsub.f32 %v550_v1, %v569_v16  ;;  %v580_v21 = vsel %vm553_vm0, %v576_v18, 0.0 }
 0x1ce   : > { %586 = vadd.xlane.f32.xlu1 %v580_v21 }
 0x1cf   : > { %v577_v22 = vmul.f32 %v573_v19, %v573_v19 }
 0x1d1   : > { %v581_v23 = vsel %vm553_vm0, %v577_v22, 0.0 }
 0x1d2   : > { %588 = vadd.xlane.f32.xlu0 %v581_v23 }
 0x257   : > { %v583_v24 = vpop.xlane.xlu1 %582 }
 0x258   : > { %v590_v25 = vmul.f32 0.125, %v583_v24 }
 0x259   : > { %v585_v28 = vpop.xlane.xlu0 %584 }
 0x25a   : > { %v594_v26 = vadd.f32 1e-05, %v590_v25  ;;  %v591_v30 = vmul.f32 0.125, %v585_v28 }
 0x25b   : > { %v587_v27 = vpop.xlane.xlu1 %586 }
 0x25c   : > { %898 = vrsqrt.f32 %v594_v26  ;;  %v592_v29 = vmul.f32 0.125, %v587_v27  ;;  %v595_v32 = vadd.f32 1e-05, %v591_v30 }
 0x25e   : > { %v596_v31 = vadd.f32 1e-05, %v592_v29 }
 0x25f   : > { %v589_v33 = vpop.xlane.xlu0 %588 }
 0x260   : > { %900 = vrsqrt.f32 %v596_v31  ;;  %v593_v34 = vmul.f32 0.125, %v589_v33 }
 0x261   : > { %902 = vrsqrt.f32 %v595_v32 }
 0x262   : > { %v597_v35 = vadd.f32 1e-05, %v593_v34 }
 0x264   : > { %904 = vrsqrt.f32 %v597_v35 }
 0x266   : > { %v899_v36 = vpop.eup %898 }
 0x267   : > { %v602_v37 = vmul.f32 %v899_v36, %v570_v6 }
 0x269   : > { %vm606_vm1 = vcmp.ge.f32.partialorder %v602_v37, 0.0  ;;  %v610_v38 = vmul.f32 0.01, %v602_v37 }
 0x26a   : > { %v901_v39 = vpop.eup %900 }
 0x26b   : > { %v903_v40 = vpop.eup %902  ;;  %v614_v41 = vsel %vm606_vm1, %v602_v37, %v610_v38  ;;  %v604_v42 = vmul.f32 %v901_v39, %v572_v13 }
 0x26c   : > { %618 = vst [vmem:[%s1050_s21] sm:$0xff] %v614_v41  ;;  %v603_v43 = vmul.f32 %v903_v40, %v571_v12 }
 0x26d   : > { %vm608_vm2 = vcmp.ge.f32.partialorder %v604_v42, 0.0  ;;  %v612_v44 = vmul.f32 0.01, %v604_v42 }
 0x26e   : > { %v905_v45 = vpop.eup %904  ;;  %vm607_vm3 = vcmp.ge.f32.partialorder %v603_v43, 0.0  ;;  %v611_v46 = vmul.f32 0.01, %v603_v43 }
 0x26f   : > { %v616_v47 = vsel %vm608_vm2, %v604_v42, %v612_v44  ;;  %v605_v48 = vmul.f32 %v905_v45, %v573_v19 }
 0x270   : > { %620 = vst [vmem:[%s1050_s21 + $0x10] sm:$0xff] %v616_v47  ;;  %v615_v49 = vsel %vm607_vm3, %v603_v43, %v611_v46 }
 0x271   : > { %619 = vst [vmem:[%s1050_s21 + $0x8] sm:$0xff] %v615_v49  ;;  %vm609_vm4 = vcmp.ge.f32.partialorder %v605_v48, 0.0  ;;  %v613_v50 = vmul.f32 0.01, %v605_v48 }
 0x273   : > { %v617_v51 = vsel %vm609_vm4, %v605_v48, %v613_v50 }
 0x274   : > { %621 = vst [vmem:[%s1050_s21 + $0x18] sm:$0xff] %v617_v51 }
 0x275 PF: > { %s13_s18 = sadd.s32 1, %s960_s18   ;;  %s1130_s12 = smov %s940_s13 }
 0x276   : > { %p10_p0 = scmp.ge.s32.totalorder %s13_s18, 6   ;;  %s1131_s13 = smov %s1033_s23 }
 0x277   : > { %s1132_s14 = smov %s952_s16  ;;  %s1133_s15 = smov %s956_s17 }
 0x278   : > { %s1134_s16 = smov %s1137_s19  ;;  %s1135_s17 = smov %s1141_s20 }
 0x279   :  { %12 = sbr.rel (!%p10_p0) target bundleno = 4 (0x4), region = 116 }

// kernel: unet3d_forward.37
= control target key start
LH: loop header
LB: loop body
LE: loop exit
PB: predicated region body
PF: predicated region fallthrough
CT: control target
= control target key end

     0   :  { %s909_s12 = smov 0   ;;  %s911_s13 = smov 0   ;;  %s1043_s0 = inlined_call_operand.vmem [shape: bf16[32,512], index: 0, kind: input, shape index: {}]   ;;  %s1044_s1 = inlined_call_operand.vmem [shape: bf16[2,512,128], index: 1, kind: input, shape index: {}]   ;;  %s1045_s2 = inlined_call_operand.vmem [shape: f32[32,1], index: 2, kind: input, shape index: {}]   ;;  %s1046_s3 = inlined_call_operand.vmem [shape: f32[2,32,128], index: 3, kind: output, shape index: {}]  }
   0x1   :  { %s913_s14 = smov 0   ;;  %s915_s15 = smov 0  }
   0x2   :  { %s917_s16 = smov 0   ;;  %s919_s17 = smov 0  }
   0x3   :  { %s921_s18 = smov 0  }
   0x4 LB: > { %s25_s19 = sadd.s32 1, %s877_s16  ;;  %s32_s20 = sadd.s32 1, %s881_s17  ;;  %s885_s18 = sphi %s921_s18, %s13_s18   ;;  %s881_s17 = sphi %s919_s17, %s1052_s17   ;;  %s877_s16 = sphi %s917_s16, %s1051_s16   ;;  %s873_s15 = sphi %s915_s15, %s1050_s15   ;;  %s869_s14 = sphi %s913_s14, %s1049_s14   ;;  %s865_s13 = sphi %s911_s13, %s1048_s13   ;;  %s861_s12 = sphi %s909_s12, %s1047_s12  }
   0x5   : > { %p26_p0 = scmp.ge.s32.totalorder %s25_s19, 2  ;;  %s39_s21 = sadd.s32 1, %s865_s13 }
   0x6   : > { %p46_p1 = scmp.ne.s32.totalorder %s865_s13, %s861_s12  ;;  %p47_p2 = scmp.eq.s32.totalorder %s885_s18, 0 }
   0x7   : > { %s1054_s19 = smov (%p26_p0, %s25_s19), 0  ;;  %s1056_s20 = smov (!%p26_p0, %s32_s20), %s881_s17 }
   0x8   : > { %s36_s22 = ssub.s32 %s877_s16, %s1054_s19  ;;  %p48_p3 = por %p47_p2, %p46_p1 }
   0x9   : > { %p34_p4 = scmp.ge.s32.totalorder %s1056_s20, 2  ;;  %p37_p5 = scmp.eq.s32.totalorder %s36_s22, 0 }
   0xa   : > { %p668_p6 = scmp.ge.s32.totalorder %s885_s18, 4 }
   0xb   : > { %s1058_s20 = smov (%p34_p4, %s1056_s20), 0 }
   0xc   : > { %s958_s23 = scalar_select %p37_p5, %s865_s13, %s39_s21  }
   0xd   : > { %154 = sbr.rel (%p668_p6) target bundleno = 27 (0x1b), region = 20 }
  0x14   : > { %157 = sbr.rel (!%p48_p3) target bundleno = 27 (0x1b), region = 24  ;;  %s159_s24 = sand.u32 (%p48_p3), 1, %s865_s13  }
  0x15   : > { %s703_s25 = sshll.u32 (%p48_p3), %s877_s16, 3  ;;  %s669_s26 = sshll.u32 (%p48_p3), %s159_s24, 5 }
  0x16   : > { %s164_s29 = scalar_lea.vmem (%p48_p3), %s1043_s0, %s703_s25  ;;  %s161_s30 = scalar_lea.vmem (%p48_p3), [#allocation3], %s669_s26 }
  0x17   : > { %v198_v0 = vld [vmem:[%s164_s29] sm:$0xff] (%p48_p3)  ;;  %v200_v1 = vld [vmem:[%s164_s29 + $0x10] sm:$0xff] (%p48_p3) }
  0x18   : > { %v202_v2 = vld [vmem:[%s164_s29 + $0x20] sm:$0xff] (%p48_p3)  ;;  %199 = vst [vmem:[%s161_s30] sm:$0xff] (%p48_p3), %v198_v0  ;;  %201 = vst [vmem:[%s161_s30 + $0x8] sm:$0xff] (%p48_p3), %v200_v1  ;;  %v204_v3 = vld [vmem:[%s164_s29 + $0x30] sm:$0xff] (%p48_p3) }
  0x19   : > { %203 = vst [vmem:[%s161_s30 + $0x10] sm:$0xff] (%p48_p3), %v202_v2  ;;  %205 = vst [vmem:[%s161_s30 + $0x18] sm:$0xff] (%p48_p3), %v204_v3 }
  0x1b PF: > { %p672_p7 = scmp.ge.s32.totalorder %s885_s18, 1  ;;  %p226_p8 = scmp.lt.s32.totalorder %s885_s18, 5 }
  0x1d   : > { %p227_p9 = pnand %p672_p7, %p226_p8 }
  0x1e   : > { %s233_s4 = sand.u32 (!%p227_p9), 1, %s861_s12   ;;  %s674_s5 = sshll.u32 (!%p227_p9), %s869_s14, 5 }
  0x1f   : > { %230 = sbr.rel (%p227_p9) target bundleno = 311 (0x137), region = 66  ;;  %s673_s6 = sshll.u32 (!%p227_p9), %s233_s4, 5 }
  0x20   : > { %p273_p10 = scmp.lt.s32.totalorder (!%p227_p9), %s873_s15, 1  ;;  %p275_p11 = scmp.lt.s32.totalorder (!%p227_p9), %s674_s5, 63 }
  0x21   : > { %s982_s12 = scalar_lea.vmem (!%p227_p9), [#allocation3], %s673_s6  ;;  %p679_p12 = scmp.ne.s32.totalorder (!%p227_p9), %s869_s14, 0 }
  0x26   : > { %s1060_s15 = smov (!%p273_p10, %s873_s15), 1  ;;  %s1062_s5 = smov (!%p275_p11, %s674_s5), 63 }
  0x27   : > { %s675_s7 = sshll.u32 %s1060_s15, 6  ;;  %s704_s8 = sshll.u32 %s1060_s15, 5  ;;  %v887_v4 = vmov (!%p679_p12), 0.0  }
  0x28   : > { %s281_s9 = sadd.s32 %s675_s7, %s1062_s5  ;;  %s975_s21 = scalar_lea.vmem %s1046_s3, %s704_s8  ;;  %298 = vst [vmem:[#allocation2] sm:$0xff] (!%p679_p12), %v887_v4  ;;  %299 = vst [vmem:[#allocation2 + $0x8] sm:$0xff] (!%p679_p12), %v887_v4 }
  0x29   : > { %s676_s22 = sshll.u32 %s281_s9, 2  ;;  %297 = sbr.rel (%p679_p12) target bundleno = 48 (0x30), region = 74  ;;  %300 = vst [vmem:[#allocation2 + $0x10] sm:$0xff] (!%p679_p12), %v887_v4  ;;  %301 = vst [vmem:[#allocation2 + $0x18] sm:$0xff] (!%p679_p12), %v887_v4 }
  0x2a   : > { %s980_s26 = scalar_lea.vmem %s1044_s1, %s676_s22 }
  0x30 PF: > { %v807_v5 = vld [vmem:[%s980_s26 + $0x40] sm:$0xff]   ;;  %v809_v7 = vld [vmem:[%s980_s26 + $0x48] sm:$0xff]   ;;  %v811_v9 = vld [vmem:[%s980_s26 + $0x50] sm:$0xff]   ;;  %p700_p13 = scmp.ne.s32.totalorder %s869_s14, 1 }
  0x31   : > { %v808_v6 = vld [vmem:[%s980_s26] sm:$0xff]   ;;  %705 = vmatprep.subr.bf16.mxu0 %v807_v5  ;;  %733 = vmatprep.subr.bf16.mxu1 %v807_v5  ;;  %v810_v8 = vld [vmem:[%s980_s26 + $0x8] sm:$0xff]   ;;  %v812_v10 = vld [vmem:[%s980_s26 + $0x10] sm:$0xff]   ;;  %v888_v47 = vmov (!%p700_p13), 0  }
  0x32   : > { %706 = vmatpush3.bf16.msra.mxu0 %v808_v6  ;;  %741 = vmatpush3.bf16.msra.mxu1 %v808_v6  ;;  %v813_v11 = vld [vmem:[%s980_s26 + $0x58] sm:$0xff]   ;;  %v815_v13 = vld [vmem:[%s980_s26 + $0x60] sm:$0xff]   ;;  %v817_v15 = vld [vmem:[%s980_s26 + $0x68] sm:$0xff]  }
  0x33   : > { %707 = vmatprep.subr.bf16.mxu0 %v809_v7  ;;  %734 = vmatprep.subr.bf16.mxu1 %v809_v7  ;;  %v814_v12 = vld [vmem:[%s980_s26 + $0x18] sm:$0xff]   ;;  %v816_v14 = vld [vmem:[%s980_s26 + $0x20] sm:$0xff]   ;;  %v818_v18 = vld [vmem:[%s980_s26 + $0x28] sm:$0xff]  }
  0x34   : > { %v825_v16 = vld [vmem:[%s982_s12 + $0x4] ss:$8 sps:$4 sm:$0xff]   ;;  %v828_v17 = vld [vmem:[%s982_s12 + $0x14] ss:$8 sps:$4 sm:$0xff]   ;;  %v823_v23 = vld [vmem:[%s982_s12] ss:$8 sps:$4 sm:$0xff]   ;;  %830 = vset.pattern.permute.xlu1 (!%p700_p13), %v888_v47  ;;  %829 = vset.pattern.permute.xlu0 (!%p700_p13), %v888_v47 }
  0x35   : > { %v819_v19 = vld [vmem:[%s980_s26 + $0x70] sm:$0xff]   ;;  %490 = vmatprep.mubr.bf16.mxu0 %v825_v16  ;;  %498 = vmatprep.mubr.bf16.mxu1 %v828_v17  ;;  %v821_v21 = vld [vmem:[%s980_s26 + $0x78] sm:$0xff]   ;;  %v302_v27 = vld [vmem:[#allocation2] sm:$0xff] }
  0x36   : > { %708 = vmatpush3.bf16.msra.mxu0 %v810_v8  ;;  %742 = vmatpush3.bf16.msra.mxu1 %v810_v8  ;;  %v820_v20 = vld [vmem:[%s980_s26 + $0x30] sm:$0xff]   ;;  %v822_v22 = vld [vmem:[%s980_s26 + $0x38] sm:$0xff]   ;;  %v303_v35 = vld [vmem:[#allocation2 + $0x8] sm:$0xff] }
  0x37   : > { %709 = vmatprep.subr.bf16.mxu0 %v811_v9  ;;  %735 = vmatprep.subr.bf16.mxu1 %v811_v9  ;;  %v826_v24 = vld [vmem:[%s982_s12 + $0x10] ss:$8 sps:$4 sm:$0xff]   ;;  %v523_v46 = vld [vmem:[%s1045_s2] sm:$0xff] (!%p700_p13)  ;;  %v524_v49 = vld [vmem:[%s1045_s2 + $0x8] sm:$0xff] (!%p700_p13) }
  0x38   : > { %v304_v29 = vld [vmem:[#allocation2 + $0x10] sm:$0xff]  ;;  %v305_v37 = vld [vmem:[#allocation2 + $0x18] sm:$0xff]  ;;  %529 = vperm.xlu0 (!%p700_p13), %829, %v523_v46  }
  0x39   : > { %v525_v45 = vld [vmem:[%s1045_s2 + $0x10] sm:$0xff] (!%p700_p13)  ;;  %v526_v48 = vld [vmem:[%s1045_s2 + $0x18] sm:$0xff] (!%p700_p13) }
  0x3a   : > { %710 = vmatpush3.bf16.msra.mxu0 %v812_v10  ;;  %743 = vmatpush3.bf16.msra.mxu1 %v812_v10 }
  0x3b   : > { %711 = vmatprep.subr.bf16.mxu0 %v813_v11  ;;  %736 = vmatprep.subr.bf16.mxu1 %v813_v11 }
  0x3c   : > { %539 = vperm.xlu1 (!%p700_p13), %830, %v525_v45   ;;  %534 = vperm.xlu0 (!%p700_p13), %829, %v524_v49  }
  0x3e   : > { %712 = vmatpush3.bf16.msra.mxu0 %v814_v12  ;;  %744 = vmatpush3.bf16.msra.mxu1 %v814_v12 }
  0x3f   : > { %713 = vmatprep.subr.bf16.mxu0 %v815_v13  ;;  %737 = vmatprep.subr.bf16.mxu1 %v815_v13 }
  0x40   : > { %544 = vperm.xlu1 (!%p700_p13), %830, %v526_v48  }
  0x42   : > { %714 = vmatpush3.bf16.msra.mxu0 %v816_v14  ;;  %745 = vmatpush3.bf16.msra.mxu1 %v816_v14 }
  0x43   : > { %715 = vmatprep.subr.bf16.mxu0 %v817_v15  ;;  %738 = vmatprep.subr.bf16.mxu1 %v817_v15 }
  0x46   : > { %716 = vmatpush3.bf16.msra.mxu0 %v818_v18  ;;  %746 = vmatpush3.bf16.msra.mxu1 %v818_v18 }
  0x47   : > { %717 = vmatprep.subr.bf16.mxu0 %v819_v19  ;;  %739 = vmatprep.subr.bf16.mxu1 %v819_v19 }
  0x4a   : > { %718 = vmatpush3.bf16.msra.mxu0 %v820_v20  ;;  %747 = vmatpush3.bf16.msra.mxu1 %v820_v20 }
  0x4b   : > { %719 = vmatprep.subr.bf16.mxu0 %v821_v21  ;;  %740 = vmatprep.subr.bf16.mxu1 %v821_v21 }
  0x4e   : > { %720 = vmatpush3.bf16.msra.mxu0 %v822_v22  ;;  %748 = vmatpush3.bf16.msra.mxu1 %v822_v22 }
  0x51   : > { %491 = vmatmul.mubr.bf16.vlgmr.msra.gmra.mrb[0].mxu0 %v823_v23  ;;  %499 = vmatmul.mubr.bf16.vlgmr.msra.gmra.mrb[0].mxu1 %v826_v24 }
  0xb7   : > { %v530_v53 = vpop.permute.xlu0 (!%p700_p13), %529 }
  0xbb   : > { %v540_v52 = vpop.permute.xlu1 (!%p700_p13), %539  ;;  %v535_v59 = vpop.permute.xlu0 (!%p700_p13), %534 }
  0xbf   : > { %v545_v58 = vpop.permute.xlu1 (!%p700_p13), %544 }
 0x124   : > { %v721_v25 = vpop.f32.mrb[0].mxu0  ;;  %v727_v26 = vpop.f32.mrb[0].mxu1 }
 0x125   : > { %v722_v28 = vpop.f32.mrb[1].mxu0  ;;  %v728_v30 = vpop.f32.mrb[1].mxu1 }
 0x126   : > { %v723_v31 = vadd.f32 %v722_v28, %v721_v25  ;;  %v729_v32 = vadd.f32 %v728_v30, %v727_v26  ;;  %v724_v33 = vpop.f32.mrb[2].mxu0  ;;  %v730_v34 = vpop.f32.mrb[2].mxu1  ;;  %518 = sbr.rel (%p700_p13) target bundleno = 311 (0x137), region = 78 }
 0x127   : > { %v725_v36 = vpop.f32.mrb[3].mxu0  ;;  %v731_v38 = vpop.f32.mrb[3].mxu1 }
 0x128   : > { %v507_v39 = vadd.f32 %v723_v31, %v302_v27  ;;  %v509_v40 = vadd.f32 %v729_v32, %v304_v29  ;;  %v726_v41 = vadd.f32 %v725_v36, %v724_v33  ;;  %v732_v42 = vadd.f32 %v731_v38, %v730_v34 }
 0x12a   : > { %511 = vst [vmem:[#allocation2] sm:$0xff] %v507_v39  ;;  %513 = vst [vmem:[#allocation2 + $0x10] sm:$0xff] %v509_v40  ;;  %v508_v43 = vadd.f32 %v726_v41, %v303_v35  ;;  %v510_v44 = vadd.f32 %v732_v42, %v305_v37 }
 0x12c   : > { %512 = vst [vmem:[#allocation2 + $0x8] sm:$0xff] %v508_v43  ;;  %514 = vst [vmem:[#allocation2 + $0x18] sm:$0xff] %v510_v44 }
 0x131   : > { %v521_v50 = vld [vmem:[#allocation2 + $0x10] sm:$0xff]  ;;  %v519_v51 = vld [vmem:[#allocation2] sm:$0xff] }
 0x132   : > { %v549_v54 = vadd.f32 %v540_v52, %v521_v50  ;;  %v547_v55 = vadd.f32 %v530_v53, %v519_v51 }
 0x133   : > { %v522_v56 = vld [vmem:[#allocation2 + $0x18] sm:$0xff]  ;;  %v520_v57 = vld [vmem:[#allocation2 + $0x8] sm:$0xff] }
 0x134   : > { %553 = vst [vmem:[%s975_s21 + $0x10] sm:$0xff] %v549_v54  ;;  %551 = vst [vmem:[%s975_s21] sm:$0xff] %v547_v55  ;;  %v550_v60 = vadd.f32 %v545_v58, %v522_v56  ;;  %v548_v61 = vadd.f32 %v535_v59, %v520_v57 }
 0x136   : > { %554 = vst [vmem:[%s975_s21 + $0x18] sm:$0xff] %v550_v60  ;;  %552 = vst [vmem:[%s975_s21 + $0x8] sm:$0xff] %v548_v61 }
 0x137 PF: > { %s13_s18 = sadd.s32 1, %s885_s18   ;;  %s1047_s12 = smov %s865_s13 }
 0x138   : > { %p10_p0 = scmp.ge.s32.totalorder %s13_s18, 6   ;;  %s1048_s13 = smov %s958_s23 }
 0x139   : > { %s1049_s14 = smov %s877_s16  ;;  %s1050_s15 = smov %s881_s17 }
 0x13a   : > { %s1051_s16 = smov %s1054_s19  ;;  %s1052_s17 = smov %s1058_s20 }
 0x13b   :  { %12 = sbr.rel (!%p10_p0) target bundleno = 4 (0x4), region = 116 }

// kernel: unet3d_forward.38
= control target key start
LH: loop header
LB: loop body
LE: loop exit
PB: predicated region body
PF: predicated region fallthrough
CT: control target
= control target key end

     0   :  { %s727_s12 = smov 0   ;;  %s729_s13 = smov 0   ;;  %s792_s0 = inlined_call_operand.vmem [shape: bf16[32,96], index: 0, kind: input, shape index: {}]   ;;  %s793_s1 = inlined_call_operand.vmem [shape: bf16[2,96,128], index: 1, kind: input, shape index: {}]   ;;  %s794_s2 = inlined_call_operand.vmem [shape: f32[32,1], index: 2, kind: input, shape index: {}]   ;;  %s795_s3 = inlined_call_operand.vmem [shape: f32[2,32,128], index: 3, kind: output, shape index: {}]  }
   0x1   :  { %s731_s14 = smov 0  }
   0x2 LB: > { %s32_s15 = sadd.s32 1, %s700_s13  ;;  %p597_p0 = scmp.ge.s32.totalorder %s704_s14, 1  ;;  %s704_s14 = sphi %s731_s14, %s13_s14   ;;  %s700_s13 = sphi %s729_s13, %s797_s13   ;;  %s696_s12 = sphi %s727_s12, %s796_s12  }
   0x3   : > { %p34_p1 = scmp.ge.s32.totalorder %s32_s15, 2  ;;  %p179_p2 = scmp.lt.s32.totalorder %s704_s14, 3 }
   0x5   : > { %s799_s15 = smov (%p34_p1, %s32_s15), 0  ;;  %p180_p3 = pnand %p597_p0, %p179_p2 }
   0x6   : > { %p222_p4 = scmp.lt.s32.totalorder (!%p180_p3), %s696_s12, 1  ;;  %v672_v0 = vld [vmem:[%s792_s0] sm:$0xff] (!%p180_p3)   ;;  %vm317_vm0 = vcmask (!%p180_p3), 785408   ;;  %v390_v2 = vld [vmem:[%s794_s2 + $0x10] sm:$0xff] (!%p180_p3)  ;;  %v706_v3 = vmov (!%p180_p3), 0   ;;  %v389_v4 = vld [vmem:[%s794_s2 + $0x8] sm:$0xff] (!%p180_p3)  ;;  %v416_v13 = vlaneseq (!%p180_p3) }
   0x7   : > { %183 = sbr.rel (%p180_p3) target bundleno = 579 (0x243), region = 32  ;;  %634 = vmatprep.mubr.msk.bf16.mxu0 (!%p180_p3), %vm317_vm0, %v672_v0  ;;  %v388_v1 = vld [vmem:[%s794_s2] sm:$0xff] (!%p180_p3)  ;;  %664 = vset.pattern.permute.xlu0 (!%p180_p3), %v706_v3  ;;  %v391_v5 = vld [vmem:[%s794_s2 + $0x18] sm:$0xff] (!%p180_p3)  ;;  %v673_v12 = vld [vmem:[%s792_s0 + $0x8] sm:$0xff] (!%p180_p3)  }
   0x8   : > { %665 = vset.pattern.permute.xlu1 (!%p180_p3), %v706_v3  ;;  %394 = vperm.xlu0 (!%p180_p3), %664, %v388_v1   ;;  %v417_v15 = vand.u32 (!%p180_p3), 127, %v416_v13 }
   0x9   : > { %404 = vperm.xlu1 (!%p180_p3), %665, %v390_v2  }
   0xa   : > { %vm418_vm1 = vcmp.lt.s32.totalorder (!%p180_p3), %v417_v15, 8 }
   0xc   : > { %399 = vperm.xlu0 (!%p180_p3), %664, %v389_v4  }
   0xd   : > { %409 = vperm.xlu1 (!%p180_p3), %665, %v391_v5  }
   0xe   : > { %s801_s12 = smov (!%p222_p4, %s696_s12), 1 }
   0xf   : > { %s638_s22 = smul.u32 48, %s801_s12  ;;  %s613_s5 = sshll.u32 %s801_s12, 5 }
  0x10   : > { %s241_s8 = scalar_lea.vmem %s795_s3, %s613_s5 }
  0x11   : > { %s232_s29 = scalar_lea.vmem %s793_s1, %s638_s22 }
  0x12   : > { %v666_v6 = vld [vmem:[%s232_s29] sm:$0xff]   ;;  %v667_v7 = vld [vmem:[%s232_s29 + $0x8] sm:$0xff]   ;;  %v668_v8 = vld [vmem:[%s232_s29 + $0x10] sm:$0xff]  }
  0x13   : > { %622 = vmatprep.subr.bf16.mxu0 %v666_v6  ;;  %v669_v9 = vld [vmem:[%s232_s29 + $0x18] sm:$0xff]   ;;  %v670_v10 = vld [vmem:[%s232_s29 + $0x20] sm:$0xff]   ;;  %v671_v11 = vld [vmem:[%s232_s29 + $0x28] sm:$0xff]  }
  0x14   : > { %623 = vmatpush3.bf16.msra.mxu0 %v666_v6 }
  0x15   : > { %624 = vmatprep.subr.bf16.mxu0 %v667_v7 }
  0x18   : > { %625 = vmatpush3.bf16.msra.mxu0 %v667_v7 }
  0x19   : > { %626 = vmatprep.subr.bf16.mxu0 %v668_v8 }
  0x1c   : > { %627 = vmatpush3.bf16.msra.mxu0 %v668_v8 }
  0x1d   : > { %628 = vmatprep.subr.bf16.mxu0 %v669_v9 }
  0x20   : > { %629 = vmatpush3.bf16.msra.mxu0 %v669_v9 }
  0x21   : > { %630 = vmatprep.subr.bf16.mxu0 %v670_v10 }
  0x24   : > { %631 = vmatpush3.bf16.msra.mxu0 %v670_v10 }
  0x25   : > { %632 = vmatprep.subr.bf16.mxu0 %v671_v11 }
  0x28   : > { %633 = vmatpush3.bf16.msra.mxu0 %v671_v11 }
  0x2b   : > { %635 = vmatmul.mubr.msk.bf16.vlgmr.msra.gmra.mrb[0].mxu0 %vm317_vm0, %v673_v12 }
  0x87   : > { %v395_v14 = vpop.permute.xlu0 %394 }
  0x88   : > { %v405_v16 = vpop.permute.xlu1 %404 }
  0x8b   : > { %v400_v21 = vpop.permute.xlu0 %399 }
  0x8c   : > { %v410_v26 = vpop.permute.xlu1 %409 }
  0xfe   : > { %v636_v17 = vpop.f32.mrb[0].mxu0 }
  0xff   : > { %v358_v18 = vpop.f32.mrb[1].mxu0  ;;  %v414_v23 = vadd.f32 %v636_v17, %v405_v16 }
 0x100   : > { %v412_v19 = vadd.f32 %v395_v14, %v358_v18  ;;  %v637_v20 = vpop.f32.mrb[2].mxu0 }
 0x101   : > { %v361_v22 = vpop.f32.mrb[3].mxu0  ;;  %v415_v28 = vadd.f32 %v637_v20, %v410_v26  ;;  %v421_v29 = vsel %vm418_vm1, %v414_v23, 0.0 }
 0x102   : > { %v413_v24 = vadd.f32 %v400_v21, %v361_v22  ;;  %v419_v25 = vsel %vm418_vm1, %v412_v19, 0.0 }
 0x103   : > { %423 = vadd.xlane.f32.xlu0 %v419_v25  ;;  %v422_v30 = vsel %vm418_vm1, %v415_v28, 0.0 }
 0x104   : > { %v420_v27 = vsel %vm418_vm1, %v413_v24, 0.0 }
 0x105   : > { %425 = vadd.xlane.f32.xlu1 %v420_v27 }
 0x107   : > { %427 = vadd.xlane.f32.xlu0 %v421_v29 }
 0x10b   : > { %429 = vadd.xlane.f32.xlu0 %v422_v30 }
 0x190   : > { %v424_v31 = vpop.xlane.xlu0 %423 }
 0x191   : > { %v431_v32 = vmul.f32 0.125, %v424_v31 }
 0x192   : > { %v426_v33 = vpop.xlane.xlu1 %425 }
 0x193   : > { %v435_v34 = vsub.f32 %v412_v19, %v431_v32  ;;  %v432_v35 = vmul.f32 0.125, %v426_v33 }
 0x194   : > { %v428_v36 = vpop.xlane.xlu0 %427 }
 0x195   : > { %v436_v37 = vsub.f32 %v413_v24, %v432_v35  ;;  %v433_v38 = vmul.f32 0.125, %v428_v36  ;;  %v439_v39 = vmul.f32 %v435_v34, %v435_v34 }
 0x197   : > { %v437_v40 = vsub.f32 %v414_v23, %v433_v38  ;;  %v443_v41 = vsel %vm418_vm1, %v439_v39, 0.0  ;;  %v440_v42 = vmul.f32 %v436_v37, %v436_v37 }
 0x198   : > { %v430_v43 = vpop.xlane.xlu0 %429  ;;  %447 = vadd.xlane.f32.xlu1 %v443_v41 }
 0x199   : > { %v434_v44 = vmul.f32 0.125, %v430_v43  ;;  %v444_v45 = vsel %vm418_vm1, %v440_v42, 0.0  ;;  %v441_v46 = vmul.f32 %v437_v40, %v437_v40 }
 0x19a   : > { %449 = vadd.xlane.f32.xlu0 %v444_v45 }
 0x19b   : > { %v438_v47 = vsub.f32 %v415_v28, %v434_v44  ;;  %v445_v48 = vsel %vm418_vm1, %v441_v46, 0.0 }
 0x19c   : > { %451 = vadd.xlane.f32.xlu1 %v445_v48 }
 0x19d   : > { %v442_v49 = vmul.f32 %v438_v47, %v438_v47 }
 0x19f   : > { %v446_v50 = vsel %vm418_vm1, %v442_v49, 0.0 }
 0x1a0   : > { %453 = vadd.xlane.f32.xlu0 %v446_v50 }
 0x225   : > { %v448_v51 = vpop.xlane.xlu1 %447 }
 0x226   : > { %v455_v52 = vmul.f32 0.125, %v448_v51 }
 0x227   : > { %v450_v53 = vpop.xlane.xlu0 %449 }
 0x228   : > { %v459_v54 = vadd.f32 1e-05, %v455_v52  ;;  %v456_v55 = vmul.f32 0.125, %v450_v53 }
 0x229   : > { %v452_v56 = vpop.xlane.xlu1 %451 }
 0x22a   : > { %674 = vrsqrt.f32 %v459_v54  ;;  %v460_v57 = vadd.f32 1e-05, %v456_v55  ;;  %v457_v58 = vmul.f32 0.125, %v452_v56 }
 0x22c   : > { %676 = vrsqrt.f32 %v460_v57  ;;  %v461_v59 = vadd.f32 1e-05, %v457_v58 }
 0x22d   : > { %v454_v60 = vpop.xlane.xlu0 %453 }
 0x22e   : > { %678 = vrsqrt.f32 %v461_v59  ;;  %v458_v61 = vmul.f32 0.125, %v454_v60 }
 0x230   : > { %v462_v62 = vadd.f32 1e-05, %v458_v61 }
 0x232   : > { %680 = vrsqrt.f32 %v462_v62 }
 0x234   : > { %v675_v63 = vpop.eup %674 }
 0x235   : > { %v467_v0 = vmul.f32 %v675_v63, %v435_v34 }
 0x236   : > { %v677_v1 = vpop.eup %676 }
 0x237   : > { %vm471_vm2 = vcmp.ge.f32.partialorder %v467_v0, 0.0  ;;  %v475_v2 = vmul.f32 0.01, %v467_v0  ;;  %v468_v3 = vmul.f32 %v677_v1, %v436_v37 }
 0x238   : > { %v679_v4 = vpop.eup %678 }
 0x239   : > { %v479_v5 = vsel %vm471_vm2, %v467_v0, %v475_v2  ;;  %vm472_vm3 = vcmp.ge.f32.partialorder %v468_v3, 0.0  ;;  %v476_v6 = vmul.f32 0.01, %v468_v3  ;;  %v469_v7 = vmul.f32 %v679_v4, %v437_v40 }
 0x23a   : > { %483 = vst [vmem:[%s241_s8] sm:$0xff] %v479_v5 }
 0x23b   : > { %v480_v8 = vsel %vm472_vm3, %v468_v3, %v476_v6  ;;  %vm473_vm4 = vcmp.ge.f32.partialorder %v469_v7, 0.0  ;;  %v477_v9 = vmul.f32 0.01, %v469_v7 }
 0x23c   : > { %v681_v10 = vpop.eup %680  ;;  %484 = vst [vmem:[%s241_s8 + $0x8] sm:$0xff] %v480_v8 }
 0x23d   : > { %v481_v11 = vsel %vm473_vm4, %v469_v7, %v477_v9  ;;  %v470_v12 = vmul.f32 %v681_v10, %v438_v47 }
 0x23e   : > { %485 = vst [vmem:[%s241_s8 + $0x10] sm:$0xff] %v481_v11 }
 0x23f   : > { %vm474_vm5 = vcmp.ge.f32.partialorder %v470_v12, 0.0  ;;  %v478_v13 = vmul.f32 0.01, %v470_v12 }
 0x241   : > { %v482_v14 = vsel %vm474_vm5, %v470_v12, %v478_v13 }
 0x242   : > { %486 = vst [vmem:[%s241_s8 + $0x18] sm:$0xff] %v482_v14 }
 0x243 PF: > { %s13_s14 = sadd.s32 1, %s704_s14   ;;  %s796_s12 = smov %s700_s13 }
 0x244   : > { %p10_p5 = scmp.ge.s32.totalorder %s13_s14, 4   ;;  %s797_s13 = smov %s799_s15 }
 0x246   :  { %12 = sbr.rel (!%p10_p5) target bundleno = 2 (0x2), region = 73 }

// kernel: unet3d_forward.41
= control target key start
LH: loop header
LB: loop body
LE: loop exit
PB: predicated region body
PF: predicated region fallthrough
CT: control target
= control target key end

     0   :  { %s866_s12 = smov 0   ;;  %s868_s13 = smov 0   ;;  %s997_s0 = inlined_call_operand.vmem [shape: bf16[16,1024], index: 0, kind: input, shape index: {}]   ;;  %s998_s1 = inlined_call_operand.vmem [shape: bf16[2,1024,128], index: 1, kind: input, shape index: {}]   ;;  %s999_s2 = inlined_call_operand.vmem [shape: f32[16,1], index: 2, kind: input, shape index: {}]   ;;  %s1000_s3 = inlined_call_operand.vmem [shape: f32[2,16,128], index: 3, kind: output, shape index: {}]  }
   0x1   :  { %s870_s14 = smov 0   ;;  %s872_s15 = smov 0  }
   0x2   :  { %s874_s16 = smov 0   ;;  %s876_s17 = smov 0  }
   0x3   :  { %s878_s18 = smov 0  }
   0x4 LB: > { %s25_s19 = sadd.s32 1, %s834_s16  ;;  %s32_s20 = sadd.s32 1, %s838_s17  ;;  %s842_s18 = sphi %s878_s18, %s13_s18   ;;  %s838_s17 = sphi %s876_s17, %s1006_s17   ;;  %s834_s16 = sphi %s874_s16, %s1005_s16   ;;  %s830_s15 = sphi %s872_s15, %s1004_s15   ;;  %s826_s14 = sphi %s870_s14, %s1003_s14   ;;  %s822_s13 = sphi %s868_s13, %s1002_s13   ;;  %s818_s12 = sphi %s866_s12, %s1001_s12  }
   0x5   : > { %p26_p0 = scmp.ge.s32.totalorder %s25_s19, 4  ;;  %s39_s21 = sadd.s32 1, %s822_s13 }
   0x6   : > { %p46_p1 = scmp.ne.s32.totalorder %s822_s13, %s818_s12  ;;  %p47_p2 = scmp.eq.s32.totalorder %s842_s18, 0 }
   0x7   : > { %s1008_s19 = smov (%p26_p0, %s25_s19), 0  ;;  %s1010_s20 = smov (!%p26_p0, %s32_s20), %s838_s17 }
   0x8   : > { %s36_s22 = ssub.s32 %s834_s16, %s1008_s19  ;;  %p48_p3 = por %p47_p2, %p46_p1 }
   0x9   : > { %p34_p4 = scmp.ge.s32.totalorder %s1010_s20, 2  ;;  %p37_p5 = scmp.eq.s32.totalorder %s36_s22, 0 }
   0xa   : > { %p649_p6 = scmp.ge.s32.totalorder %s842_s18, 8 }
   0xb   : > { %s1012_s20 = smov (%p34_p4, %s1010_s20), 0 }
   0xc   : > { %s915_s23 = scalar_select %p37_p5, %s822_s13, %s39_s21  }
   0xd   : > { %154 = sbr.rel (%p649_p6) target bundleno = 27 (0x1b), region = 20 }
  0x14   : > { %157 = sbr.rel (!%p48_p3) target bundleno = 27 (0x1b), region = 24  ;;  %s159_s24 = sand.u32 (%p48_p3), 1, %s822_s13  }
  0x15   : > { %s682_s25 = sshll.u32 (%p48_p3), %s834_s16, 3  ;;  %s650_s26 = sshll.u32 (%p48_p3), %s159_s24, 4 }
  0x16   : > { %s164_s29 = scalar_lea.vmem (%p48_p3), %s997_s0, %s682_s25  ;;  %s161_s30 = scalar_lea.vmem (%p48_p3), [#allocation3], %s650_s26 }
  0x17   : > { %v194_v0 = vld [vmem:[%s164_s29] sm:$0xff] (%p48_p3) }
  0x18   : > { %v196_v1 = vld [vmem:[%s164_s29 + $0x20] sm:$0xff] (%p48_p3)  ;;  %195 = vst [vmem:[%s161_s30] sm:$0xff] (%p48_p3), %v194_v0 }
  0x19   : > { %197 = vst [vmem:[%s161_s30 + $0x8] sm:$0xff] (%p48_p3), %v196_v1 }
  0x1b PF: > { %p653_p7 = scmp.ge.s32.totalorder %s842_s18, 1  ;;  %p218_p8 = scmp.lt.s32.totalorder %s842_s18, 9 }
  0x1d   : > { %p219_p9 = pnand %p653_p7, %p218_p8 }
  0x1e   : > { %s225_s4 = sand.u32 (!%p219_p9), 1, %s818_s12   ;;  %s655_s5 = sshll.u32 (!%p219_p9), %s826_s14, 5 }
  0x1f   : > { %222 = sbr.rel (%p219_p9) target bundleno = 625 (0x271), region = 66  ;;  %s927_s6 = sshll.u32 (!%p219_p9), %s225_s4, 4 }
  0x20   : > { %p265_p10 = scmp.lt.s32.totalorder (!%p219_p9), %s830_s15, 1  ;;  %p267_p11 = scmp.lt.s32.totalorder (!%p219_p9), %s655_s5, 127 }
  0x21   : > { %s227_s26 = scalar_lea.vmem (!%p219_p9), [#allocation3], %s927_s6  ;;  %p660_p12 = scmp.ne.s32.totalorder (!%p219_p9), %s826_s14, 0 }
  0x26   : > { %s1014_s15 = smov (!%p265_p10, %s830_s15), 1  ;;  %s1016_s5 = smov (!%p267_p11, %s655_s5), 127 }
  0x27   : > { %s656_s7 = sshll.u32 %s1014_s15, 7  ;;  %s683_s8 = sshll.u32 %s1014_s15, 4  ;;  %v844_v2 = vmov (!%p660_p12), 0.0  }
  0x28   : > { %s273_s9 = sadd.s32 %s656_s7, %s1016_s5  ;;  %s934_s21 = scalar_lea.vmem %s1000_s3, %s683_s8  ;;  %290 = vst [vmem:[#allocation2] sm:$0xff] (!%p660_p12), %v844_v2  ;;  %291 = vst [vmem:[#allocation2 + $0x8] sm:$0xff] (!%p660_p12), %v844_v2 }
  0x29   : > { %s657_s22 = sshll.u32 %s273_s9, 2  ;;  %289 = sbr.rel (%p660_p12) target bundleno = 48 (0x30), region = 74 }
  0x2a   : > { %s939_s12 = scalar_lea.vmem %s998_s1, %s657_s22 }
  0x30 PF: > { %v764_v3 = vld [vmem:[%s939_s12 + $0x40] sm:$0xff]   ;;  %v766_v5 = vld [vmem:[%s939_s12 + $0x48] sm:$0xff]   ;;  %v768_v7 = vld [vmem:[%s939_s12 + $0x50] sm:$0xff]   ;;  %p679_p13 = scmp.ne.s32.totalorder %s826_s14, 3 }
  0x31   : > { %v765_v4 = vld [vmem:[%s939_s12] sm:$0xff]   ;;  %684 = vmatprep.subr.bf16.mxu0 %v764_v3  ;;  %v767_v6 = vld [vmem:[%s939_s12 + $0x8] sm:$0xff]   ;;  %v769_v8 = vld [vmem:[%s939_s12 + $0x10] sm:$0xff]   ;;  %v845_v32 = vmov (!%p679_p13), 0   ;;  %v499_v34 = vlaneseq (!%p679_p13) }
  0x32   : > { %685 = vmatpush3.bf16.msra.mxu0 %v765_v4  ;;  %v770_v9 = vld [vmem:[%s939_s12 + $0x58] sm:$0xff]   ;;  %v772_v11 = vld [vmem:[%s939_s12 + $0x60] sm:$0xff]   ;;  %v774_v13 = vld [vmem:[%s939_s12 + $0x68] sm:$0xff]   ;;  %783 = vset.pattern.permute.xlu0 (!%p679_p13), %v845_v32 }
  0x33   : > { %686 = vmatprep.subr.bf16.mxu0 %v766_v5  ;;  %v771_v10 = vld [vmem:[%s939_s12 + $0x18] sm:$0xff]   ;;  %v773_v12 = vld [vmem:[%s939_s12 + $0x20] sm:$0xff]   ;;  %v775_v15 = vld [vmem:[%s939_s12 + $0x28] sm:$0xff]   ;;  %v500_v35 = vand.u32 (!%p679_p13), 127, %v499_v34 }
  0x34   : > { %v782_v14 = vld [vmem:[%s227_s26 + $0x4] ss:$8 sps:$4 sm:$0xff]   ;;  %v780_v20 = vld [vmem:[%s227_s26] ss:$8 sps:$4 sm:$0xff]  }
  0x35   : > { %466 = vmatprep.mubr.bf16.mxu0 %v782_v14  ;;  %v776_v16 = vld [vmem:[%s939_s12 + $0x70] sm:$0xff]   ;;  %v778_v18 = vld [vmem:[%s939_s12 + $0x78] sm:$0xff]   ;;  %v292_v22 = vld [vmem:[#allocation2] sm:$0xff]  ;;  %vm501_vm0 = vcmp.lt.s32.totalorder (!%p679_p13), %v500_v35, 64 }
  0x36   : > { %687 = vmatpush3.bf16.msra.mxu0 %v767_v6  ;;  %v777_v17 = vld [vmem:[%s939_s12 + $0x30] sm:$0xff]   ;;  %v779_v19 = vld [vmem:[%s939_s12 + $0x38] sm:$0xff]   ;;  %v293_v26 = vld [vmem:[#allocation2 + $0x8] sm:$0xff] }
  0x37   : > { %688 = vmatprep.subr.bf16.mxu0 %v768_v7  ;;  %v485_v31 = vld [vmem:[%s999_s2] sm:$0xff] (!%p679_p13)  ;;  %v486_v33 = vld [vmem:[%s999_s2 + $0x8] sm:$0xff] (!%p679_p13) }
  0x38   : > { %489 = vperm.xlu0 (!%p679_p13), %783, %v485_v31  }
  0x3a   : > { %689 = vmatpush3.bf16.msra.mxu0 %v769_v8 }
  0x3b   : > { %690 = vmatprep.subr.bf16.mxu0 %v770_v9 }
  0x3c   : > { %494 = vperm.xlu0 (!%p679_p13), %783, %v486_v33  }
  0x3e   : > { %691 = vmatpush3.bf16.msra.mxu0 %v771_v10 }
  0x3f   : > { %692 = vmatprep.subr.bf16.mxu0 %v772_v11 }
  0x42   : > { %693 = vmatpush3.bf16.msra.mxu0 %v773_v12 }
  0x43   : > { %694 = vmatprep.subr.bf16.mxu0 %v774_v13 }
  0x46   : > { %695 = vmatpush3.bf16.msra.mxu0 %v775_v15 }
  0x47   : > { %696 = vmatprep.subr.bf16.mxu0 %v776_v16 }
  0x4a   : > { %697 = vmatpush3.bf16.msra.mxu0 %v777_v17 }
  0x4b   : > { %698 = vmatprep.subr.bf16.mxu0 %v778_v18 }
  0x4e   : > { %699 = vmatpush3.bf16.msra.mxu0 %v779_v19 }
  0x51   : > { %467 = vmatmul.mubr.bf16.vlgmr.msra.gmra.mrb[0].mxu0 %v780_v20 }
  0xb7   : > { %v490_v37 = vpop.permute.xlu0 (!%p679_p13), %489 }
  0xbb   : > { %v495_v41 = vpop.permute.xlu0 (!%p679_p13), %494 }
 0x124   : > { %v700_v21 = vpop.f32.mrb[0].mxu0 }
 0x125   : > { %v701_v23 = vpop.f32.mrb[1].mxu0 }
 0x126   : > { %v702_v24 = vadd.f32 %v701_v23, %v700_v21  ;;  %v703_v25 = vpop.f32.mrb[2].mxu0  ;;  %482 = sbr.rel (%p679_p13) target bundleno = 625 (0x271), region = 78 }
 0x127   : > { %v704_v27 = vpop.f32.mrb[3].mxu0 }
 0x128   : > { %v475_v28 = vadd.f32 %v702_v24, %v292_v22  ;;  %v705_v29 = vadd.f32 %v704_v27, %v703_v25 }
 0x12a   : > { %477 = vst [vmem:[#allocation2] sm:$0xff] %v475_v28  ;;  %v476_v30 = vadd.f32 %v705_v29, %v293_v26 }
 0x12c   : > { %478 = vst [vmem:[#allocation2 + $0x8] sm:$0xff] %v476_v30 }
 0x131   : > { %v483_v36 = vld [vmem:[#allocation2] sm:$0xff] }
 0x132   : > { %v497_v38 = vadd.f32 %v490_v37, %v483_v36 }
 0x133   : > { %v484_v39 = vld [vmem:[#allocation2 + $0x8] sm:$0xff] }
 0x134   : > { %v502_v40 = vsel %vm501_vm0, %v497_v38, 0.0  ;;  %v498_v42 = vadd.f32 %v495_v41, %v484_v39 }
 0x135   : > { %504 = vadd.xlane.f32.xlu1 %v502_v40 }
 0x136   : > { %v503_v43 = vsel %vm501_vm0, %v498_v42, 0.0 }
 0x139   : > { %506 = vadd.xlane.f32.xlu1 %v503_v43 }
 0x1c2   : > { %v505_v44 = vpop.xlane.xlu1 %504 }
 0x1c3   : > { %v508_v45 = vmul.f32 0.015625, %v505_v44 }
 0x1c5   : > { %v510_v46 = vsub.f32 %v497_v38, %v508_v45 }
 0x1c6   : > { %v507_v47 = vpop.xlane.xlu1 %506 }
 0x1c7   : > { %v509_v48 = vmul.f32 0.015625, %v507_v47  ;;  %v512_v49 = vmul.f32 %v510_v46, %v510_v46 }
 0x1c9   : > { %v511_v50 = vsub.f32 %v498_v42, %v509_v48  ;;  %v514_v51 = vsel %vm501_vm0, %v512_v49, 0.0 }
 0x1ca   : > { %516 = vadd.xlane.f32.xlu0 %v514_v51 }
 0x1cb   : > { %v513_v52 = vmul.f32 %v511_v50, %v511_v50 }
 0x1cd   : > { %v515_v53 = vsel %vm501_vm0, %v513_v52, 0.0 }
 0x1ce   : > { %518 = vadd.xlane.f32.xlu1 %v515_v53 }
 0x257   : > { %v517_v54 = vpop.xlane.xlu0 %516 }
 0x258   : > { %v520_v55 = vmul.f32 0.015625, %v517_v54 }
 0x25a   : > { %v522_v56 = vadd.f32 1e-05, %v520_v55 }
 0x25b   : > { %v519_v57 = vpop.xlane.xlu1 %518 }
 0x25c   : > { %784 = vrsqrt.f32 %v522_v56  ;;  %v521_v58 = vmul.f32 0.015625, %v519_v57 }
 0x25e   : > { %v523_v59 = vadd.f32 1e-05, %v521_v58 }
 0x260   : > { %786 = vrsqrt.f32 %v523_v59 }
 0x266   : > { %v785_v60 = vpop.eup %784 }
 0x267   : > { %v526_v61 = vmul.f32 %v785_v60, %v510_v46 }
 0x269   : > { %vm528_vm1 = vcmp.ge.f32.partialorder %v526_v61, 0.0  ;;  %v530_v62 = vmul.f32 0.01, %v526_v61 }
 0x26a   : > { %v787_v63 = vpop.eup %786 }
 0x26b   : > { %v532_v0 = vsel %vm528_vm1, %v526_v61, %v530_v62  ;;  %v527_v1 = vmul.f32 %v787_v63, %v511_v50 }
 0x26c   : > { %534 = vst [vmem:[%s934_s21] sm:$0xff] %v532_v0 }
 0x26d   : > { %vm529_vm2 = vcmp.ge.f32.partialorder %v527_v1, 0.0  ;;  %v531_v2 = vmul.f32 0.01, %v527_v1 }
 0x26f   : > { %v533_v3 = vsel %vm529_vm2, %v527_v1, %v531_v2 }
 0x270   : > { %535 = vst [vmem:[%s934_s21 + $0x8] sm:$0xff] %v533_v3 }
 0x271 PF: > { %s13_s18 = sadd.s32 1, %s842_s18   ;;  %s1001_s12 = smov %s822_s13 }
 0x272   : > { %p10_p0 = scmp.ge.s32.totalorder %s13_s18, 10   ;;  %s1002_s13 = smov %s915_s23 }
 0x273   : > { %s1003_s14 = smov %s834_s16  ;;  %s1004_s15 = smov %s838_s17 }
 0x274   : > { %s1005_s16 = smov %s1008_s19  ;;  %s1006_s17 = smov %s1012_s20 }
 0x275   :  { %12 = sbr.rel (!%p10_p0) target bundleno = 4 (0x4), region = 116 }

// kernel: unet3d_forward.42
= control target key start
LH: loop header
LB: loop body
LE: loop exit
PB: predicated region body
PF: predicated region fallthrough
CT: control target
= control target key end

     0   :  { %s827_s12 = smov 0   ;;  %s829_s13 = smov 0   ;;  %s954_s0 = inlined_call_operand.vmem [shape: bf16[16,512], index: 0, kind: input, shape index: {}]   ;;  %s955_s1 = inlined_call_operand.vmem [shape: bf16[2,512,128], index: 1, kind: input, shape index: {}]   ;;  %s956_s2 = inlined_call_operand.vmem [shape: f32[16,1], index: 2, kind: input, shape index: {}]   ;;  %s957_s3 = inlined_call_operand.vmem [shape: f32[2,16,128], index: 3, kind: output, shape index: {}]  }
   0x1   :  { %s831_s14 = smov 0   ;;  %s833_s15 = smov 0  }
   0x2   :  { %s835_s16 = smov 0   ;;  %s837_s17 = smov 0  }
   0x3   :  { %s839_s18 = smov 0  }
   0x4 LB: > { %s25_s19 = sadd.s32 1, %s795_s16  ;;  %s32_s20 = sadd.s32 1, %s799_s17  ;;  %s803_s18 = sphi %s839_s18, %s13_s18   ;;  %s799_s17 = sphi %s837_s17, %s963_s17   ;;  %s795_s16 = sphi %s835_s16, %s962_s16   ;;  %s791_s15 = sphi %s833_s15, %s961_s15   ;;  %s787_s14 = sphi %s831_s14, %s960_s14   ;;  %s783_s13 = sphi %s829_s13, %s959_s13   ;;  %s779_s12 = sphi %s827_s12, %s958_s12  }
   0x5   : > { %p26_p0 = scmp.ge.s32.totalorder %s25_s19, 2  ;;  %s39_s21 = sadd.s32 1, %s783_s13 }
   0x6   : > { %p46_p1 = scmp.ne.s32.totalorder %s783_s13, %s779_s12  ;;  %p47_p2 = scmp.eq.s32.totalorder %s803_s18, 0 }
   0x7   : > { %s965_s19 = smov (%p26_p0, %s25_s19), 0  ;;  %s967_s20 = smov (!%p26_p0, %s32_s20), %s799_s17 }
   0x8   : > { %s36_s22 = ssub.s32 %s795_s16, %s965_s19  ;;  %p48_p3 = por %p47_p2, %p46_p1 }
   0x9   : > { %p34_p4 = scmp.ge.s32.totalorder %s967_s20, 2  ;;  %p37_p5 = scmp.eq.s32.totalorder %s36_s22, 0 }
   0xa   : > { %p614_p6 = scmp.ge.s32.totalorder %s803_s18, 4 }
   0xb   : > { %s969_s20 = smov (%p34_p4, %s967_s20), 0 }
   0xc   : > { %s876_s23 = scalar_select %p37_p5, %s783_s13, %s39_s21  }
   0xd   : > { %154 = sbr.rel (%p614_p6) target bundleno = 27 (0x1b), region = 20 }
  0x14   : > { %157 = sbr.rel (!%p48_p3) target bundleno = 27 (0x1b), region = 24  ;;  %s159_s24 = sand.u32 (%p48_p3), 1, %s783_s13  }
  0x15   : > { %s647_s25 = sshll.u32 (%p48_p3), %s795_s16, 3  ;;  %s615_s26 = sshll.u32 (%p48_p3), %s159_s24, 4 }
  0x16   : > { %s164_s29 = scalar_lea.vmem (%p48_p3), %s954_s0, %s647_s25  ;;  %s161_s30 = scalar_lea.vmem (%p48_p3), [#allocation3], %s615_s26 }
  0x17   : > { %v194_v0 = vld [vmem:[%s164_s29] sm:$0xff] (%p48_p3)  ;;  %v196_v1 = vld [vmem:[%s164_s29 + $0x10] sm:$0xff] (%p48_p3) }
  0x18   : > { %195 = vst [vmem:[%s161_s30] sm:$0xff] (%p48_p3), %v194_v0  ;;  %197 = vst [vmem:[%s161_s30 + $0x8] sm:$0xff] (%p48_p3), %v196_v1 }
  0x1b PF: > { %p618_p7 = scmp.ge.s32.totalorder %s803_s18, 1  ;;  %p218_p8 = scmp.lt.s32.totalorder %s803_s18, 5 }
  0x1d   : > { %p219_p9 = pnand %p618_p7, %p218_p8 }
  0x1e   : > { %s225_s4 = sand.u32 (!%p219_p9), 1, %s779_s12   ;;  %s620_s5 = sshll.u32 (!%p219_p9), %s787_s14, 5 }
  0x1f   : > { %222 = sbr.rel (%p219_p9) target bundleno = 311 (0x137), region = 66  ;;  %s888_s6 = sshll.u32 (!%p219_p9), %s225_s4, 4 }
  0x20   : > { %p265_p10 = scmp.lt.s32.totalorder (!%p219_p9), %s791_s15, 1  ;;  %p267_p11 = scmp.lt.s32.totalorder (!%p219_p9), %s620_s5, 63 }
  0x21   : > { %s227_s26 = scalar_lea.vmem (!%p219_p9), [#allocation3], %s888_s6  ;;  %p625_p12 = scmp.ne.s32.totalorder (!%p219_p9), %s787_s14, 0 }
  0x26   : > { %s971_s15 = smov (!%p265_p10, %s791_s15), 1  ;;  %s973_s5 = smov (!%p267_p11, %s620_s5), 63 }
  0x27   : > { %s621_s7 = sshll.u32 %s971_s15, 6  ;;  %s648_s8 = sshll.u32 %s971_s15, 4  ;;  %v805_v2 = vmov (!%p625_p12), 0.0  }
  0x28   : > { %s273_s9 = sadd.s32 %s621_s7, %s973_s5  ;;  %s895_s21 = scalar_lea.vmem %s957_s3, %s648_s8  ;;  %290 = vst [vmem:[#allocation2] sm:$0xff] (!%p625_p12), %v805_v2  ;;  %291 = vst [vmem:[#allocation2 + $0x8] sm:$0xff] (!%p625_p12), %v805_v2 }
  0x29   : > { %s622_s22 = sshll.u32 %s273_s9, 2  ;;  %289 = sbr.rel (%p625_p12) target bundleno = 48 (0x30), region = 74 }
  0x2a   : > { %s900_s12 = scalar_lea.vmem %s955_s1, %s622_s22 }
  0x30 PF: > { %v729_v3 = vld [vmem:[%s900_s12 + $0x40] sm:$0xff]   ;;  %v731_v5 = vld [vmem:[%s900_s12 + $0x48] sm:$0xff]   ;;  %v733_v7 = vld [vmem:[%s900_s12 + $0x50] sm:$0xff]   ;;  %p644_p13 = scmp.ne.s32.totalorder %s787_s14, 1 }
  0x31   : > { %v730_v4 = vld [vmem:[%s900_s12] sm:$0xff]   ;;  %649 = vmatprep.subr.bf16.mxu0 %v729_v3  ;;  %v732_v6 = vld [vmem:[%s900_s12 + $0x8] sm:$0xff]   ;;  %v734_v8 = vld [vmem:[%s900_s12 + $0x10] sm:$0xff]   ;;  %v806_v32 = vmov (!%p644_p13), 0  }
  0x32   : > { %650 = vmatpush3.bf16.msra.mxu0 %v730_v4  ;;  %v735_v9 = vld [vmem:[%s900_s12 + $0x58] sm:$0xff]   ;;  %v737_v11 = vld [vmem:[%s900_s12 + $0x60] sm:$0xff]   ;;  %v739_v13 = vld [vmem:[%s900_s12 + $0x68] sm:$0xff]   ;;  %748 = vset.pattern.permute.xlu0 (!%p644_p13), %v806_v32 }
  0x33   : > { %651 = vmatprep.subr.bf16.mxu0 %v731_v5  ;;  %v736_v10 = vld [vmem:[%s900_s12 + $0x18] sm:$0xff]   ;;  %v738_v12 = vld [vmem:[%s900_s12 + $0x20] sm:$0xff]   ;;  %v740_v15 = vld [vmem:[%s900_s12 + $0x28] sm:$0xff]  }
  0x34   : > { %v747_v14 = vld [vmem:[%s227_s26 + $0x4] ss:$8 sps:$4 sm:$0xff]   ;;  %v745_v20 = vld [vmem:[%s227_s26] ss:$8 sps:$4 sm:$0xff]  }
  0x35   : > { %466 = vmatprep.mubr.bf16.mxu0 %v747_v14  ;;  %v741_v16 = vld [vmem:[%s900_s12 + $0x70] sm:$0xff]   ;;  %v743_v18 = vld [vmem:[%s900_s12 + $0x78] sm:$0xff]   ;;  %v292_v22 = vld [vmem:[#allocation2] sm:$0xff] }
  0x36   : > { %652 = vmatpush3.bf16.msra.mxu0 %v732_v6  ;;  %v742_v17 = vld [vmem:[%s900_s12 + $0x30] sm:$0xff]   ;;  %v744_v19 = vld [vmem:[%s900_s12 + $0x38] sm:$0xff]   ;;  %v293_v26 = vld [vmem:[#allocation2 + $0x8] sm:$0xff] }
  0x37   : > { %653 = vmatprep.subr.bf16.mxu0 %v733_v7  ;;  %v485_v31 = vld [vmem:[%s956_s2] sm:$0xff] (!%p644_p13)  ;;  %v486_v33 = vld [vmem:[%s956_s2 + $0x8] sm:$0xff] (!%p644_p13) }
  0x38   : > { %489 = vperm.xlu0 (!%p644_p13), %748, %v485_v31  }
  0x3a   : > { %654 = vmatpush3.bf16.msra.mxu0 %v734_v8 }
  0x3b   : > { %655 = vmatprep.subr.bf16.mxu0 %v735_v9 }
  0x3c   : > { %494 = vperm.xlu0 (!%p644_p13), %748, %v486_v33  }
  0x3e   : > { %656 = vmatpush3.bf16.msra.mxu0 %v736_v10 }
  0x3f   : > { %657 = vmatprep.subr.bf16.mxu0 %v737_v11 }
  0x42   : > { %658 = vmatpush3.bf16.msra.mxu0 %v738_v12 }
  0x43   : > { %659 = vmatprep.subr.bf16.mxu0 %v739_v13 }
  0x46   : > { %660 = vmatpush3.bf16.msra.mxu0 %v740_v15 }
  0x47   : > { %661 = vmatprep.subr.bf16.mxu0 %v741_v16 }
  0x4a   : > { %662 = vmatpush3.bf16.msra.mxu0 %v742_v17 }
  0x4b   : > { %663 = vmatprep.subr.bf16.mxu0 %v743_v18 }
  0x4e   : > { %664 = vmatpush3.bf16.msra.mxu0 %v744_v19 }
  0x51   : > { %467 = vmatmul.mubr.bf16.vlgmr.msra.gmra.mrb[0].mxu0 %v745_v20 }
  0xb7   : > { %v490_v35 = vpop.permute.xlu0 (!%p644_p13), %489 }
  0xbb   : > { %v495_v38 = vpop.permute.xlu0 (!%p644_p13), %494 }
 0x124   : > { %v665_v21 = vpop.f32.mrb[0].mxu0 }
 0x125   : > { %v666_v23 = vpop.f32.mrb[1].mxu0 }
 0x126   : > { %v667_v24 = vadd.f32 %v666_v23, %v665_v21  ;;  %v668_v25 = vpop.f32.mrb[2].mxu0  ;;  %482 = sbr.rel (%p644_p13) target bundleno = 311 (0x137), region = 78 }
 0x127   : > { %v669_v27 = vpop.f32.mrb[3].mxu0 }
 0x128   : > { %v475_v28 = vadd.f32 %v667_v24, %v292_v22  ;;  %v670_v29 = vadd.f32 %v669_v27, %v668_v25 }
 0x12a   : > { %477 = vst [vmem:[#allocation2] sm:$0xff] %v475_v28  ;;  %v476_v30 = vadd.f32 %v670_v29, %v293_v26 }
 0x12c   : > { %478 = vst [vmem:[#allocation2 + $0x8] sm:$0xff] %v476_v30 }
 0x131   : > { %v483_v34 = vld [vmem:[#allocation2] sm:$0xff] }
 0x132   : > { %v497_v36 = vadd.f32 %v490_v35, %v483_v34 }
 0x133   : > { %v484_v37 = vld [vmem:[#allocation2 + $0x8] sm:$0xff] }
 0x134   : > { %499 = vst [vmem:[%s895_s21] sm:$0xff] %v497_v36  ;;  %v498_v39 = vadd.f32 %v495_v38, %v484_v37 }
 0x136   : > { %500 = vst [vmem:[%s895_s21 + $0x8] sm:$0xff] %v498_v39 }
 0x137 PF: > { %s13_s18 = sadd.s32 1, %s803_s18   ;;  %s958_s12 = smov %s783_s13 }
 0x138   : > { %p10_p0 = scmp.ge.s32.totalorder %s13_s18, 6   ;;  %s959_s13 = smov %s876_s23 }
 0x139   : > { %s960_s14 = smov %s795_s16  ;;  %s961_s15 = smov %s799_s17 }
 0x13a   : > { %s962_s16 = smov %s965_s19  ;;  %s963_s17 = smov %s969_s20 }
 0x13b   :  { %12 = sbr.rel (!%p10_p0) target bundleno = 4 (0x4), region = 116 }

// kernel: unet3d_forward.46
= control target key start
LH: loop header
LB: loop body
LE: loop exit
PB: predicated region body
PF: predicated region fallthrough
CT: control target
= control target key end

     0   :  { %s1229_s12 = smov 0   ;;  %s1231_s13 = smov 0   ;;  %s1367_s0 = inlined_call_operand.vmem [shape: bf16[8,512], index: 0, kind: input, shape index: {}]   ;;  %s1368_s1 = inlined_call_operand.vmem [shape: bf16[2,512,512], index: 1, kind: input, shape index: {}]   ;;  %s1369_s2 = inlined_call_operand.vmem [shape: f32[8,1], index: 2, kind: input, shape index: {}]   ;;  %s1370_s3 = inlined_call_operand.vmem [shape: f32[2,8,512], index: 3, kind: output, shape index: {}]  }
   0x1   :  { %s1233_s14 = smov 0   ;;  %s1235_s15 = smov 0  }
   0x2   :  { %s1237_s16 = smov 0  }
   0x3 LB: > { %s25_s17 = sadd.s32 1, %s1197_s14  ;;  %s32_s18 = sadd.s32 1, %s1201_s15  ;;  %s1205_s16 = sphi %s1237_s16, %s13_s16   ;;  %s1201_s15 = sphi %s1235_s15, %s1374_s15   ;;  %s1197_s14 = sphi %s1233_s14, %s1373_s14   ;;  %s1193_s13 = sphi %s1231_s13, %s1372_s13   ;;  %s1189_s12 = sphi %s1229_s12, %s1371_s12  }
   0x4   : > { %p26_p0 = scmp.ge.s32.totalorder %s25_s17, 2  ;;  %p944_p1 = scmp.ge.s32.totalorder %s1205_s16, 1 }
   0x5   : > { %p184_p2 = scmp.lt.s32.totalorder %s1205_s16, 5 }
   0x6   : > { %s1376_s17 = smov (%p26_p0, %s25_s17), 0  ;;  %s1378_s18 = smov (!%p26_p0, %s32_s18), %s1201_s15 }
   0x7   : > { %p185_p3 = pnand %p944_p1, %p184_p2  ;;  %p34_p4 = scmp.ge.s32.totalorder %s1378_s18, 2 }
   0x8   : > { %s945_s19 = sshll.u32 (!%p185_p3), %s1189_s12, 1  ;;  %s947_s20 = sshll.u32 (!%p185_p3), %s1189_s12, 5 }
   0x9   : > { %s1380_s18 = smov (%p34_p4, %s1378_s18), 0  ;;  %188 = sbr.rel (%p185_p3) target bundleno = 643 (0x283), region = 32 }
   0xa   : > { %p227_p5 = scmp.lt.s32.totalorder (!%p185_p3), %s945_s19, 3  ;;  %p234_p6 = scmp.lt.s32.totalorder (!%p185_p3), %s1193_s13, 1 }
   0xb   : > { %p236_p7 = scmp.lt.s32.totalorder (!%p185_p3), %s947_s20, 63  ;;  %p953_p8 = scmp.ne.s32.totalorder (!%p185_p3), %s1189_s12, 0 }
  0x10   : > { %s1382_s19 = smov (!%p227_p5, %s945_s19), 3  ;;  %s1384_s13 = smov (!%p234_p6, %s1193_s13), 1 }
  0x11   : > { %s946_s21 = sshll.u32 %s1382_s19, 2  ;;  %s949_s25 = sshll.u32 %s1384_s13, 8  ;;  %v1207_v0 = vmov (!%p953_p8), 0.0  }
  0x12   : > { %s1266_s24 = scalar_lea.vmem %s1367_s0, %s946_s21  ;;  %s1386_s20 = smov (!%p236_p7, %s947_s20), 63  ;;  %262 = vst [vmem:[#allocation2] sm:$0xff] (!%p953_p8), %v1207_v0  ;;  %263 = vst [vmem:[#allocation2 + $0x8] sm:$0xff] (!%p953_p8), %v1207_v0 }
  0x13   : > { %s1023_s26 = sshll.u32 %s1384_s13, 5  ;;  %s948_s27 = sshll.u32 %s1386_s20, 2  ;;  %264 = vst [vmem:[#allocation2 + $0x10] sm:$0xff] (!%p953_p8), %v1207_v0  ;;  %265 = vst [vmem:[#allocation2 + $0x18] sm:$0xff] (!%p953_p8), %v1207_v0 }
  0x14   : > { %s1271_s30 = scalar_lea.vmem %s1370_s3, %s1023_s26  ;;  %s243_s4 = sadd.s32 %s949_s25, %s948_s27 }
  0x15   : > { %s950_s5 = sshll.u32 %s243_s4, 2  ;;  %261 = sbr.rel (%p953_p8) target bundleno = 28 (0x1c), region = 36 }
  0x16   : > { %s1276_s8 = scalar_lea.vmem %s1368_s1, %s950_s5 }
  0x1c PF: > { %v1066_v1 = vld [vmem:[%s1276_s8 + $0x4] ss:$16 sps:$4 sm:$0xff]   ;;  %v1068_v2 = vld [vmem:[%s1276_s8 + $0xc] ss:$16 sps:$4 sm:$0xff]   ;;  %v1070_v3 = vld [vmem:[%s1276_s8] ss:$16 sps:$4 sm:$0xff]  }
  0x1d   : > { %662 = vmatprep.subr.bf16.mxu0 %v1066_v1  ;;  %v1071_v4 = vld [vmem:[%s1276_s8 + $0x8] ss:$16 sps:$4 sm:$0xff]   ;;  %703 = vmatprep.subr.bf16.mxu1 %v1068_v2  ;;  %v1072_v5 = vld [vmem:[%s1276_s8 + $0x24] ss:$16 sps:$4 sm:$0xff]   ;;  %v1074_v6 = vld [vmem:[%s1276_s8 + $0x2c] ss:$16 sps:$4 sm:$0xff]  }
  0x1e   : > { %663 = vmatpush1.bf16.msra.mxu0 %v1070_v3  ;;  %704 = vmatpush1.bf16.msra.mxu1 %v1071_v4  ;;  %v1076_v7 = vld [vmem:[%s1276_s8 + $0x20] ss:$16 sps:$4 sm:$0xff]   ;;  %v1077_v8 = vld [vmem:[%s1276_s8 + $0x28] ss:$16 sps:$4 sm:$0xff]   ;;  %v1078_v9 = vld [vmem:[%s1276_s8 + $0x44] ss:$16 sps:$4 sm:$0xff]  }
  0x1f   : > { %664 = vmatprep.subr.bf16.mxu0 %v1072_v5  ;;  %705 = vmatprep.subr.bf16.mxu1 %v1074_v6  ;;  %v1080_v10 = vld [vmem:[%s1276_s8 + $0x4c] ss:$16 sps:$4 sm:$0xff]   ;;  %v1082_v11 = vld [vmem:[%s1276_s8 + $0x40] ss:$16 sps:$4 sm:$0xff]   ;;  %v1083_v12 = vld [vmem:[%s1276_s8 + $0x48] ss:$16 sps:$4 sm:$0xff]  }
  0x20   : > { %v1084_v13 = vld [vmem:[%s1276_s8 + $0x64] ss:$16 sps:$4 sm:$0xff]   ;;  %v1086_v14 = vld [vmem:[%s1276_s8 + $0x6c] ss:$16 sps:$4 sm:$0xff]   ;;  %v1088_v15 = vld [vmem:[%s1276_s8 + $0x60] ss:$16 sps:$4 sm:$0xff]  }
  0x21   : > { %v1089_v16 = vld [vmem:[%s1276_s8 + $0x68] ss:$16 sps:$4 sm:$0xff]   ;;  %v1090_v17 = vld [vmem:[%s1276_s8 + $0x84] ss:$16 sps:$4 sm:$0xff]   ;;  %v1092_v18 = vld [vmem:[%s1276_s8 + $0x8c] ss:$16 sps:$4 sm:$0xff]  }
  0x22   : > { %665 = vmatpush1.bf16.msra.mxu0 %v1076_v7  ;;  %706 = vmatpush1.bf16.msra.mxu1 %v1077_v8  ;;  %v1094_v19 = vld [vmem:[%s1276_s8 + $0x80] ss:$16 sps:$4 sm:$0xff]   ;;  %v1095_v20 = vld [vmem:[%s1276_s8 + $0x88] ss:$16 sps:$4 sm:$0xff]   ;;  %v1096_v21 = vld [vmem:[%s1276_s8 + $0xa4] ss:$16 sps:$4 sm:$0xff]  }
  0x23   : > { %666 = vmatprep.subr.bf16.mxu0 %v1078_v9  ;;  %707 = vmatprep.subr.bf16.mxu1 %v1080_v10  ;;  %v1098_v22 = vld [vmem:[%s1276_s8 + $0xac] ss:$16 sps:$4 sm:$0xff]   ;;  %v1100_v23 = vld [vmem:[%s1276_s8 + $0xa0] ss:$16 sps:$4 sm:$0xff]   ;;  %v1101_v24 = vld [vmem:[%s1276_s8 + $0xa8] ss:$16 sps:$4 sm:$0xff]  }
  0x24   : > { %v1102_v25 = vld [vmem:[%s1276_s8 + $0xc4] ss:$16 sps:$4 sm:$0xff]   ;;  %v1104_v26 = vld [vmem:[%s1276_s8 + $0xcc] ss:$16 sps:$4 sm:$0xff]   ;;  %v1106_v27 = vld [vmem:[%s1276_s8 + $0xc0] ss:$16 sps:$4 sm:$0xff]  }
  0x25   : > { %v1107_v28 = vld [vmem:[%s1276_s8 + $0xc8] ss:$16 sps:$4 sm:$0xff]   ;;  %v1108_v29 = vld [vmem:[%s1276_s8 + $0xe4] ss:$16 sps:$4 sm:$0xff]   ;;  %v1110_v30 = vld [vmem:[%s1276_s8 + $0xec] ss:$16 sps:$4 sm:$0xff]  }
  0x26   : > { %667 = vmatpush1.bf16.msra.mxu0 %v1082_v11  ;;  %708 = vmatpush1.bf16.msra.mxu1 %v1083_v12  ;;  %v1112_v31 = vld [vmem:[%s1276_s8 + $0xe0] ss:$16 sps:$4 sm:$0xff]   ;;  %v1113_v32 = vld [vmem:[%s1276_s8 + $0xe8] ss:$16 sps:$4 sm:$0xff]   ;;  %v1114_v33 = vld [vmem:[%s1276_s8 + $0x104] ss:$16 sps:$4 sm:$0xff]  }
  0x27   : > { %668 = vmatprep.subr.bf16.mxu0 %v1084_v13  ;;  %709 = vmatprep.subr.bf16.mxu1 %v1086_v14  ;;  %v1116_v34 = vld [vmem:[%s1276_s8 + $0x10c] ss:$16 sps:$4 sm:$0xff]   ;;  %v1118_v35 = vld [vmem:[%s1276_s8 + $0x100] ss:$16 sps:$4 sm:$0xff]   ;;  %v1119_v36 = vld [vmem:[%s1276_s8 + $0x108] ss:$16 sps:$4 sm:$0xff]  }
  0x28   : > { %v1120_v37 = vld [vmem:[%s1276_s8 + $0x124] ss:$16 sps:$4 sm:$0xff]   ;;  %v1122_v38 = vld [vmem:[%s1276_s8 + $0x12c] ss:$16 sps:$4 sm:$0xff]   ;;  %v1124_v39 = vld [vmem:[%s1276_s8 + $0x120] ss:$16 sps:$4 sm:$0xff]  }
  0x29   : > { %v1125_v40 = vld [vmem:[%s1276_s8 + $0x128] ss:$16 sps:$4 sm:$0xff]   ;;  %v1126_v41 = vld [vmem:[%s1276_s8 + $0x144] ss:$16 sps:$4 sm:$0xff]   ;;  %v1128_v42 = vld [vmem:[%s1276_s8 + $0x14c] ss:$16 sps:$4 sm:$0xff]  }
  0x2a   : > { %669 = vmatpush1.bf16.msra.mxu0 %v1088_v15  ;;  %710 = vmatpush1.bf16.msra.mxu1 %v1089_v16  ;;  %v1130_v43 = vld [vmem:[%s1276_s8 + $0x140] ss:$16 sps:$4 sm:$0xff]   ;;  %v1131_v44 = vld [vmem:[%s1276_s8 + $0x148] ss:$16 sps:$4 sm:$0xff]   ;;  %v1132_v45 = vld [vmem:[%s1276_s8 + $0x164] ss:$16 sps:$4 sm:$0xff]  }
  0x2b   : > { %670 = vmatprep.subr.bf16.mxu0 %v1090_v17  ;;  %711 = vmatprep.subr.bf16.mxu1 %v1092_v18  ;;  %v1134_v46 = vld [vmem:[%s1276_s8 + $0x16c] ss:$16 sps:$4 sm:$0xff]   ;;  %v270_v47 = vld [vmem:[%s1266_s24] sm:$0xff]  ;;  %v1137_v50 = vld [vmem:[%s1276_s8 + $0x168] ss:$16 sps:$4 sm:$0xff]   ;;  %p1020_p9 = scmp.ne.s32.totalorder %s1189_s12, 1 }
  0x2c   : > { %v955_v48 = vcombine.high %v270_v47, %v270_v47  ;;  %v1136_v49 = vld [vmem:[%s1276_s8 + $0x160] ss:$16 sps:$4 sm:$0xff]   ;;  %v1138_v51 = vld [vmem:[%s1276_s8 + $0x184] ss:$16 sps:$4 sm:$0xff]   ;;  %v1140_v52 = vld [vmem:[%s1276_s8 + $0x18c] ss:$16 sps:$4 sm:$0xff]   ;;  %v954_v3 = vcombine.low %v270_v47, %v270_v47 }
  0x2d   : > { %v1142_v53 = vld [vmem:[%s1276_s8 + $0x180] ss:$16 sps:$4 sm:$0xff]   ;;  %v1143_v54 = vld [vmem:[%s1276_s8 + $0x188] ss:$16 sps:$4 sm:$0xff]   ;;  %v1144_v55 = vld [vmem:[%s1276_s8 + $0x1a4] ss:$16 sps:$4 sm:$0xff]  }
  0x2e   : > { %671 = vmatpush1.bf16.msra.mxu0 %v1094_v19  ;;  %712 = vmatpush1.bf16.msra.mxu1 %v1095_v20  ;;  %v1146_v56 = vld [vmem:[%s1276_s8 + $0x1ac] ss:$16 sps:$4 sm:$0xff]   ;;  %v1148_v57 = vld [vmem:[%s1276_s8 + $0x1a0] ss:$16 sps:$4 sm:$0xff]   ;;  %v1149_v58 = vld [vmem:[%s1276_s8 + $0x1a8] ss:$16 sps:$4 sm:$0xff]  }
  0x2f   : > { %672 = vmatprep.subr.bf16.mxu0 %v1096_v21  ;;  %713 = vmatprep.subr.bf16.mxu1 %v1098_v22  ;;  %v1150_v59 = vld [vmem:[%s1276_s8 + $0x1c4] ss:$16 sps:$4 sm:$0xff]   ;;  %v1152_v60 = vld [vmem:[%s1276_s8 + $0x1cc] ss:$16 sps:$4 sm:$0xff]   ;;  %v1154_v61 = vld [vmem:[%s1276_s8 + $0x1c0] ss:$16 sps:$4 sm:$0xff]  }
  0x30   : > { %694 = vmatprep.mubr.bf16.mxu0 %v955_v48  ;;  %735 = vmatprep.mubr.bf16.mxu1 %v955_v48  ;;  %v1155_v62 = vld [vmem:[%s1276_s8 + $0x1c8] ss:$16 sps:$4 sm:$0xff]   ;;  %v1156_v63 = vld [vmem:[%s1276_s8 + $0x1e4] ss:$16 sps:$4 sm:$0xff]   ;;  %v1158_v0 = vld [vmem:[%s1276_s8 + $0x1ec] ss:$16 sps:$4 sm:$0xff]  }
  0x31   : > { %v1160_v1 = vld [vmem:[%s1276_s8 + $0x1e0] ss:$16 sps:$4 sm:$0xff]   ;;  %v1161_v2 = vld [vmem:[%s1276_s8 + $0x1e8] ss:$16 sps:$4 sm:$0xff]   ;;  %v1208_v21 = vmov (!%p1020_p9), 0  }
  0x32   : > { %673 = vmatpush1.bf16.msra.mxu0 %v1100_v23  ;;  %714 = vmatpush1.bf16.msra.mxu1 %v1101_v24  ;;  %v266_v4 = vld [vmem:[#allocation2] sm:$0xff]  ;;  %v268_v5 = vld [vmem:[#allocation2 + $0x10] sm:$0xff]  ;;  %v267_v6 = vld [vmem:[#allocation2 + $0x8] sm:$0xff] }
  0x33   : > { %674 = vmatprep.subr.bf16.mxu0 %v1102_v25  ;;  %715 = vmatprep.subr.bf16.mxu1 %v1104_v26  ;;  %v269_v7 = vld [vmem:[#allocation2 + $0x18] sm:$0xff]  ;;  %v760_v20 = vld [vmem:[%s1369_s2] sm:$0xff] (!%p1020_p9) }
  0x34   : > { %1164 = vset.pattern.permute.xlu0 (!%p1020_p9), %v1208_v21 }
  0x35   : > { %763 = vperm.xlu0 (!%p1020_p9), %1164, %v760_v20  }
  0x36   : > { %675 = vmatpush1.bf16.msra.mxu0 %v1106_v27  ;;  %716 = vmatpush1.bf16.msra.mxu1 %v1107_v28 }
  0x37   : > { %676 = vmatprep.subr.bf16.mxu0 %v1108_v29  ;;  %717 = vmatprep.subr.bf16.mxu1 %v1110_v30 }
  0x3a   : > { %677 = vmatpush1.bf16.msra.mxu0 %v1112_v31  ;;  %718 = vmatpush1.bf16.msra.mxu1 %v1113_v32 }
  0x3b   : > { %678 = vmatprep.subr.bf16.mxu0 %v1114_v33  ;;  %719 = vmatprep.subr.bf16.mxu1 %v1116_v34 }
  0x3e   : > { %679 = vmatpush1.bf16.msra.mxu0 %v1118_v35  ;;  %720 = vmatpush1.bf16.msra.mxu1 %v1119_v36 }
  0x3f   : > { %680 = vmatprep.subr.bf16.mxu0 %v1120_v37  ;;  %721 = vmatprep.subr.bf16.mxu1 %v1122_v38 }
  0x42   : > { %681 = vmatpush1.bf16.msra.mxu0 %v1124_v39  ;;  %722 = vmatpush1.bf16.msra.mxu1 %v1125_v40 }
  0x43   : > { %682 = vmatprep.subr.bf16.mxu0 %v1126_v41  ;;  %723 = vmatprep.subr.bf16.mxu1 %v1128_v42 }
  0x46   : > { %683 = vmatpush1.bf16.msra.mxu0 %v1130_v43  ;;  %724 = vmatpush1.bf16.msra.mxu1 %v1131_v44 }
  0x47   : > { %684 = vmatprep.subr.bf16.mxu0 %v1132_v45  ;;  %725 = vmatprep.subr.bf16.mxu1 %v1134_v46 }
  0x4a   : > { %685 = vmatpush1.bf16.msra.mxu0 %v1136_v49  ;;  %726 = vmatpush1.bf16.msra.mxu1 %v1137_v50 }
  0x4b   : > { %686 = vmatprep.subr.bf16.mxu0 %v1138_v51  ;;  %727 = vmatprep.subr.bf16.mxu1 %v1140_v52 }
  0x4e   : > { %687 = vmatpush1.bf16.msra.mxu0 %v1142_v53  ;;  %728 = vmatpush1.bf16.msra.mxu1 %v1143_v54 }
  0x4f   : > { %688 = vmatprep.subr.bf16.mxu0 %v1144_v55  ;;  %729 = vmatprep.subr.bf16.mxu1 %v1146_v56 }
  0x52   : > { %689 = vmatpush1.bf16.msra.mxu0 %v1148_v57  ;;  %730 = vmatpush1.bf16.msra.mxu1 %v1149_v58 }
  0x53   : > { %690 = vmatprep.subr.bf16.mxu0 %v1150_v59  ;;  %731 = vmatprep.subr.bf16.mxu1 %v1152_v60 }
  0x56   : > { %691 = vmatpush1.bf16.msra.mxu0 %v1154_v61  ;;  %732 = vmatpush1.bf16.msra.mxu1 %v1155_v62 }
  0x57   : > { %692 = vmatprep.subr.bf16.mxu0 %v1156_v63  ;;  %733 = vmatprep.subr.bf16.mxu1 %v1158_v0 }
  0x5a   : > { %693 = vmatpush1.bf16.msra.mxu0 %v1160_v1  ;;  %734 = vmatpush1.bf16.msra.mxu1 %v1161_v2 }
  0x5d   : > { %695 = vmatmul.mubr.bf16.vlgmr.msra.gmra.mrb[0].mxu0 %v954_v3  ;;  %736 = vmatmul.mubr.bf16.vlgmr.msra.gmra.mrb[0].mxu1 %v954_v3 }
  0xb4   : > { %v764_v24 = vpop.permute.xlu0 (!%p1020_p9), %763 }
 0x12e   : > { %755 = sbr.rel (%p1020_p9) target bundleno = 643 (0x283), region = 40 }
 0x130   : > { %v696_v8 = vpop.f32.mrb[0].mxu0  ;;  %v737_v9 = vpop.f32.mrb[0].mxu1 }
 0x131   : > { %v744_v10 = vadd.f32 %v696_v8, %v266_v4  ;;  %v746_v11 = vadd.f32 %v737_v9, %v268_v5  ;;  %v698_v12 = vpop.f32.mrb[1].mxu0  ;;  %v739_v13 = vpop.f32.mrb[1].mxu1 }
 0x132   : > { %v745_v14 = vadd.f32 %v698_v12, %v267_v6  ;;  %v747_v15 = vadd.f32 %v739_v13, %v269_v7  ;;  %v700_v16 = vpop.f32.mrb[2].mxu0  ;;  %v741_v17 = vpop.f32.mrb[2].mxu1 }
 0x133   : > { %748 = vst [vmem:[#allocation2] sm:$0xff] %v744_v10  ;;  %750 = vst [vmem:[#allocation2 + $0x10] sm:$0xff] %v746_v11  ;;  %v701_v18 = vpop.f32.mrb[3].mxu0  ;;  %v742_v19 = vpop.f32.mrb[3].mxu1 }
 0x134   : > { %749 = vst [vmem:[#allocation2 + $0x8] sm:$0xff] %v745_v14  ;;  %751 = vst [vmem:[#allocation2 + $0x18] sm:$0xff] %v747_v15 }
 0x13a   : > { %v756_v22 = vld [vmem:[#allocation2] sm:$0xff]  ;;  %v758_v25 = vld [vmem:[#allocation2 + $0x10] sm:$0xff] }
 0x13b   : > { %v757_v23 = vld [vmem:[#allocation2 + $0x8] sm:$0xff]  ;;  %v766_v26 = vadd.f32 %v764_v24, %v756_v22  ;;  %v759_v28 = vld [vmem:[#allocation2 + $0x18] sm:$0xff]  ;;  %v768_v29 = vadd.f32 %v764_v24, %v758_v25 }
 0x13c   : > { %v767_v27 = vadd.f32 %v764_v24, %v757_v23  ;;  %v769_v31 = vadd.f32 %v764_v24, %v759_v28 }
 0x13e   : > { %v783_v30 = vadd.f32 %v767_v27, %v766_v26 }
 0x140   : > { %v784_v32 = vadd.f32 %v783_v30, %v768_v29 }
 0x142   : > { %v785_v33 = vadd.f32 %v784_v32, %v769_v31 }
 0x144   : > { %786 = vadd.xlane.f32.xlu0 %v785_v33 }
 0x1d1   : > { %v787_v34 = vpop.xlane.xlu0 %786 }
 0x1d2   : > { %v788_v35 = vmul.f32 0.001953125, %v787_v34 }
 0x1d4   : > { %v789_v36 = vsub.f32 %v766_v26, %v788_v35  ;;  %v790_v37 = vsub.f32 %v767_v27, %v788_v35  ;;  %v791_v38 = vsub.f32 %v768_v29, %v788_v35  ;;  %v792_v39 = vsub.f32 %v769_v31, %v788_v35 }
 0x1d6   : > { %v793_v40 = vmul.f32 %v789_v36, %v789_v36  ;;  %v794_v41 = vmul.f32 %v790_v37, %v790_v37  ;;  %v795_v42 = vmul.f32 %v791_v38, %v791_v38  ;;  %v796_v44 = vmul.f32 %v792_v39, %v792_v39 }
 0x1d8   : > { %v801_v43 = vadd.f32 %v794_v41, %v793_v40 }
 0x1da   : > { %v802_v45 = vadd.f32 %v801_v43, %v795_v42 }
 0x1dc   : > { %v803_v46 = vadd.f32 %v802_v45, %v796_v44 }
 0x1de   : > { %804 = vadd.xlane.f32.xlu1 %v803_v46 }
 0x26b   : > { %v805_v47 = vpop.xlane.xlu1 %804 }
 0x26c   : > { %v806_v48 = vmul.f32 0.001953125, %v805_v47 }
 0x26e   : > { %v807_v49 = vadd.f32 1e-05, %v806_v48 }
 0x270   : > { %1165 = vrsqrt.f32 %v807_v49 }
 0x27a   : > { %v1166_v50 = vpop.eup %1165 }
 0x27b   : > { %v809_v51 = vmul.f32 %v1166_v50, %v789_v36  ;;  %v810_v52 = vmul.f32 %v1166_v50, %v790_v37  ;;  %v811_v53 = vmul.f32 %v1166_v50, %v791_v38  ;;  %v812_v54 = vmul.f32 %v1166_v50, %v792_v39 }
 0x27d   : > { %vm813_vm0 = vcmp.ge.f32.partialorder %v809_v51, 0.0  ;;  %vm814_vm1 = vcmp.ge.f32.partialorder %v810_v52, 0.0  ;;  %vm815_vm2 = vcmp.ge.f32.partialorder %v811_v53, 0.0  ;;  %vm816_vm3 = vcmp.ge.f32.partialorder %v812_v54, 0.0 }
 0x27e   : > { %v817_v55 = vmul.f32 0.01, %v809_v51  ;;  %v818_v56 = vmul.f32 0.01, %v810_v52  ;;  %v819_v57 = vmul.f32 0.01, %v811_v53 }
 0x27f   : > { %v820_v58 = vmul.f32 0.01, %v812_v54 }
 0x280   : > { %v821_v59 = vsel %vm813_vm0, %v809_v51, %v817_v55  ;;  %v822_v60 = vsel %vm814_vm1, %v810_v52, %v818_v56  ;;  %v823_v61 = vsel %vm815_vm2, %v811_v53, %v819_v57 }
 0x281   : > { %v824_v62 = vsel %vm816_vm3, %v812_v54, %v820_v58  ;;  %825 = vst [vmem:[%s1271_s30] sm:$0xff] %v821_v59  ;;  %826 = vst [vmem:[%s1271_s30 + $0x8] sm:$0xff] %v822_v60 }
 0x282   : > { %827 = vst [vmem:[%s1271_s30 + $0x10] sm:$0xff] %v823_v61  ;;  %828 = vst [vmem:[%s1271_s30 + $0x18] sm:$0xff] %v824_v62 }
 0x283 PF: > { %s13_s16 = sadd.s32 1, %s1205_s16   ;;  %s1371_s12 = smov %s1197_s14 }
 0x284   : > { %p10_p10 = scmp.ge.s32.totalorder %s13_s16, 6   ;;  %s1372_s13 = smov %s1201_s15 }
 0x285   : > { %s1373_s14 = smov %s1376_s17  ;;  %s1374_s15 = smov %s1380_s18 }
 0x286   :  { %12 = sbr.rel (!%p10_p10) target bundleno = 3 (0x3), region = 73 }

// kernel: unet3d_forward.47
= control target key start
LH: loop header
LB: loop body
LE: loop exit
PB: predicated region body
PF: predicated region fallthrough
CT: control target
= control target key end

     0   :  { %s900_s12 = smov 0   ;;  %s902_s13 = smov 0   ;;  %s987_s0 = inlined_call_operand.vmem [shape: bf16[8,144], index: 0, kind: input, shape index: {}]   ;;  %s988_s1 = inlined_call_operand.vmem [shape: bf16[2,144,512], index: 1, kind: input, shape index: {}]   ;;  %s989_s2 = inlined_call_operand.vmem [shape: f32[8,1], index: 2, kind: input, shape index: {}]   ;;  %s990_s3 = inlined_call_operand.vmem [shape: f32[2,8,512], index: 3, kind: output, shape index: {}]  }
   0x1   :  { %s904_s14 = smov 0  }
   0x2 LB: > { %s32_s15 = sadd.s32 1, %s873_s13  ;;  %p725_p0 = scmp.ge.s32.totalorder %s877_s14, 1  ;;  %s877_s14 = sphi %s904_s14, %s13_s14   ;;  %s873_s13 = sphi %s902_s13, %s992_s13   ;;  %s869_s12 = sphi %s900_s12, %s991_s12  }
   0x3   : > { %p34_p1 = scmp.ge.s32.totalorder %s32_s15, 2  ;;  %p184_p2 = scmp.lt.s32.totalorder %s877_s14, 3 }
   0x5   : > { %s994_s15 = smov (%p34_p1, %s32_s15), 0  ;;  %p185_p3 = pnand %p725_p0, %p184_p2 }
   0x6   : > { %p234_p4 = scmp.lt.s32.totalorder (!%p185_p3), %s869_s12, 1  ;;  %v921_v0 = vld [vmem:[%s987_s0] sm:$0xff] (!%p185_p3)  ;;  %vm494_vm0 = vcmask (!%p185_p3), 130048   ;;  %v879_v3 = vmov (!%p185_p3), 0  }
   0x7   : > { %188 = sbr.rel (%p185_p3) target bundleno = 271 (0x10f), region = 32  ;;  %v595_v1 = vld [vmem:[%s989_s2] sm:$0xff] (!%p185_p3)  ;;  %v730_v2 = vcombine.high (!%p185_p3), %v921_v0, %v921_v0  ;;  %798 = vset.pattern.permute.xlu0 (!%p185_p3), %v879_v3  ;;  %v729_v40 = vcombine.low (!%p185_p3), %v921_v0, %v921_v0 }
   0x8   : > { %598 = vperm.xlu0 (!%p185_p3), %798, %v595_v1  }
   0x9   : > { %767 = vmatprep.mubr.msk.bf16.mxu0 (!%p185_p3), %vm494_vm0, %v730_v2  ;;  %768 = vmatprep.mubr.msk.bf16.mxu1 (!%p185_p3), %vm494_vm0, %v730_v2 }
   0xe   : > { %s996_s12 = smov (!%p234_p4, %s869_s12), 1 }
   0xf   : > { %s772_s20 = smul.u32 288, %s996_s12  ;;  %s771_s24 = sshll.u32 %s996_s12, 5 }
  0x10   : > { %s256_s27 = scalar_lea.vmem %s990_s3, %s771_s24 }
  0x11   : > { %s934_s23 = scalar_lea.vmem %s988_s1, %s772_s20 }
  0x12   : > { %v799_v4 = vld [vmem:[%s934_s23 + $0x4] ss:$16 sps:$4 sm:$0xff]   ;;  %v801_v5 = vld [vmem:[%s934_s23 + $0xc] ss:$16 sps:$4 sm:$0xff]   ;;  %v803_v6 = vld [vmem:[%s934_s23] ss:$16 sps:$4 sm:$0xff]  }
  0x13   : > { %498 = vmatprep.subr.bf16.mxu0 %v799_v4  ;;  %v804_v7 = vld [vmem:[%s934_s23 + $0x8] ss:$16 sps:$4 sm:$0xff]   ;;  %539 = vmatprep.subr.bf16.mxu1 %v801_v5  ;;  %v805_v8 = vld [vmem:[%s934_s23 + $0x24] ss:$16 sps:$4 sm:$0xff]   ;;  %v807_v9 = vld [vmem:[%s934_s23 + $0x2c] ss:$16 sps:$4 sm:$0xff]  }
  0x14   : > { %499 = vmatpush1.bf16.msra.mxu0 %v803_v6  ;;  %540 = vmatpush1.bf16.msra.mxu1 %v804_v7  ;;  %v809_v10 = vld [vmem:[%s934_s23 + $0x20] ss:$16 sps:$4 sm:$0xff]   ;;  %v810_v11 = vld [vmem:[%s934_s23 + $0x28] ss:$16 sps:$4 sm:$0xff]   ;;  %v811_v12 = vld [vmem:[%s934_s23 + $0x44] ss:$16 sps:$4 sm:$0xff]  }
  0x15   : > { %500 = vmatprep.subr.bf16.mxu0 %v805_v8  ;;  %541 = vmatprep.subr.bf16.mxu1 %v807_v9  ;;  %v813_v13 = vld [vmem:[%s934_s23 + $0x4c] ss:$16 sps:$4 sm:$0xff]   ;;  %v815_v14 = vld [vmem:[%s934_s23 + $0x40] ss:$16 sps:$4 sm:$0xff]   ;;  %v816_v15 = vld [vmem:[%s934_s23 + $0x48] ss:$16 sps:$4 sm:$0xff]  }
  0x16   : > { %v817_v16 = vld [vmem:[%s934_s23 + $0x64] ss:$16 sps:$4 sm:$0xff]   ;;  %v819_v17 = vld [vmem:[%s934_s23 + $0x6c] ss:$16 sps:$4 sm:$0xff]   ;;  %v821_v18 = vld [vmem:[%s934_s23 + $0x60] ss:$16 sps:$4 sm:$0xff]  }
  0x17   : > { %v822_v19 = vld [vmem:[%s934_s23 + $0x68] ss:$16 sps:$4 sm:$0xff]   ;;  %v823_v20 = vld [vmem:[%s934_s23 + $0x84] ss:$16 sps:$4 sm:$0xff]   ;;  %v825_v21 = vld [vmem:[%s934_s23 + $0x8c] ss:$16 sps:$4 sm:$0xff]  }
  0x18   : > { %501 = vmatpush1.bf16.msra.mxu0 %v809_v10  ;;  %542 = vmatpush1.bf16.msra.mxu1 %v810_v11  ;;  %v827_v22 = vld [vmem:[%s934_s23 + $0x80] ss:$16 sps:$4 sm:$0xff]   ;;  %v828_v23 = vld [vmem:[%s934_s23 + $0x88] ss:$16 sps:$4 sm:$0xff]   ;;  %v829_v24 = vld [vmem:[%s934_s23 + $0xa4] ss:$16 sps:$4 sm:$0xff]  }
  0x19   : > { %502 = vmatprep.subr.bf16.mxu0 %v811_v12  ;;  %543 = vmatprep.subr.bf16.mxu1 %v813_v13  ;;  %v831_v25 = vld [vmem:[%s934_s23 + $0xac] ss:$16 sps:$4 sm:$0xff]   ;;  %v833_v26 = vld [vmem:[%s934_s23 + $0xa0] ss:$16 sps:$4 sm:$0xff]   ;;  %v834_v27 = vld [vmem:[%s934_s23 + $0xa8] ss:$16 sps:$4 sm:$0xff]  }
  0x1a   : > { %v835_v28 = vld [vmem:[%s934_s23 + $0xc4] ss:$16 sps:$4 sm:$0xff]   ;;  %v837_v29 = vld [vmem:[%s934_s23 + $0xcc] ss:$16 sps:$4 sm:$0xff]   ;;  %v839_v30 = vld [vmem:[%s934_s23 + $0xc0] ss:$16 sps:$4 sm:$0xff]  }
  0x1b   : > { %v840_v31 = vld [vmem:[%s934_s23 + $0xc8] ss:$16 sps:$4 sm:$0xff]   ;;  %v841_v32 = vld [vmem:[%s934_s23 + $0xe4] ss:$16 sps:$4 sm:$0xff]   ;;  %v843_v33 = vld [vmem:[%s934_s23 + $0xec] ss:$16 sps:$4 sm:$0xff]  }
  0x1c   : > { %503 = vmatpush1.bf16.msra.mxu0 %v815_v14  ;;  %544 = vmatpush1.bf16.msra.mxu1 %v816_v15  ;;  %v845_v34 = vld [vmem:[%s934_s23 + $0xe0] ss:$16 sps:$4 sm:$0xff]   ;;  %v846_v35 = vld [vmem:[%s934_s23 + $0xe8] ss:$16 sps:$4 sm:$0xff]   ;;  %v847_v36 = vld [vmem:[%s934_s23 + $0x104] ss:$16 sps:$4 sm:$0xff]  }
  0x1d   : > { %504 = vmatprep.subr.bf16.mxu0 %v817_v16  ;;  %545 = vmatprep.subr.bf16.mxu1 %v819_v17  ;;  %v849_v37 = vld [vmem:[%s934_s23 + $0x10c] ss:$16 sps:$4 sm:$0xff]   ;;  %v851_v38 = vld [vmem:[%s934_s23 + $0x100] ss:$16 sps:$4 sm:$0xff]   ;;  %v852_v39 = vld [vmem:[%s934_s23 + $0x108] ss:$16 sps:$4 sm:$0xff]  }
  0x20   : > { %505 = vmatpush1.bf16.msra.mxu0 %v821_v18  ;;  %546 = vmatpush1.bf16.msra.mxu1 %v822_v19 }
  0x21   : > { %506 = vmatprep.subr.bf16.mxu0 %v823_v20  ;;  %547 = vmatprep.subr.bf16.mxu1 %v825_v21 }
  0x24   : > { %507 = vmatpush1.bf16.msra.mxu0 %v827_v22  ;;  %548 = vmatpush1.bf16.msra.mxu1 %v828_v23 }
  0x25   : > { %508 = vmatprep.subr.bf16.mxu0 %v829_v24  ;;  %549 = vmatprep.subr.bf16.mxu1 %v831_v25 }
  0x28   : > { %509 = vmatpush1.bf16.msra.mxu0 %v833_v26  ;;  %550 = vmatpush1.bf16.msra.mxu1 %v834_v27 }
  0x29   : > { %510 = vmatprep.subr.bf16.mxu0 %v835_v28  ;;  %551 = vmatprep.subr.bf16.mxu1 %v837_v29 }
  0x2c   : > { %511 = vmatpush1.bf16.msra.mxu0 %v839_v30  ;;  %552 = vmatpush1.bf16.msra.mxu1 %v840_v31 }
  0x2d   : > { %512 = vmatprep.subr.bf16.mxu0 %v841_v32  ;;  %553 = vmatprep.subr.bf16.mxu1 %v843_v33 }
  0x30   : > { %513 = vmatpush1.bf16.msra.mxu0 %v845_v34  ;;  %554 = vmatpush1.bf16.msra.mxu1 %v846_v35 }
  0x31   : > { %514 = vmatprep.subr.bf16.mxu0 %v847_v36  ;;  %555 = vmatprep.subr.bf16.mxu1 %v849_v37 }
  0x34   : > { %515 = vmatpush1.bf16.msra.mxu0 %v851_v38  ;;  %556 = vmatpush1.bf16.msra.mxu1 %v852_v39 }
  0x37   : > { %531 = vmatmul.mubr.bf16.vlgmr.msra.gmra.mrb[0].mxu0 %v729_v40  ;;  %572 = vmatmul.mubr.bf16.vlgmr.msra.gmra.mrb[0].mxu1 %v729_v40 }
  0x87   : > { %v599_v41 = vpop.permute.xlu0 %598 }
 0x10a   : > { %v532_v42 = vpop.f32.mrb[0].mxu0  ;;  %v573_v43 = vpop.f32.mrb[0].mxu1 }
 0x10b   : > { %v601_v44 = vadd.f32 %v599_v41, %v532_v42  ;;  %v603_v45 = vadd.f32 %v599_v41, %v573_v43  ;;  %v534_v46 = vpop.f32.mrb[1].mxu0  ;;  %v575_v47 = vpop.f32.mrb[1].mxu1 }
 0x10c   : > { %v602_v48 = vadd.f32 %v599_v41, %v534_v46  ;;  %v604_v49 = vadd.f32 %v599_v41, %v575_v47  ;;  %v536_v50 = vpop.f32.mrb[2].mxu0  ;;  %v577_v51 = vpop.f32.mrb[2].mxu1 }
 0x10d   : > { %605 = vst [vmem:[%s256_s27] sm:$0xff] %v601_v44  ;;  %607 = vst [vmem:[%s256_s27 + $0x10] sm:$0xff] %v603_v45  ;;  %v537_v52 = vpop.f32.mrb[3].mxu0  ;;  %v578_v53 = vpop.f32.mrb[3].mxu1 }
 0x10e   : > { %606 = vst [vmem:[%s256_s27 + $0x8] sm:$0xff] %v602_v48  ;;  %608 = vst [vmem:[%s256_s27 + $0x18] sm:$0xff] %v604_v49 }
 0x10f PF: > { %s13_s14 = sadd.s32 1, %s877_s14   ;;  %s991_s12 = smov %s873_s13 }
 0x110   : > { %p10_p5 = scmp.ge.s32.totalorder %s13_s14, 4   ;;  %s992_s13 = smov %s994_s15 }
 0x112   :  { %12 = sbr.rel (!%p10_p5) target bundleno = 2 (0x2), region = 73 }

// kernel: unet3d_forward.51
= control target key start
LH: loop header
LB: loop body
LE: loop exit
PB: predicated region body
PF: predicated region fallthrough
CT: control target
= control target key end

     0   :  { %s1094_s12 = smov 0   ;;  %s1096_s13 = smov 0   ;;  %s1207_s0 = inlined_call_operand.vmem [shape: bf16[2,216], index: 0, kind: input, shape index: {}]   ;;  %s1208_s1 = inlined_call_operand.vmem [shape: bf16[2,216,512], index: 1, kind: input, shape index: {}]   ;;  %s1209_s2 = inlined_call_operand.vmem [shape: f32[2,1], index: 2, kind: input, shape index: {}]   ;;  %s1210_s3 = inlined_call_operand.vmem [shape: f32[2,2,512], index: 3, kind: output, shape index: {}]  }
   0x1   :  { %s1098_s14 = smov 0  }
   0x2 LB: > { %s32_s15 = sadd.s32 1, %s1064_s13  ;;  %p866_p0 = scmp.ge.s32.totalorder %s1068_s14, 1  ;;  %s1068_s14 = sphi %s1098_s14, %s13_s14   ;;  %s1064_s13 = sphi %s1096_s13, %s1212_s13   ;;  %s1060_s12 = sphi %s1094_s12, %s1211_s12  }
   0x3   : > { %p34_p1 = scmp.ge.s32.totalorder %s32_s15, 2  ;;  %p183_p2 = scmp.lt.s32.totalorder %s1068_s14, 3 }
   0x5   : > { %s1214_s15 = smov (%p34_p1, %s32_s15), 0  ;;  %p184_p3 = pnand %p866_p0, %p183_p2 }
   0x6   : > { %p231_p4 = scmp.lt.s32.totalorder (!%p184_p3), %s1060_s12, 1  ;;  %v1115_v0 = vld.sshfl [vmem:[%s1207_s0] sm:$0x11 pattern:$0x75316420] (!%p184_p3)  ;;  %v329_v1 = vlaneseq (!%p184_p3)  ;;  %v1071_v6 = vmov (!%p184_p3), 0  }
   0x7   : > { %187 = sbr.rel (%p184_p3) target bundleno = 297 (0x129), region = 32  ;;  %v738_v2 = vld [vmem:[%s1209_s2] sm:$0x3] (!%p184_p3)  ;;  %v1070_v3 = vmov (!%p184_p3), 1966171168   ;;  %963 = vset.pattern.permute.xlu0 (!%p184_p3), %v1071_v6  ;;  %v325_v7 = vcombine.high (!%p184_p3), %v1115_v0, %v1115_v0  ;;  %vm611_vm0 = vcmask (!%p184_p3), 719872  }
   0x8   : > { %v327_v4 = vunpack.c.l.s4 (!%p184_p3), %v1070_v3  ;;  %v1122_v5 = vshrl.u32 (!%p184_p3), %v329_v1, 7  ;;  %741 = vperm.xlu0 (!%p184_p3), %963, %v738_v2   ;;  %vm615_vm1 = vcmask (!%p184_p3), 1043456  }
   0xa   : > { %v328_v8 = vunpack.c.0.s8 (!%p184_p3), %v327_v4 }
   0xc   : > { %v1133_v9 = vsub.s32 (!%p184_p3), %v328_v8, %v1122_v5 }
   0xe   : > { %s1216_s12 = smov (!%p231_p4, %s1060_s12), 1  ;;  %v339_v12 = vrot.slane %v325_v7, %v1133_v9 }
   0xf   : > { %s934_s20 = smul.u32 432, %s1216_s12  ;;  %s933_s24 = sshll.u32 %s1216_s12, 3 }
  0x10   : > { %928 = vmatprep.mubr.msk.bf16.mxu0 %vm611_vm0, %v339_v12  ;;  %930 = vmatprep.mubr.msk.bf16.mxu1 %vm611_vm0, %v339_v12  ;;  %s253_s27 = scalar_lea.vmem %s1210_s3, %s933_s24 }
  0x11   : > { %s1130_s23 = scalar_lea.vmem %s1208_s1, %s934_s20 }
  0x12   : > { %v964_v10 = vld [vmem:[%s1130_s23 + $0x4] ss:$16 sps:$4 sm:$0xff]   ;;  %v966_v11 = vld [vmem:[%s1130_s23 + $0xc] ss:$16 sps:$4 sm:$0xff]   ;;  %v968_v13 = vld [vmem:[%s1130_s23] ss:$16 sps:$4 sm:$0xff]  }
  0x13   : > { %628 = vmatprep.subr.bf16.mxu0 %v964_v10  ;;  %v969_v14 = vld [vmem:[%s1130_s23 + $0x8] ss:$16 sps:$4 sm:$0xff]   ;;  %669 = vmatprep.subr.bf16.mxu1 %v966_v11  ;;  %v970_v15 = vld [vmem:[%s1130_s23 + $0x24] ss:$16 sps:$4 sm:$0xff]   ;;  %v972_v16 = vld [vmem:[%s1130_s23 + $0x2c] ss:$16 sps:$4 sm:$0xff]   ;;  %v332_v10 = vrot.slane %v1115_v0, %v1133_v9 }
  0x14   : > { %629 = vmatpush1.bf16.msra.mxu0 %v968_v13  ;;  %670 = vmatpush1.bf16.msra.mxu1 %v969_v14  ;;  %v974_v17 = vld [vmem:[%s1130_s23 + $0x20] ss:$16 sps:$4 sm:$0xff]   ;;  %v975_v18 = vld [vmem:[%s1130_s23 + $0x28] ss:$16 sps:$4 sm:$0xff]   ;;  %v976_v19 = vld [vmem:[%s1130_s23 + $0x44] ss:$16 sps:$4 sm:$0xff]  }
  0x15   : > { %630 = vmatprep.subr.bf16.mxu0 %v970_v15  ;;  %671 = vmatprep.subr.bf16.mxu1 %v972_v16  ;;  %v978_v20 = vld [vmem:[%s1130_s23 + $0x4c] ss:$16 sps:$4 sm:$0xff]   ;;  %v980_v21 = vld [vmem:[%s1130_s23 + $0x40] ss:$16 sps:$4 sm:$0xff]   ;;  %v981_v22 = vld [vmem:[%s1130_s23 + $0x48] ss:$16 sps:$4 sm:$0xff]  }
  0x16   : > { %v982_v23 = vld [vmem:[%s1130_s23 + $0x64] ss:$16 sps:$4 sm:$0xff]   ;;  %v984_v24 = vld [vmem:[%s1130_s23 + $0x6c] ss:$16 sps:$4 sm:$0xff]   ;;  %v986_v25 = vld [vmem:[%s1130_s23 + $0x60] ss:$16 sps:$4 sm:$0xff]  }
  0x17   : > { %v987_v26 = vld [vmem:[%s1130_s23 + $0x68] ss:$16 sps:$4 sm:$0xff]   ;;  %v988_v27 = vld [vmem:[%s1130_s23 + $0x84] ss:$16 sps:$4 sm:$0xff]   ;;  %v990_v28 = vld [vmem:[%s1130_s23 + $0x8c] ss:$16 sps:$4 sm:$0xff]  }
  0x18   : > { %631 = vmatpush1.bf16.msra.mxu0 %v974_v17  ;;  %672 = vmatpush1.bf16.msra.mxu1 %v975_v18  ;;  %v992_v29 = vld [vmem:[%s1130_s23 + $0x80] ss:$16 sps:$4 sm:$0xff]   ;;  %v993_v30 = vld [vmem:[%s1130_s23 + $0x88] ss:$16 sps:$4 sm:$0xff]   ;;  %v994_v31 = vld [vmem:[%s1130_s23 + $0xa4] ss:$16 sps:$4 sm:$0xff]  }
  0x19   : > { %632 = vmatprep.subr.bf16.mxu0 %v976_v19  ;;  %673 = vmatprep.subr.bf16.mxu1 %v978_v20  ;;  %v996_v32 = vld [vmem:[%s1130_s23 + $0xac] ss:$16 sps:$4 sm:$0xff]   ;;  %v998_v33 = vld [vmem:[%s1130_s23 + $0xa0] ss:$16 sps:$4 sm:$0xff]   ;;  %v999_v34 = vld [vmem:[%s1130_s23 + $0xa8] ss:$16 sps:$4 sm:$0xff]  }
  0x1a   : > { %v1000_v35 = vld [vmem:[%s1130_s23 + $0xc4] ss:$16 sps:$4 sm:$0xff]   ;;  %v1002_v36 = vld [vmem:[%s1130_s23 + $0xcc] ss:$16 sps:$4 sm:$0xff]   ;;  %v1004_v37 = vld [vmem:[%s1130_s23 + $0xc0] ss:$16 sps:$4 sm:$0xff]  }
  0x1b   : > { %v1005_v38 = vld [vmem:[%s1130_s23 + $0xc8] ss:$16 sps:$4 sm:$0xff]   ;;  %v1006_v39 = vld [vmem:[%s1130_s23 + $0xe4] ss:$16 sps:$4 sm:$0xff]   ;;  %v1008_v40 = vld [vmem:[%s1130_s23 + $0xec] ss:$16 sps:$4 sm:$0xff]  }
  0x1c   : > { %633 = vmatpush1.bf16.msra.mxu0 %v980_v21  ;;  %674 = vmatpush1.bf16.msra.mxu1 %v981_v22  ;;  %v1010_v41 = vld [vmem:[%s1130_s23 + $0xe0] ss:$16 sps:$4 sm:$0xff]   ;;  %v1011_v42 = vld [vmem:[%s1130_s23 + $0xe8] ss:$16 sps:$4 sm:$0xff]   ;;  %v1012_v43 = vld [vmem:[%s1130_s23 + $0x104] ss:$16 sps:$4 sm:$0xff]  }
  0x1d   : > { %634 = vmatprep.subr.bf16.mxu0 %v982_v23  ;;  %675 = vmatprep.subr.bf16.mxu1 %v984_v24  ;;  %v1014_v44 = vld [vmem:[%s1130_s23 + $0x10c] ss:$16 sps:$4 sm:$0xff]   ;;  %v1016_v45 = vld [vmem:[%s1130_s23 + $0x100] ss:$16 sps:$4 sm:$0xff]   ;;  %v1017_v46 = vld [vmem:[%s1130_s23 + $0x108] ss:$16 sps:$4 sm:$0xff]  }
  0x1e   : > { %v1018_v47 = vld [vmem:[%s1130_s23 + $0x124] ss:$16 sps:$4 sm:$0xff]   ;;  %v1020_v48 = vld [vmem:[%s1130_s23 + $0x12c] ss:$16 sps:$4 sm:$0xff]   ;;  %v1022_v49 = vld [vmem:[%s1130_s23 + $0x120] ss:$16 sps:$4 sm:$0xff]  }
  0x1f   : > { %v1023_v50 = vld [vmem:[%s1130_s23 + $0x128] ss:$16 sps:$4 sm:$0xff]   ;;  %v1024_v51 = vld [vmem:[%s1130_s23 + $0x144] ss:$16 sps:$4 sm:$0xff]   ;;  %v1026_v52 = vld [vmem:[%s1130_s23 + $0x14c] ss:$16 sps:$4 sm:$0xff]  }
  0x20   : > { %635 = vmatpush1.bf16.msra.mxu0 %v986_v25  ;;  %676 = vmatpush1.bf16.msra.mxu1 %v987_v26  ;;  %v1028_v53 = vld [vmem:[%s1130_s23 + $0x140] ss:$16 sps:$4 sm:$0xff]   ;;  %v1029_v54 = vld [vmem:[%s1130_s23 + $0x148] ss:$16 sps:$4 sm:$0xff]   ;;  %v1030_v55 = vld [vmem:[%s1130_s23 + $0x164] ss:$16 sps:$4 sm:$0xff]  }
  0x21   : > { %636 = vmatprep.subr.bf16.mxu0 %v988_v27  ;;  %677 = vmatprep.subr.bf16.mxu1 %v990_v28  ;;  %v1032_v56 = vld [vmem:[%s1130_s23 + $0x16c] ss:$16 sps:$4 sm:$0xff]   ;;  %v1034_v57 = vld [vmem:[%s1130_s23 + $0x160] ss:$16 sps:$4 sm:$0xff]   ;;  %v1035_v58 = vld [vmem:[%s1130_s23 + $0x168] ss:$16 sps:$4 sm:$0xff]  }
  0x22   : > { %v1036_v59 = vld [vmem:[%s1130_s23 + $0x184] ss:$16 sps:$4 sm:$0xff]   ;;  %v1038_v60 = vld [vmem:[%s1130_s23 + $0x18c] ss:$16 sps:$4 sm:$0xff]   ;;  %v1040_v63 = vld [vmem:[%s1130_s23 + $0x180] ss:$16 sps:$4 sm:$0xff]  }
  0x23   : > { %v315_v61 = vld [vmem:[%s1130_s23 + $0x1a0] sm:$0xff]  ;;  %v316_v62 = vld [vmem:[%s1130_s23 + $0x1a8] sm:$0xff]  ;;  %v1072_v11 = vmov 1983009808   ;;  %v1073_v13 = vmov 269488144  }
  0x24   : > { %637 = vmatpush1.bf16.msra.mxu0 %v992_v29  ;;  %678 = vmatpush1.bf16.msra.mxu1 %v993_v30  ;;  %v1041_v1 = vld [vmem:[%s1130_s23 + $0x188] ss:$16 sps:$4 sm:$0xff]   ;;  %v924_v2 = vcombine.high %v315_v61, %v315_v61  ;;  %v926_v3 = vcombine.high %v316_v62, %v316_v62  ;;  %v923_v4 = vcombine.low %v315_v61, %v315_v61  ;;  %v717_v12 = vunpack.c.l.s4 %v1072_v11 }
  0x25   : > { %638 = vmatprep.subr.bf16.mxu0 %v994_v31  ;;  %679 = vmatprep.subr.bf16.mxu1 %v996_v32  ;;  %v925_v6 = vcombine.low %v316_v62, %v316_v62  ;;  %v744_v14 = vunpack.c.l.s4 %v1073_v13 }
  0x26   : > { %v617_v7 = vsel %vm615_vm1, %v923_v4, 0  ;;  %v718_v15 = vunpack.c.0.s8 %v717_v12 }
  0x27   : > { %v623_v8 = vsel %vm615_vm1, %v925_v6, 0  ;;  %v745_v16 = vunpack.c.0.s8 %v744_v14 }
  0x28   : > { %639 = vmatpush1.bf16.msra.mxu0 %v998_v33  ;;  %680 = vmatpush1.bf16.msra.mxu1 %v999_v34  ;;  %v721_v20 = vsub.s32 %v718_v15, %v1122_v5 }
  0x29   : > { %640 = vmatprep.subr.bf16.mxu0 %v1000_v35  ;;  %681 = vmatprep.subr.bf16.mxu1 %v1002_v36  ;;  %v748_v21 = vsub.s32 %v745_v16, %v1122_v5 }
  0x2c   : > { %641 = vmatpush1.bf16.msra.mxu0 %v1004_v37  ;;  %682 = vmatpush1.bf16.msra.mxu1 %v1005_v38 }
  0x2d   : > { %642 = vmatprep.subr.bf16.mxu0 %v1006_v39  ;;  %683 = vmatprep.subr.bf16.mxu1 %v1008_v40 }
  0x30   : > { %643 = vmatpush1.bf16.msra.mxu0 %v1010_v41  ;;  %684 = vmatpush1.bf16.msra.mxu1 %v1011_v42 }
  0x31   : > { %644 = vmatprep.subr.bf16.mxu0 %v1012_v43  ;;  %685 = vmatprep.subr.bf16.mxu1 %v1014_v44 }
  0x34   : > { %645 = vmatpush1.bf16.msra.mxu0 %v1016_v45  ;;  %686 = vmatpush1.bf16.msra.mxu1 %v1017_v46 }
  0x35   : > { %646 = vmatprep.subr.bf16.mxu0 %v1018_v47  ;;  %687 = vmatprep.subr.bf16.mxu1 %v1020_v48 }
  0x38   : > { %647 = vmatpush1.bf16.msra.mxu0 %v1022_v49  ;;  %688 = vmatpush1.bf16.msra.mxu1 %v1023_v50 }
  0x39   : > { %648 = vmatprep.subr.bf16.mxu0 %v1024_v51  ;;  %689 = vmatprep.subr.bf16.mxu1 %v1026_v52 }
  0x3c   : > { %649 = vmatpush1.bf16.msra.mxu0 %v1028_v53  ;;  %690 = vmatpush1.bf16.msra.mxu1 %v1029_v54 }
  0x3d   : > { %650 = vmatprep.subr.bf16.mxu0 %v1030_v55  ;;  %691 = vmatprep.subr.bf16.mxu1 %v1032_v56 }
  0x40   : > { %651 = vmatpush1.bf16.msra.mxu0 %v1034_v57  ;;  %692 = vmatpush1.bf16.msra.mxu1 %v1035_v58 }
  0x41   : > { %652 = vmatprep.subr.bf16.mxu0 %v1036_v59  ;;  %693 = vmatprep.subr.bf16.mxu1 %v1038_v60 }
  0x44   : > { %653 = vmatpush1.bf16.msra.mxu0 %v1040_v63  ;;  %694 = vmatpush1.bf16.msra.mxu1 %v1041_v1 }
  0x45   : > { %927 = vmatprep.subr.msk.bf16.mxu0 %vm615_vm1, %v924_v2  ;;  %929 = vmatprep.subr.msk.bf16.mxu1 %vm615_vm1, %v926_v3 }
  0x48   : > { %655 = vmatpush1.bf16.msra.mxu0 %v617_v7  ;;  %696 = vmatpush1.bf16.msra.mxu1 %v623_v8 }
  0x4b   : > { %661 = vmatmul.mubr.bf16.vlgmr.msra.gmra.mrb[0].mxu0 %v332_v10  ;;  %702 = vmatmul.mubr.bf16.vlgmr.msra.gmra.mrb[0].mxu1 %v332_v10 }
  0x87   : > { %v742_v17 = vpop.permute.xlu0 %741 }
  0x88   : > { %v749_v30 = vrot.slane %v742_v17, %v748_v21 }
 0x11e   : > { %v662_v18 = vpop.f32.mrb[0].mxu0  ;;  %v703_v19 = vpop.f32.mrb[0].mxu1 }
 0x11f   : > { %v664_v22 = vpop.f32.mrb[1].mxu0  ;;  %v705_v0 = vpop.f32.mrb[1].mxu1 }
 0x120   : > { %v714_v9 = vcombine.low %v662_v18, %v664_v22  ;;  %v715_v23 = vcombine.low %v703_v19, %v705_v0  ;;  %v666_v24 = vpop.f32.mrb[2].mxu0  ;;  %v707_v25 = vpop.f32.mrb[2].mxu1 }
 0x121   : > { %v667_v26 = vpop.f32.mrb[3].mxu0  ;;  %v708_v27 = vpop.f32.mrb[3].mxu1 }
 0x122   : > { %v722_v28 = vrot.slane %v714_v9, %v721_v20  ;;  %v729_v29 = vrot.slane %v715_v23, %v721_v20 }
 0x124   : > { %v730_v31 = vcombine.low %v722_v28, %v729_v29 }
 0x126   : > { %v751_v32 = vadd.f32 %v749_v30, %v730_v31 }
 0x128   : > { %752 = vst [vmem:[%s253_s27] sm:$0xff] %v751_v32 }
 0x129 PF: > { %s13_s14 = sadd.s32 1, %s1068_s14   ;;  %s1211_s12 = smov %s1064_s13 }
 0x12a   : > { %p10_p5 = scmp.ge.s32.totalorder %s13_s14, 4   ;;  %s1212_s13 = smov %s1214_s15 }
 0x12c   :  { %12 = sbr.rel (!%p10_p5) target bundleno = 2 (0x2), region = 73 }

</bundles_post_ra>
